<compile_context>
chip_gen: v7x
topology: tpu7x:2x2x1
jax: 0.10.0
libtpu: 0.0.40
codegen_flags: <defaults>
</compile_context>

<pallas_src>
import functools
import numpy as np
import jax
import jax.numpy as jnp
from jax.experimental import pallas as pl
from jax.experimental.pallas import tpu as pltpu

MAX_SEQ_LEN = 45
INPUT_SIZE = 42
HIDDEN = 64
OUTPUT = 4
NUM_LAYERS = 2
NUM_HEADS = 4
HEAD_DIM = HIDDEN // NUM_HEADS
FFN = 2048            # PyTorch TransformerEncoderLayer default dim_feedforward
LN_EPS = 1e-5         # PyTorch default layer_norm_eps

# rows of the packed per-layer vector slab (L, _NUM_VECS, HIDDEN)
_VEC_BO, _VEC_LN1W, _VEC_LN1B, _VEC_B2, _VEC_LN2W, _VEC_LN2B = range(6)
_NUM_VECS = 6


def _layernorm(x, w, b):
    mu = jnp.mean(x, axis=-1, keepdims=True)
    xc = x - mu
    var = jnp.mean(xc * xc, axis=-1, keepdims=True)
    return xc * jax.lax.rsqrt(var + LN_EPS) * w + b


def gesture_transformer_kernel(
    x_ref, pe_ref,
    win_ref,
    wqkv_ref, bqkv_ref, wo_ref,
    w1_ref, b1_ref, w2_ref,
    vec_ref,
    wfc_ref, bfc_ref,
    o_ref,
    *, seq_len, ffn_bf16,
):
    f32 = jnp.float32
    Bb, S_pad, _ = x_ref.shape
    R = Bb * S_pad

    # input projection + (positional encoding + input bias), pe pre-tiled to
    # (Bb*S_pad, HIDDEN) on the host with the input-proj bias folded in.
    x2d = x_ref[...].reshape(R, INPUT_SIZE)           # free view (S_pad % 8 == 0)
    h = jnp.dot(x2d, win_ref[...], preferred_element_type=f32) + pe_ref[...]

    # additive key mask for padded positions (static at trace time)
    if S_pad != seq_len:
        kidx = jax.lax.broadcasted_iota(jnp.int32, (1, 1, S_pad), 2)
        key_bias = jnp.where(kidx < seq_len, 0.0, -1e30).astype(f32)
    else:
        key_bias = None

    scale = 1.0 / np.sqrt(HEAD_DIM)
    for l in range(NUM_LAYERS):
        last = l == NUM_LAYERS - 1
        vecs = vec_ref[l]                               # (_NUM_VECS, HIDDEN)
        bqkv = bqkv_ref[l]                              # (1, 3*HIDDEN), [K|V|Q]

        # --- multi-head self-attention (post-norm, eval mode) ---
        if not last:
            # fused QKV: single (R,64)@(64,192) matmul; columns are [K|V|Q]
            qkv = jnp.dot(h, wqkv_ref[l], preferred_element_type=f32) + bqkv
            k = qkv[:, 0 * HIDDEN:1 * HIDDEN].reshape(Bb, S_pad, HIDDEN)
            v = qkv[:, 1 * HIDDEN:2 * HIDDEN].reshape(Bb, S_pad, HIDDEN)
            q3 = qkv[:, 2 * HIDDEN:3 * HIDDEN].reshape(Bb, S_pad, HIDDEN)
            h_res = h
        else:
            # classifier only reads token 0 -> K/V for all rows, Q for row 0 only
            kv = jnp.dot(h, wqkv_ref[l][:, :2 * HIDDEN],
                         preferred_element_type=f32) + bqkv[:, :2 * HIDDEN]
            k = kv[:, :HIDDEN].reshape(Bb, S_pad, HIDDEN)
            v = kv[:, HIDDEN:].reshape(Bb, S_pad, HIDDEN)
            h0 = h.reshape(Bb, S_pad, HIDDEN)[:, 0, :]          # (Bb, HIDDEN)
            q0 = jnp.dot(h0, wqkv_ref[l][:, 2 * HIDDEN:],
                         preferred_element_type=f32) + bqkv[:, 2 * HIDDEN:]
            q3 = q0.reshape(Bb, 1, HIDDEN)
            h_res = h0

        heads = []
        for hd in range(NUM_HEADS):
            sl = slice(hd * HEAD_DIM, (hd + 1) * HEAD_DIM)
            s = jnp.einsum('bqd,bkd->bqk', q3[..., sl], k[..., sl],
                           preferred_element_type=f32) * scale
            if key_bias is not None:
                s = s + key_bias
            s = s - jnp.max(s, axis=-1, keepdims=True)
            p = jnp.exp(s)
            denom = jnp.sum(p, axis=-1, keepdims=True)
            if last:
                p = p / denom                           # exact recip on output path
            else:
                p = p * pl.reciprocal(denom, approx=True)
            heads.append(jnp.einsum('bqk,bkd->bqd', p, v[..., sl],
                                    preferred_element_type=f32))
        av = jnp.concatenate(heads, axis=-1)            # (Bb, Sq, HIDDEN)
        av = av.reshape(-1, HIDDEN)

        att = jnp.dot(av, wo_ref[l], preferred_element_type=f32) \
            + vecs[_VEC_BO:_VEC_BO + 1]
        h = _layernorm(h_res + att,
                       vecs[_VEC_LN1W:_VEC_LN1W + 1], vecs[_VEC_LN1B:_VEC_LN1B + 1])

        # --- feed-forward (relu); last layer runs only Bb rows ---
        lhs = h.astype(jnp.bfloat16) if ffn_bf16 else h
        f = jnp.dot(lhs, w1_ref[l], preferred_element_type=f32) + b1_ref[l]
        f = jnp.maximum(f, 0.0)
        if ffn_bf16:
            f = f.astype(jnp.bfloat16)
        f = jnp.dot(f, w2_ref[l], preferred_element_type=f32) \
            + vecs[_VEC_B2:_VEC_B2 + 1]
        h = _layernorm(h + f,
                       vecs[_VEC_LN2W:_VEC_LN2W + 1], vecs[_VEC_LN2B:_VEC_LN2B + 1])

    # classifier on the (already extracted) first token
    out = jnp.dot(h, wfc_ref[...], preferred_element_type=f32) + bfc_ref[...]
    o_ref[...] = out[None].astype(o_ref.dtype)


def positional_encoding(seq_len, d_model):
    position = np.arange(seq_len, dtype=np.float32)[:, None]
    div_term = np.exp(np.arange(0, d_model, 2, dtype=np.float32)
                      * (-np.log(10000.0) / d_model))
    pe = np.zeros((seq_len, d_model), np.float32)
    pe[:, 0::2] = np.sin(position * div_term)
    pe[:, 1::2] = np.cos(position * div_term)
    return jnp.asarray(pe)


def init_params(key):
    ks = jax.random.split(key, 12)
    sc = 0.02
    f32 = jnp.float32
    return dict(
        win=jax.random.normal(ks[0], (HIDDEN, INPUT_SIZE), f32) * sc,
        bin=jax.random.normal(ks[1], (HIDDEN,), f32) * sc,
        in_proj_w=jax.random.normal(ks[2], (NUM_LAYERS, 3 * HIDDEN, HIDDEN), f32) * sc,
        in_proj_b=jax.random.normal(ks[3], (NUM_LAYERS, 3 * HIDDEN), f32) * sc,
        out_proj_w=jax.random.normal(ks[4], (NUM_LAYERS, HIDDEN, HIDDEN), f32) * sc,
        out_proj_b=jax.random.normal(ks[5], (NUM_LAYERS, HIDDEN), f32) * sc,
        ln1_w=jnp.ones((NUM_LAYERS, HIDDEN), f32),
        ln1_b=jnp.zeros((NUM_LAYERS, HIDDEN), f32),
        ffn_w1=jax.random.normal(ks[6], (NUM_LAYERS, FFN, HIDDEN), f32) * sc,
        ffn_b1=jax.random.normal(ks[7], (NUM_LAYERS, FFN), f32) * sc,
        ffn_w2=jax.random.normal(ks[8], (NUM_LAYERS, HIDDEN, FFN), f32) * sc,
        ffn_b2=jax.random.normal(ks[9], (NUM_LAYERS, HIDDEN), f32) * sc,
        ln2_w=jnp.ones((NUM_LAYERS, HIDDEN), f32),
        ln2_b=jnp.zeros((NUM_LAYERS, HIDDEN), f32),
        fc_w=jax.random.normal(ks[10], (OUTPUT, HIDDEN), f32) * sc,
        fc_b=jax.random.normal(ks[11], (OUTPUT,), f32) * sc,
    )


def gesture_transformer(x, params, *, block_b=None, ffn_bf16=True):
    B, S, Fin = x.shape
    assert Fin == INPUT_SIZE and S <= MAX_SEQ_LEN
    L = NUM_LAYERS
    f32 = jnp.float32

    # pad the sequence to a multiple of 8 -> (Bb*S, .) <-> (Bb, S, .) reshapes are
    # free sublane-tile views; padded key columns get masked in-kernel.
    S_pad = ((S + 7) // 8) * 8
    if S_pad != S:
        x = jnp.pad(x, ((0, 0), (0, S_pad - S), (0, 0)))

    # batch blocking: target >= ~512 flattened rows per grid step, but keep at
    # least 2 grid steps so the "parallel" axis can shard over v7x's 2 TCs.
    if block_b is None:
        block_b = max(1, min(B, pl.cdiv(512, S_pad)))
        if B >= 2:
            block_b = min(block_b, pl.cdiv(B, 2))
    G = pl.cdiv(B, block_b)
    Bp = G * block_b
    if Bp != B:
        x = jnp.pad(x, ((0, Bp - B), (0, 0), (0, 0)))

    # positional encoding with the input-proj bias folded in, tiled to the slab
    pe = positional_encoding(S, HIDDEN)
    if S_pad != S:
        pe = jnp.pad(pe, ((0, S_pad - S), (0, 0)))
    pe_tiled = jnp.tile(pe + params['bin'][None, :], (block_b, 1))   # (block_b*S_pad, H)

    # pre-transpose weights to [in, out]; QKV columns reordered to [K|V|Q] so the
    # last layer can split off the Q projection with lane-aligned slices.
    w_in = params['in_proj_w']                                       # (L, 3H, H) [Q;K;V]
    wqkv_t = jnp.concatenate(
        [w_in[:, HIDDEN:2 * HIDDEN], w_in[:, 2 * HIDDEN:], w_in[:, :HIDDEN]],
        axis=1).transpose(0, 2, 1)                                   # (L, H, 3H) [K|V|Q]
    b_in = params['in_proj_b']
    bqkv = jnp.concatenate(
        [b_in[:, HIDDEN:2 * HIDDEN], b_in[:, 2 * HIDDEN:], b_in[:, :HIDDEN]],
        axis=1).reshape(L, 1, 3 * HIDDEN)
    wo_t = jnp.transpose(params['out_proj_w'], (0, 2, 1))            # (L, H, H)
    mm_dtype = jnp.bfloat16 if ffn_bf16 else f32
    w1_t = jnp.transpose(params['ffn_w1'], (0, 2, 1)).astype(mm_dtype)   # (L, H, FFN)
    w2_t = jnp.transpose(params['ffn_w2'], (0, 2, 1)).astype(mm_dtype)   # (L, FFN, H)

    # pack the small per-layer (HIDDEN,) vectors into one slab
    vecs = jnp.stack([params['out_proj_b'], params['ln1_w'], params['ln1_b'],
                      params['ffn_b2'], params['ln2_w'], params['ln2_b']],
                     axis=1)                                         # (L, 6, H)

    args = (
        x, pe_tiled,
        params['win'].T,
        wqkv_t, bqkv, wo_t,
        w1_t, params['ffn_b1'].reshape(L, 1, FFN), w2_t,
        vecs,
        params['fc_w'].T, params['fc_b'].reshape(1, OUTPUT),
    )

    # constant-index blocks: single-buffered (Buffered(1)) -- no point
    # double-buffering data whose block index never changes.
    def const_spec(a):
        nd = a.ndim
        return pl.BlockSpec(a.shape, lambda i, _nd=nd: (0,) * _nd,
                            pipeline_mode=pl.Buffered(1))

    in_specs = [pl.BlockSpec((block_b, S_pad, INPUT_SIZE), lambda i: (i, 0, 0))]
    in_specs += [const_spec(a) for a in args[1:]]
    # 3-D output so the block's last two dims always equal the full array dims
    out_spec = pl.BlockSpec((1, block_b, OUTPUT), lambda i: (i, 0, 0))

    kernel = functools.partial(gesture_transformer_kernel,
                               seq_len=S, ffn_bf16=ffn_bf16)

    out = pl.pallas_call(
        kernel,
        out_shape=jax.ShapeDtypeStruct((G, block_b, OUTPUT), f32),
        grid_spec=pltpu.PrefetchScalarGridSpec(
            num_scalar_prefetch=0,
            grid=(G,),
            in_specs=in_specs,
            out_specs=out_spec,
        ),
        compiler_params=pltpu.CompilerParams(
            dimension_semantics=("parallel",),   # batch steps independent (v7x megacore)
            vmem_limit_bytes=32 << 20,
        ),
    )(*args)
    return out.reshape(Bp, OUTPUT)[:B]


# ----------------------------- pure-JAX reference -----------------------------
def _ln_ref(x, w, b):
    mu = jnp.mean(x, axis=-1, keepdims=True)
    var = jnp.mean((x - mu) ** 2, axis=-1, keepdims=True)
    return (x - mu) * jax.lax.rsqrt(var + LN_EPS) * w + b


def reference_forward(x, params):
    B, S, _ = x.shape
    pe = positional_encoding(S, HIDDEN)
    h = x @ params['win'].T + params['bin'] + pe[None]
    for l in range(NUM_LAYERS):
        qkv = h @ params['in_proj_w'][l].T + params['in_proj_b'][l]
        q, k, v = jnp.split(qkv, 3, axis=-1)
        qh = q.reshape(B, S, NUM_HEADS, HEAD_DIM).transpose(0, 2, 1, 3)
        kh = k.reshape(B, S, NUM_HEADS, HEAD_DIM).transpose(0, 2, 1, 3)
        vh = v.reshape(B, S, NUM_HEADS, HEAD_DIM).transpose(0, 2, 1, 3)
        s = jnp.einsum('bhqd,bhkd->bhqk', qh, kh) / np.sqrt(HEAD_DIM)
        p = jax.nn.softmax(s, axis=-1)
        av = jnp.einsum('bhqk,bhkd->bhqd', p, vh).transpose(0, 2, 1, 3).reshape(B, S, HIDDEN)
        att = av @ params['out_proj_w'][l].T + params['out_proj_b'][l]
        h = _ln_ref(h + att, params['ln1_w'][l], params['ln1_b'][l])
        f = jax.nn.relu(h @ params['ffn_w1'][l].T + params['ffn_b1'][l])
        f = f @ params['ffn_w2'][l].T + params['ffn_b2'][l]
        h = _ln_ref(h + f, params['ln2_w'][l], params['ln2_b'][l])
    return h[:, 0] @ params['fc_w'].T + params['fc_b']


if __name__ == "__main__":
    key = jax.random.PRNGKey(0)
    kx, kp, kx2 = jax.random.split(key, 3)
    params = init_params(kp)

    # tolerance accounts for bf16 FFN matmul operands (f32 accumulation)
    RTOL, ATOL = 5e-3, 5e-4

    # small primary test (batch=2, seq=8)
    x = jax.random.normal(kx, (2, 8, INPUT_SIZE), jnp.float32)
    out = jax.block_until_ready(gesture_transformer(x, params))
    assert out.shape == (2, OUTPUT)
    ref = jax.block_until_ready(reference_forward(x, params))
    np.testing.assert_allclose(np.asarray(out), np.asarray(ref), rtol=RTOL, atol=ATOL)

    # full-length sequence: exercises seq padding + key masking + batch padding
    x2 = jax.random.normal(kx2, (3, MAX_SEQ_LEN, INPUT_SIZE), jnp.float32)
    out2 = jax.block_until_ready(gesture_transformer(x2, params))
    ref2 = jax.block_until_ready(reference_forward(x2, params))
    np.testing.assert_allclose(np.asarray(out2), np.asarray(ref2), rtol=RTOL, atol=ATOL)

    print("KERNEL_OK")
</pallas_src>

<mosaic_0001>
module attributes {stable_mosaic.version = 11 : i64} {
  func.func @gesture_transformer_kernel(%arg0: i32, %arg1: memref<1x8x42xf32, #tpu.memory_space<vmem>>, %arg2: memref<8x64xf32, #tpu.memory_space<vmem>>, %arg3: memref<42x64xf32, #tpu.memory_space<vmem>>, %arg4: memref<2x64x192xf32, #tpu.memory_space<vmem>>, %arg5: memref<2x1x192xf32, #tpu.memory_space<vmem>>, %arg6: memref<2x64x64xf32, #tpu.memory_space<vmem>>, %arg7: memref<2x64x2048xbf16, #tpu.memory_space<vmem>>, %arg8: memref<2x1x2048xf32, #tpu.memory_space<vmem>>, %arg9: memref<2x2048x64xbf16, #tpu.memory_space<vmem>>, %arg10: memref<2x6x64xf32, #tpu.memory_space<vmem>>, %arg11: memref<64x4xf32, #tpu.memory_space<vmem>>, %arg12: memref<1x4xf32, #tpu.memory_space<vmem>>, %arg13: memref<1x1x4xf32, #tpu.memory_space<vmem>>) attributes {dimension_semantics = [#tpu.dimension_semantics<parallel>], iteration_bounds = array<i64: 2>, scalar_prefetch = 0 : i64, scratch_operands = 0 : i64, tpu.core_type = #tpu.core_type<tc>, window_params = [{transform_indices = @transform_0, window_bounds = array<i64: 1, 8, 42>}, {pipeline_mode = #tpu.pipeline_mode<synchronous>, transform_indices = @transform_1, window_bounds = array<i64: 8, 64>}, {pipeline_mode = #tpu.pipeline_mode<synchronous>, transform_indices = @transform_2, window_bounds = array<i64: 42, 64>}, {pipeline_mode = #tpu.pipeline_mode<synchronous>, transform_indices = @transform_3, window_bounds = array<i64: 2, 64, 192>}, {pipeline_mode = #tpu.pipeline_mode<synchronous>, transform_indices = @transform_4, window_bounds = array<i64: 2, 1, 192>}, {pipeline_mode = #tpu.pipeline_mode<synchronous>, transform_indices = @transform_5, window_bounds = array<i64: 2, 64, 64>}, {pipeline_mode = #tpu.pipeline_mode<synchronous>, transform_indices = @transform_6, window_bounds = array<i64: 2, 64, 2048>}, {pipeline_mode = #tpu.pipeline_mode<synchronous>, transform_indices = @transform_7, window_bounds = array<i64: 2, 1, 2048>}, {pipeline_mode = #tpu.pipeline_mode<synchronous>, transform_indices = @transform_8, window_bounds = array<i64: 2, 2048, 64>}, {pipeline_mode = #tpu.pipeline_mode<synchronous>, transform_indices = @transform_9, window_bounds = array<i64: 2, 6, 64>}, {pipeline_mode = #tpu.pipeline_mode<synchronous>, transform_indices = @transform_10, window_bounds = array<i64: 64, 4>}, {pipeline_mode = #tpu.pipeline_mode<synchronous>, transform_indices = @transform_11, window_bounds = array<i64: 1, 4>}, {transform_indices = @transform_12, window_bounds = array<i64: 1, 1, 4>}]} {
    %c0 = arith.constant 0 : index
    %c0_0 = arith.constant 0 : index
    %c0_1 = arith.constant 0 : index
    %0 = vector.load %arg1[%c0, %c0_0, %c0_1] : memref<1x8x42xf32, #tpu.memory_space<vmem>>, vector<1x8x42xf32>
    %1 = vector.shape_cast %0 : vector<1x8x42xf32> to vector<8x42xf32>
    %c0_2 = arith.constant 0 : index
    %c0_3 = arith.constant 0 : index
    %2 = vector.load %arg3[%c0_2, %c0_3] : memref<42x64xf32, #tpu.memory_space<vmem>>, vector<42x64xf32>
    %cst = arith.constant dense<0.000000e+00> : vector<8x64xf32>
    %3 = tpu.matmul %1, %2, %cst {dimension_numbers = #tpu.dot_dimension_numbers<[1], [0], [0], [1], [0, 0, 1, 1], [], []>} : vector<8x42xf32>, vector<42x64xf32>, vector<8x64xf32> -> vector<8x64xf32>
    %c0_4 = arith.constant 0 : index
    %c0_5 = arith.constant 0 : index
    %4 = vector.load %arg2[%c0_4, %c0_5] : memref<8x64xf32, #tpu.memory_space<vmem>>, vector<8x64xf32>
    %5 = arith.addf %3, %4 : vector<8x64xf32>
    %c0_6 = arith.constant 0 : index
    %c0_7 = arith.constant 0 : index
    %c0_8 = arith.constant 0 : index
    %6 = vector.load %arg10[%c0_6, %c0_7, %c0_8] : memref<2x6x64xf32, #tpu.memory_space<vmem>>, vector<1x6x64xf32>
    %7 = vector.shape_cast %6 : vector<1x6x64xf32> to vector<6x64xf32>
    %c0_9 = arith.constant 0 : index
    %c0_10 = arith.constant 0 : index
    %c0_11 = arith.constant 0 : index
    %8 = vector.load %arg5[%c0_9, %c0_10, %c0_11] : memref<2x1x192xf32, #tpu.memory_space<vmem>>, vector<1x1x192xf32>
    %9 = vector.shape_cast %8 : vector<1x1x192xf32> to vector<1x192xf32>
    %c0_12 = arith.constant 0 : index
    %c0_13 = arith.constant 0 : index
    %c0_14 = arith.constant 0 : index
    %10 = vector.load %arg4[%c0_12, %c0_13, %c0_14] : memref<2x64x192xf32, #tpu.memory_space<vmem>>, vector<1x64x192xf32>
    %11 = vector.shape_cast %10 : vector<1x64x192xf32> to vector<64x192xf32>
    %cst_15 = arith.constant dense<0.000000e+00> : vector<8x192xf32>
    %12 = tpu.matmul %5, %11, %cst_15 {dimension_numbers = #tpu.dot_dimension_numbers<[1], [0], [0], [1], [0, 0, 1, 1], [], []>} : vector<8x64xf32>, vector<64x192xf32>, vector<8x192xf32> -> vector<8x192xf32>
    %13 = vector.broadcast %9 : vector<1x192xf32> to vector<8x192xf32>
    %14 = arith.addf %12, %13 : vector<8x192xf32>
    %15 = vector.extract_strided_slice %14 {offsets = [0, 0], sizes = [8, 64], strides = [1, 1]} : vector<8x192xf32> to vector<8x64xf32>
    %16 = vector.shape_cast %15 : vector<8x64xf32> to vector<1x8x64xf32>
    %17 = vector.extract_strided_slice %14 {offsets = [0, 64], sizes = [8, 64], strides = [1, 1]} : vector<8x192xf32> to vector<8x64xf32>
    %18 = vector.shape_cast %17 : vector<8x64xf32> to vector<1x8x64xf32>
    %19 = vector.extract_strided_slice %14 {offsets = [0, 128], sizes = [8, 64], strides = [1, 1]} : vector<8x192xf32> to vector<8x64xf32>
    %20 = vector.shape_cast %19 : vector<8x64xf32> to vector<1x8x64xf32>
    %21 = vector.extract_strided_slice %20 {offsets = [0, 0, 0], sizes = [1, 8, 16], strides = [1, 1, 1]} : vector<1x8x64xf32> to vector<1x8x16xf32>
    %22 = vector.extract_strided_slice %16 {offsets = [0, 0, 0], sizes = [1, 8, 16], strides = [1, 1, 1]} : vector<1x8x64xf32> to vector<1x8x16xf32>
    "tpu.trace_start"() <{level = 10 : i32, message = "bqd,bkd->bqk"}> : () -> ()
    %cst_16 = arith.constant dense<0.000000e+00> : vector<1x8x8xf32>
    %23 = tpu.matmul %21, %22, %cst_16 {dimension_numbers = #tpu.dot_dimension_numbers<[2], [2], [1], [1], [0, 0, 0, 1, 1, 1], [0], [0]>} : vector<1x8x16xf32>, vector<1x8x16xf32>, vector<1x8x8xf32> -> vector<1x8x8xf32>
    "tpu.trace_stop"() : () -> ()
    %cst_17 = arith.constant 2.500000e-01 : f32
    %24 = vector.broadcast %cst_17 : f32 to vector<1x8x8xf32>
    %25 = arith.mulf %23, %24 : vector<1x8x8xf32>
    %cst_18 = arith.constant dense<0xFF800000> : vector<1x8xf32>
    %26 = vector.multi_reduction <maximumf>, %25, %cst_18 [2] : vector<1x8x8xf32> to vector<1x8xf32>
    %27 = vector.shape_cast %26 : vector<1x8xf32> to vector<1x8x1xf32>
    %28 = vector.broadcast %27 : vector<1x8x1xf32> to vector<1x8x8xf32>
    %29 = arith.subf %25, %28 : vector<1x8x8xf32>
    %30 = math.exp %29 : vector<1x8x8xf32>
    %cst_19 = arith.constant dense<0.000000e+00> : vector<1x8xf32>
    %31 = vector.multi_reduction <add>, %30, %cst_19 [2] : vector<1x8x8xf32> to vector<1x8xf32>
    %32 = vector.shape_cast %31 : vector<1x8xf32> to vector<1x8x1xf32>
    %33 = tpu.reciprocal %32 {approx = true} : vector<1x8x1xf32> -> vector<1x8x1xf32>
    %34 = vector.broadcast %33 : vector<1x8x1xf32> to vector<1x8x8xf32>
    %35 = arith.mulf %30, %34 : vector<1x8x8xf32>
    %36 = vector.extract_strided_slice %18 {offsets = [0, 0, 0], sizes = [1, 8, 16], strides = [1, 1, 1]} : vector<1x8x64xf32> to vector<1x8x16xf32>
    "tpu.trace_start"() <{level = 10 : i32, message = "bqk,bkd->bqd"}> : () -> ()
    %cst_20 = arith.constant dense<0.000000e+00> : vector<1x8x16xf32>
    %37 = tpu.matmul %35, %36, %cst_20 {dimension_numbers = #tpu.dot_dimension_numbers<[2], [1], [1], [2], [0, 0, 0, 1, 1, 2], [0], [0]>} : vector<1x8x8xf32>, vector<1x8x16xf32>, vector<1x8x16xf32> -> vector<1x8x16xf32>
    "tpu.trace_stop"() : () -> ()
    %38 = vector.extract_strided_slice %20 {offsets = [0, 0, 16], sizes = [1, 8, 16], strides = [1, 1, 1]} : vector<1x8x64xf32> to vector<1x8x16xf32>
    %39 = vector.extract_strided_slice %16 {offsets = [0, 0, 16], sizes = [1, 8, 16], strides = [1, 1, 1]} : vector<1x8x64xf32> to vector<1x8x16xf32>
    "tpu.trace_start"() <{level = 10 : i32, message = "bqd,bkd->bqk"}> : () -> ()
    %cst_21 = arith.constant dense<0.000000e+00> : vector<1x8x8xf32>
    %40 = tpu.matmul %38, %39, %cst_21 {dimension_numbers = #tpu.dot_dimension_numbers<[2], [2], [1], [1], [0, 0, 0, 1, 1, 1], [0], [0]>} : vector<1x8x16xf32>, vector<1x8x16xf32>, vector<1x8x8xf32> -> vector<1x8x8xf32>
    "tpu.trace_stop"() : () -> ()
    %cst_22 = arith.constant 2.500000e-01 : f32
    %41 = vector.broadcast %cst_22 : f32 to vector<1x8x8xf32>
    %42 = arith.mulf %40, %41 : vector<1x8x8xf32>
    %cst_23 = arith.constant dense<0xFF800000> : vector<1x8xf32>
    %43 = vector.multi_reduction <maximumf>, %42, %cst_23 [2] : vector<1x8x8xf32> to vector<1x8xf32>
    %44 = vector.shape_cast %43 : vector<1x8xf32> to vector<1x8x1xf32>
    %45 = vector.broadcast %44 : vector<1x8x1xf32> to vector<1x8x8xf32>
    %46 = arith.subf %42, %45 : vector<1x8x8xf32>
    %47 = math.exp %46 : vector<1x8x8xf32>
    %cst_24 = arith.constant dense<0.000000e+00> : vector<1x8xf32>
    %48 = vector.multi_reduction <add>, %47, %cst_24 [2] : vector<1x8x8xf32> to vector<1x8xf32>
    %49 = vector.shape_cast %48 : vector<1x8xf32> to vector<1x8x1xf32>
    %50 = tpu.reciprocal %49 {approx = true} : vector<1x8x1xf32> -> vector<1x8x1xf32>
    %51 = vector.broadcast %50 : vector<1x8x1xf32> to vector<1x8x8xf32>
    %52 = arith.mulf %47, %51 : vector<1x8x8xf32>
    %53 = vector.extract_strided_slice %18 {offsets = [0, 0, 16], sizes = [1, 8, 16], strides = [1, 1, 1]} : vector<1x8x64xf32> to vector<1x8x16xf32>
    "tpu.trace_start"() <{level = 10 : i32, message = "bqk,bkd->bqd"}> : () -> ()
    %cst_25 = arith.constant dense<0.000000e+00> : vector<1x8x16xf32>
    %54 = tpu.matmul %52, %53, %cst_25 {dimension_numbers = #tpu.dot_dimension_numbers<[2], [1], [1], [2], [0, 0, 0, 1, 1, 2], [0], [0]>} : vector<1x8x8xf32>, vector<1x8x16xf32>, vector<1x8x16xf32> -> vector<1x8x16xf32>
    "tpu.trace_stop"() : () -> ()
    %55 = vector.extract_strided_slice %20 {offsets = [0, 0, 32], sizes = [1, 8, 16], strides = [1, 1, 1]} : vector<1x8x64xf32> to vector<1x8x16xf32>
    %56 = vector.extract_strided_slice %16 {offsets = [0, 0, 32], sizes = [1, 8, 16], strides = [1, 1, 1]} : vector<1x8x64xf32> to vector<1x8x16xf32>
    "tpu.trace_start"() <{level = 10 : i32, message = "bqd,bkd->bqk"}> : () -> ()
    %cst_26 = arith.constant dense<0.000000e+00> : vector<1x8x8xf32>
    %57 = tpu.matmul %55, %56, %cst_26 {dimension_numbers = #tpu.dot_dimension_numbers<[2], [2], [1], [1], [0, 0, 0, 1, 1, 1], [0], [0]>} : vector<1x8x16xf32>, vector<1x8x16xf32>, vector<1x8x8xf32> -> vector<1x8x8xf32>
    "tpu.trace_stop"() : () -> ()
    %cst_27 = arith.constant 2.500000e-01 : f32
    %58 = vector.broadcast %cst_27 : f32 to vector<1x8x8xf32>
    %59 = arith.mulf %57, %58 : vector<1x8x8xf32>
    %cst_28 = arith.constant dense<0xFF800000> : vector<1x8xf32>
    %60 = vector.multi_reduction <maximumf>, %59, %cst_28 [2] : vector<1x8x8xf32> to vector<1x8xf32>
    %61 = vector.shape_cast %60 : vector<1x8xf32> to vector<1x8x1xf32>
    %62 = vector.broadcast %61 : vector<1x8x1xf32> to vector<1x8x8xf32>
    %63 = arith.subf %59, %62 : vector<1x8x8xf32>
    %64 = math.exp %63 : vector<1x8x8xf32>
    %cst_29 = arith.constant dense<0.000000e+00> : vector<1x8xf32>
    %65 = vector.multi_reduction <add>, %64, %cst_29 [2] : vector<1x8x8xf32> to vector<1x8xf32>
    %66 = vector.shape_cast %65 : vector<1x8xf32> to vector<1x8x1xf32>
    %67 = tpu.reciprocal %66 {approx = true} : vector<1x8x1xf32> -> vector<1x8x1xf32>
    %68 = vector.broadcast %67 : vector<1x8x1xf32> to vector<1x8x8xf32>
    %69 = arith.mulf %64, %68 : vector<1x8x8xf32>
    %70 = vector.extract_strided_slice %18 {offsets = [0, 0, 32], sizes = [1, 8, 16], strides = [1, 1, 1]} : vector<1x8x64xf32> to vector<1x8x16xf32>
    "tpu.trace_start"() <{level = 10 : i32, message = "bqk,bkd->bqd"}> : () -> ()
    %cst_30 = arith.constant dense<0.000000e+00> : vector<1x8x16xf32>
    %71 = tpu.matmul %69, %70, %cst_30 {dimension_numbers = #tpu.dot_dimension_numbers<[2], [1], [1], [2], [0, 0, 0, 1, 1, 2], [0], [0]>} : vector<1x8x8xf32>, vector<1x8x16xf32>, vector<1x8x16xf32> -> vector<1x8x16xf32>
    "tpu.trace_stop"() : () -> ()
    %72 = vector.extract_strided_slice %20 {offsets = [0, 0, 48], sizes = [1, 8, 16], strides = [1, 1, 1]} : vector<1x8x64xf32> to vector<1x8x16xf32>
    %73 = vector.extract_strided_slice %16 {offsets = [0, 0, 48], sizes = [1, 8, 16], strides = [1, 1, 1]} : vector<1x8x64xf32> to vector<1x8x16xf32>
    "tpu.trace_start"() <{level = 10 : i32, message = "bqd,bkd->bqk"}> : () -> ()
    %cst_31 = arith.constant dense<0.000000e+00> : vector<1x8x8xf32>
    %74 = tpu.matmul %72, %73, %cst_31 {dimension_numbers = #tpu.dot_dimension_numbers<[2], [2], [1], [1], [0, 0, 0, 1, 1, 1], [0], [0]>} : vector<1x8x16xf32>, vector<1x8x16xf32>, vector<1x8x8xf32> -> vector<1x8x8xf32>
    "tpu.trace_stop"() : () -> ()
    %cst_32 = arith.constant 2.500000e-01 : f32
    %75 = vector.broadcast %cst_32 : f32 to vector<1x8x8xf32>
    %76 = arith.mulf %74, %75 : vector<1x8x8xf32>
    %cst_33 = arith.constant dense<0xFF800000> : vector<1x8xf32>
    %77 = vector.multi_reduction <maximumf>, %76, %cst_33 [2] : vector<1x8x8xf32> to vector<1x8xf32>
    %78 = vector.shape_cast %77 : vector<1x8xf32> to vector<1x8x1xf32>
    %79 = vector.broadcast %78 : vector<1x8x1xf32> to vector<1x8x8xf32>
    %80 = arith.subf %76, %79 : vector<1x8x8xf32>
    %81 = math.exp %80 : vector<1x8x8xf32>
    %cst_34 = arith.constant dense<0.000000e+00> : vector<1x8xf32>
    %82 = vector.multi_reduction <add>, %81, %cst_34 [2] : vector<1x8x8xf32> to vector<1x8xf32>
    %83 = vector.shape_cast %82 : vector<1x8xf32> to vector<1x8x1xf32>
    %84 = tpu.reciprocal %83 {approx = true} : vector<1x8x1xf32> -> vector<1x8x1xf32>
    %85 = vector.broadcast %84 : vector<1x8x1xf32> to vector<1x8x8xf32>
    %86 = arith.mulf %81, %85 : vector<1x8x8xf32>
    %87 = vector.extract_strided_slice %18 {offsets = [0, 0, 48], sizes = [1, 8, 16], strides = [1, 1, 1]} : vector<1x8x64xf32> to vector<1x8x16xf32>
    "tpu.trace_start"() <{level = 10 : i32, message = "bqk,bkd->bqd"}> : () -> ()
    %cst_35 = arith.constant dense<0.000000e+00> : vector<1x8x16xf32>
    %88 = tpu.matmul %86, %87, %cst_35 {dimension_numbers = #tpu.dot_dimension_numbers<[2], [1], [1], [2], [0, 0, 0, 1, 1, 2], [0], [0]>} : vector<1x8x8xf32>, vector<1x8x16xf32>, vector<1x8x16xf32> -> vector<1x8x16xf32>
    "tpu.trace_stop"() : () -> ()
    %89 = tpu.concatenate %37, %54, %71, %88 in 2 : vector<1x8x16xf32>, vector<1x8x16xf32>, vector<1x8x16xf32>, vector<1x8x16xf32> -> vector<1x8x64xf32>
    %90 = vector.shape_cast %89 : vector<1x8x64xf32> to vector<8x64xf32>
    %c0_36 = arith.constant 0 : index
    %c0_37 = arith.constant 0 : index
    %c0_38 = arith.constant 0 : index
    %91 = vector.load %arg6[%c0_36, %c0_37, %c0_38] : memref<2x64x64xf32, #tpu.memory_space<vmem>>, vector<1x64x64xf32>
    %92 = vector.shape_cast %91 : vector<1x64x64xf32> to vector<64x64xf32>
    %cst_39 = arith.constant dense<0.000000e+00> : vector<8x64xf32>
    %93 = tpu.matmul %90, %92, %cst_39 {dimension_numbers = #tpu.dot_dimension_numbers<[1], [0], [0], [1], [0, 0, 1, 1], [], []>} : vector<8x64xf32>, vector<64x64xf32>, vector<8x64xf32> -> vector<8x64xf32>
    %94 = vector.extract_strided_slice %7 {offsets = [0, 0], sizes = [1, 64], strides = [1, 1]} : vector<6x64xf32> to vector<1x64xf32>
    %95 = vector.broadcast %94 : vector<1x64xf32> to vector<8x64xf32>
    %96 = arith.addf %93, %95 : vector<8x64xf32>
    %97 = arith.addf %5, %96 : vector<8x64xf32>
    %98 = vector.extract_strided_slice %7 {offsets = [1, 0], sizes = [1, 64], strides = [1, 1]} : vector<6x64xf32> to vector<1x64xf32>
    %99 = vector.extract_strided_slice %7 {offsets = [2, 0], sizes = [1, 64], strides = [1, 1]} : vector<6x64xf32> to vector<1x64xf32>
    %cst_40 = arith.constant dense<0.000000e+00> : vector<8xf32>
    %100 = vector.multi_reduction <add>, %97, %cst_40 [1] : vector<8x64xf32> to vector<8xf32>
    %101 = vector.shape_cast %100 : vector<8xf32> to vector<8x1xf32>
    %cst_41 = arith.constant 6.400000e+01 : f32
    %102 = vector.broadcast %cst_41 : f32 to vector<8x1xf32>
    %103 = arith.divf %101, %102 : vector<8x1xf32>
    %104 = vector.broadcast %103 : vector<8x1xf32> to vector<8x64xf32>
    %105 = arith.subf %97, %104 : vector<8x64xf32>
    %106 = arith.mulf %105, %105 : vector<8x64xf32>
    %cst_42 = arith.constant dense<0.000000e+00> : vector<8xf32>
    %107 = vector.multi_reduction <add>, %106, %cst_42 [1] : vector<8x64xf32> to vector<8xf32>
    %108 = vector.shape_cast %107 : vector<8xf32> to vector<8x1xf32>
    %cst_43 = arith.constant 6.400000e+01 : f32
    %109 = vector.broadcast %cst_43 : f32 to vector<8x1xf32>
    %110 = arith.divf %108, %109 : vector<8x1xf32>
    %cst_44 = arith.constant 9.99999974E-6 : f32
    %111 = vector.broadcast %cst_44 : f32 to vector<8x1xf32>
    %112 = arith.addf %110, %111 : vector<8x1xf32>
    %113 = math.rsqrt %112 : vector<8x1xf32>
    %114 = vector.broadcast %113 : vector<8x1xf32> to vector<8x64xf32>
    %115 = arith.mulf %105, %114 : vector<8x64xf32>
    %116 = vector.broadcast %98 : vector<1x64xf32> to vector<8x64xf32>
    %117 = arith.mulf %115, %116 : vector<8x64xf32>
    %118 = vector.broadcast %99 : vector<1x64xf32> to vector<8x64xf32>
    %119 = arith.addf %117, %118 : vector<8x64xf32>
    %120 = arith.truncf %119 : vector<8x64xf32> to vector<8x64xbf16>
    %c0_45 = arith.constant 0 : index
    %c0_46 = arith.constant 0 : index
    %c0_47 = arith.constant 0 : index
    %121 = vector.load %arg7[%c0_45, %c0_46, %c0_47] : memref<2x64x2048xbf16, #tpu.memory_space<vmem>>, vector<1x64x2048xbf16>
    %122 = vector.shape_cast %121 : vector<1x64x2048xbf16> to vector<64x2048xbf16>
    %cst_48 = arith.constant dense<0.000000e+00> : vector<8x2048xf32>
    %123 = tpu.matmul %120, %122, %cst_48 {dimension_numbers = #tpu.dot_dimension_numbers<[1], [0], [0], [1], [0, 0, 1, 1], [], []>} : vector<8x64xbf16>, vector<64x2048xbf16>, vector<8x2048xf32> -> vector<8x2048xf32>
    %c0_49 = arith.constant 0 : index
    %c0_50 = arith.constant 0 : index
    %c0_51 = arith.constant 0 : index
    %124 = vector.load %arg8[%c0_49, %c0_50, %c0_51] : memref<2x1x2048xf32, #tpu.memory_space<vmem>>, vector<1x1x2048xf32>
    %125 = vector.shape_cast %124 : vector<1x1x2048xf32> to vector<1x2048xf32>
    %126 = vector.broadcast %125 : vector<1x2048xf32> to vector<8x2048xf32>
    %127 = arith.addf %123, %126 : vector<8x2048xf32>
    %cst_52 = arith.constant 0.000000e+00 : f32
    %128 = vector.broadcast %cst_52 : f32 to vector<8x2048xf32>
    %129 = arith.maximumf %127, %128 : vector<8x2048xf32>
    %130 = arith.truncf %129 : vector<8x2048xf32> to vector<8x2048xbf16>
    %c0_53 = arith.constant 0 : index
    %c0_54 = arith.constant 0 : index
    %c0_55 = arith.constant 0 : index
    %131 = vector.load %arg9[%c0_53, %c0_54, %c0_55] : memref<2x2048x64xbf16, #tpu.memory_space<vmem>>, vector<1x2048x64xbf16>
    %132 = vector.shape_cast %131 : vector<1x2048x64xbf16> to vector<2048x64xbf16>
    %cst_56 = arith.constant dense<0.000000e+00> : vector<8x64xf32>
    %133 = tpu.matmul %130, %132, %cst_56 {dimension_numbers = #tpu.dot_dimension_numbers<[1], [0], [0], [1], [0, 0, 1, 1], [], []>} : vector<8x2048xbf16>, vector<2048x64xbf16>, vector<8x64xf32> -> vector<8x64xf32>
    %134 = vector.extract_strided_slice %7 {offsets = [3, 0], sizes = [1, 64], strides = [1, 1]} : vector<6x64xf32> to vector<1x64xf32>
    %135 = vector.broadcast %134 : vector<1x64xf32> to vector<8x64xf32>
    %136 = arith.addf %133, %135 : vector<8x64xf32>
    %137 = arith.addf %119, %136 : vector<8x64xf32>
    %138 = vector.extract_strided_slice %7 {offsets = [4, 0], sizes = [1, 64], strides = [1, 1]} : vector<6x64xf32> to vector<1x64xf32>
    %139 = vector.extract_strided_slice %7 {offsets = [5, 0], sizes = [1, 64], strides = [1, 1]} : vector<6x64xf32> to vector<1x64xf32>
    %cst_57 = arith.constant dense<0.000000e+00> : vector<8xf32>
    %140 = vector.multi_reduction <add>, %137, %cst_57 [1] : vector<8x64xf32> to vector<8xf32>
    %141 = vector.shape_cast %140 : vector<8xf32> to vector<8x1xf32>
    %cst_58 = arith.constant 6.400000e+01 : f32
    %142 = vector.broadcast %cst_58 : f32 to vector<8x1xf32>
    %143 = arith.divf %141, %142 : vector<8x1xf32>
    %144 = vector.broadcast %143 : vector<8x1xf32> to vector<8x64xf32>
    %145 = arith.subf %137, %144 : vector<8x64xf32>
    %146 = arith.mulf %145, %145 : vector<8x64xf32>
    %cst_59 = arith.constant dense<0.000000e+00> : vector<8xf32>
    %147 = vector.multi_reduction <add>, %146, %cst_59 [1] : vector<8x64xf32> to vector<8xf32>
    %148 = vector.shape_cast %147 : vector<8xf32> to vector<8x1xf32>
    %cst_60 = arith.constant 6.400000e+01 : f32
    %149 = vector.broadcast %cst_60 : f32 to vector<8x1xf32>
    %150 = arith.divf %148, %149 : vector<8x1xf32>
    %cst_61 = arith.constant 9.99999974E-6 : f32
    %151 = vector.broadcast %cst_61 : f32 to vector<8x1xf32>
    %152 = arith.addf %150, %151 : vector<8x1xf32>
    %153 = math.rsqrt %152 : vector<8x1xf32>
    %154 = vector.broadcast %153 : vector<8x1xf32> to vector<8x64xf32>
    %155 = arith.mulf %145, %154 : vector<8x64xf32>
    %156 = vector.broadcast %138 : vector<1x64xf32> to vector<8x64xf32>
    %157 = arith.mulf %155, %156 : vector<8x64xf32>
    %158 = vector.broadcast %139 : vector<1x64xf32> to vector<8x64xf32>
    %159 = arith.addf %157, %158 : vector<8x64xf32>
    %c1 = arith.constant 1 : index
    %c0_62 = arith.constant 0 : index
    %c0_63 = arith.constant 0 : index
    %160 = vector.load %arg10[%c1, %c0_62, %c0_63] : memref<2x6x64xf32, #tpu.memory_space<vmem>>, vector<1x6x64xf32>
    %161 = vector.shape_cast %160 : vector<1x6x64xf32> to vector<6x64xf32>
    %c1_64 = arith.constant 1 : index
    %c0_65 = arith.constant 0 : index
    %c0_66 = arith.constant 0 : index
    %162 = vector.load %arg5[%c1_64, %c0_65, %c0_66] : memref<2x1x192xf32, #tpu.memory_space<vmem>>, vector<1x1x192xf32>
    %163 = vector.shape_cast %162 : vector<1x1x192xf32> to vector<1x192xf32>
    %c1_67 = arith.constant 1 : index
    %c0_68 = arith.constant 0 : index
    %c0_69 = arith.constant 0 : index
    %164 = vector.load %arg4[%c1_67, %c0_68, %c0_69] : memref<2x64x192xf32, #tpu.memory_space<vmem>>, vector<1x64x192xf32>
    %165 = vector.shape_cast %164 : vector<1x64x192xf32> to vector<64x192xf32>
    %166 = vector.extract_strided_slice %165 {offsets = [0, 0], sizes = [64, 128], strides = [1, 1]} : vector<64x192xf32> to vector<64x128xf32>
    %cst_70 = arith.constant dense<0.000000e+00> : vector<8x128xf32>
    %167 = tpu.matmul %159, %166, %cst_70 {dimension_numbers = #tpu.dot_dimension_numbers<[1], [0], [0], [1], [0, 0, 1, 1], [], []>} : vector<8x64xf32>, vector<64x128xf32>, vector<8x128xf32> -> vector<8x128xf32>
    %168 = vector.extract_strided_slice %163 {offsets = [0, 0], sizes = [1, 128], strides = [1, 1]} : vector<1x192xf32> to vector<1x128xf32>
    %169 = vector.broadcast %168 : vector<1x128xf32> to vector<8x128xf32>
    %170 = arith.addf %167, %169 : vector<8x128xf32>
    %171 = vector.extract_strided_slice %170 {offsets = [0, 0], sizes = [8, 64], strides = [1, 1]} : vector<8x128xf32> to vector<8x64xf32>
    %172 = vector.shape_cast %171 : vector<8x64xf32> to vector<1x8x64xf32>
    %173 = vector.extract_strided_slice %170 {offsets = [0, 64], sizes = [8, 64], strides = [1, 1]} : vector<8x128xf32> to vector<8x64xf32>
    %174 = vector.shape_cast %173 : vector<8x64xf32> to vector<1x8x64xf32>
    %175 = vector.shape_cast %159 : vector<8x64xf32> to vector<1x8x64xf32>
    %176 = vector.extract_strided_slice %175 {offsets = [0, 0, 0], sizes = [1, 1, 64], strides = [1, 1, 1]} : vector<1x8x64xf32> to vector<1x1x64xf32>
    %177 = vector.shape_cast %176 : vector<1x1x64xf32> to vector<1x64xf32>
    %c1_71 = arith.constant 1 : index
    %c0_72 = arith.constant 0 : index
    %c0_73 = arith.constant 0 : index
    %178 = vector.load %arg4[%c1_71, %c0_72, %c0_73] : memref<2x64x192xf32, #tpu.memory_space<vmem>>, vector<1x64x192xf32>
    %179 = vector.shape_cast %178 : vector<1x64x192xf32> to vector<64x192xf32>
    %180 = vector.extract_strided_slice %179 {offsets = [0, 128], sizes = [64, 64], strides = [1, 1]} : vector<64x192xf32> to vector<64x64xf32>
    %cst_74 = arith.constant dense<0.000000e+00> : vector<1x64xf32>
    %181 = tpu.matmul %177, %180, %cst_74 {dimension_numbers = #tpu.dot_dimension_numbers<[1], [0], [0], [1], [0, 0, 1, 1], [], []>} : vector<1x64xf32>, vector<64x64xf32>, vector<1x64xf32> -> vector<1x64xf32>
    %182 = vector.extract_strided_slice %163 {offsets = [0, 128], sizes = [1, 64], strides = [1, 1]} : vector<1x192xf32> to vector<1x64xf32>
    %183 = arith.addf %181, %182 : vector<1x64xf32>
    %184 = vector.shape_cast %183 : vector<1x64xf32> to vector<1x1x64xf32>
    %185 = vector.extract_strided_slice %184 {offsets = [0, 0, 0], sizes = [1, 1, 16], strides = [1, 1, 1]} : vector<1x1x64xf32> to vector<1x1x16xf32>
    %186 = vector.extract_strided_slice %172 {offsets = [0, 0, 0], sizes = [1, 8, 16], strides = [1, 1, 1]} : vector<1x8x64xf32> to vector<1x8x16xf32>
    "tpu.trace_start"() <{level = 10 : i32, message = "bqd,bkd->bqk"}> : () -> ()
    %cst_75 = arith.constant dense<0.000000e+00> : vector<1x1x8xf32>
    %187 = tpu.matmul %185, %186, %cst_75 {dimension_numbers = #tpu.dot_dimension_numbers<[2], [2], [1], [1], [0, 0, 0, 1, 1, 1], [0], [0]>} : vector<1x1x16xf32>, vector<1x8x16xf32>, vector<1x1x8xf32> -> vector<1x1x8xf32>
    "tpu.trace_stop"() : () -> ()
    %cst_76 = arith.constant 2.500000e-01 : f32
    %188 = vector.broadcast %cst_76 : f32 to vector<1x1x8xf32>
    %189 = arith.mulf %187, %188 : vector<1x1x8xf32>
    %cst_77 = arith.constant dense<0xFF800000> : vector<1x1xf32>
    %190 = vector.multi_reduction <maximumf>, %189, %cst_77 [2] : vector<1x1x8xf32> to vector<1x1xf32>
    %191 = vector.shape_cast %190 : vector<1x1xf32> to vector<1x1x1xf32>
    %192 = vector.broadcast %191 : vector<1x1x1xf32> to vector<1x1x8xf32>
    %193 = arith.subf %189, %192 : vector<1x1x8xf32>
    %194 = math.exp %193 : vector<1x1x8xf32>
    %cst_78 = arith.constant dense<0.000000e+00> : vector<1x1xf32>
    %195 = vector.multi_reduction <add>, %194, %cst_78 [2] : vector<1x1x8xf32> to vector<1x1xf32>
    %196 = vector.shape_cast %195 : vector<1x1xf32> to vector<1x1x1xf32>
    %197 = vector.broadcast %196 : vector<1x1x1xf32> to vector<1x1x8xf32>
    %198 = arith.divf %194, %197 : vector<1x1x8xf32>
    %199 = vector.extract_strided_slice %174 {offsets = [0, 0, 0], sizes = [1, 8, 16], strides = [1, 1, 1]} : vector<1x8x64xf32> to vector<1x8x16xf32>
    "tpu.trace_start"() <{level = 10 : i32, message = "bqk,bkd->bqd"}> : () -> ()
    %cst_79 = arith.constant dense<0.000000e+00> : vector<1x1x16xf32>
    %200 = tpu.matmul %198, %199, %cst_79 {dimension_numbers = #tpu.dot_dimension_numbers<[2], [1], [1], [2], [0, 0, 0, 1, 1, 2], [0], [0]>} : vector<1x1x8xf32>, vector<1x8x16xf32>, vector<1x1x16xf32> -> vector<1x1x16xf32>
    "tpu.trace_stop"() : () -> ()
    %201 = vector.extract_strided_slice %184 {offsets = [0, 0, 16], sizes = [1, 1, 16], strides = [1, 1, 1]} : vector<1x1x64xf32> to vector<1x1x16xf32>
    %202 = vector.extract_strided_slice %172 {offsets = [0, 0, 16], sizes = [1, 8, 16], strides = [1, 1, 1]} : vector<1x8x64xf32> to vector<1x8x16xf32>
    "tpu.trace_start"() <{level = 10 : i32, message = "bqd,bkd->bqk"}> : () -> ()
    %cst_80 = arith.constant dense<0.000000e+00> : vector<1x1x8xf32>
    %203 = tpu.matmul %201, %202, %cst_80 {dimension_numbers = #tpu.dot_dimension_numbers<[2], [2], [1], [1], [0, 0, 0, 1, 1, 1], [0], [0]>} : vector<1x1x16xf32>, vector<1x8x16xf32>, vector<1x1x8xf32> -> vector<1x1x8xf32>
    "tpu.trace_stop"() : () -> ()
    %cst_81 = arith.constant 2.500000e-01 : f32
    %204 = vector.broadcast %cst_81 : f32 to vector<1x1x8xf32>
    %205 = arith.mulf %203, %204 : vector<1x1x8xf32>
    %cst_82 = arith.constant dense<0xFF800000> : vector<1x1xf32>
    %206 = vector.multi_reduction <maximumf>, %205, %cst_82 [2] : vector<1x1x8xf32> to vector<1x1xf32>
    %207 = vector.shape_cast %206 : vector<1x1xf32> to vector<1x1x1xf32>
    %208 = vector.broadcast %207 : vector<1x1x1xf32> to vector<1x1x8xf32>
    %209 = arith.subf %205, %208 : vector<1x1x8xf32>
    %210 = math.exp %209 : vector<1x1x8xf32>
    %cst_83 = arith.constant dense<0.000000e+00> : vector<1x1xf32>
    %211 = vector.multi_reduction <add>, %210, %cst_83 [2] : vector<1x1x8xf32> to vector<1x1xf32>
    %212 = vector.shape_cast %211 : vector<1x1xf32> to vector<1x1x1xf32>
    %213 = vector.broadcast %212 : vector<1x1x1xf32> to vector<1x1x8xf32>
    %214 = arith.divf %210, %213 : vector<1x1x8xf32>
    %215 = vector.extract_strided_slice %174 {offsets = [0, 0, 16], sizes = [1, 8, 16], strides = [1, 1, 1]} : vector<1x8x64xf32> to vector<1x8x16xf32>
    "tpu.trace_start"() <{level = 10 : i32, message = "bqk,bkd->bqd"}> : () -> ()
    %cst_84 = arith.constant dense<0.000000e+00> : vector<1x1x16xf32>
    %216 = tpu.matmul %214, %215, %cst_84 {dimension_numbers = #tpu.dot_dimension_numbers<[2], [1], [1], [2], [0, 0, 0, 1, 1, 2], [0], [0]>} : vector<1x1x8xf32>, vector<1x8x16xf32>, vector<1x1x16xf32> -> vector<1x1x16xf32>
    "tpu.trace_stop"() : () -> ()
    %217 = vector.extract_strided_slice %184 {offsets = [0, 0, 32], sizes = [1, 1, 16], strides = [1, 1, 1]} : vector<1x1x64xf32> to vector<1x1x16xf32>
    %218 = vector.extract_strided_slice %172 {offsets = [0, 0, 32], sizes = [1, 8, 16], strides = [1, 1, 1]} : vector<1x8x64xf32> to vector<1x8x16xf32>
    "tpu.trace_start"() <{level = 10 : i32, message = "bqd,bkd->bqk"}> : () -> ()
    %cst_85 = arith.constant dense<0.000000e+00> : vector<1x1x8xf32>
    %219 = tpu.matmul %217, %218, %cst_85 {dimension_numbers = #tpu.dot_dimension_numbers<[2], [2], [1], [1], [0, 0, 0, 1, 1, 1], [0], [0]>} : vector<1x1x16xf32>, vector<1x8x16xf32>, vector<1x1x8xf32> -> vector<1x1x8xf32>
    "tpu.trace_stop"() : () -> ()
    %cst_86 = arith.constant 2.500000e-01 : f32
    %220 = vector.broadcast %cst_86 : f32 to vector<1x1x8xf32>
    %221 = arith.mulf %219, %220 : vector<1x1x8xf32>
    %cst_87 = arith.constant dense<0xFF800000> : vector<1x1xf32>
    %222 = vector.multi_reduction <maximumf>, %221, %cst_87 [2] : vector<1x1x8xf32> to vector<1x1xf32>
    %223 = vector.shape_cast %222 : vector<1x1xf32> to vector<1x1x1xf32>
    %224 = vector.broadcast %223 : vector<1x1x1xf32> to vector<1x1x8xf32>
    %225 = arith.subf %221, %224 : vector<1x1x8xf32>
    %226 = math.exp %225 : vector<1x1x8xf32>
    %cst_88 = arith.constant dense<0.000000e+00> : vector<1x1xf32>
    %227 = vector.multi_reduction <add>, %226, %cst_88 [2] : vector<1x1x8xf32> to vector<1x1xf32>
    %228 = vector.shape_cast %227 : vector<1x1xf32> to vector<1x1x1xf32>
    %229 = vector.broadcast %228 : vector<1x1x1xf32> to vector<1x1x8xf32>
    %230 = arith.divf %226, %229 : vector<1x1x8xf32>
    %231 = vector.extract_strided_slice %174 {offsets = [0, 0, 32], sizes = [1, 8, 16], strides = [1, 1, 1]} : vector<1x8x64xf32> to vector<1x8x16xf32>
    "tpu.trace_start"() <{level = 10 : i32, message = "bqk,bkd->bqd"}> : () -> ()
    %cst_89 = arith.constant dense<0.000000e+00> : vector<1x1x16xf32>
    %232 = tpu.matmul %230, %231, %cst_89 {dimension_numbers = #tpu.dot_dimension_numbers<[2], [1], [1], [2], [0, 0, 0, 1, 1, 2], [0], [0]>} : vector<1x1x8xf32>, vector<1x8x16xf32>, vector<1x1x16xf32> -> vector<1x1x16xf32>
    "tpu.trace_stop"() : () -> ()
    %233 = vector.extract_strided_slice %184 {offsets = [0, 0, 48], sizes = [1, 1, 16], strides = [1, 1, 1]} : vector<1x1x64xf32> to vector<1x1x16xf32>
    %234 = vector.extract_strided_slice %172 {offsets = [0, 0, 48], sizes = [1, 8, 16], strides = [1, 1, 1]} : vector<1x8x64xf32> to vector<1x8x16xf32>
    "tpu.trace_start"() <{level = 10 : i32, message = "bqd,bkd->bqk"}> : () -> ()
    %cst_90 = arith.constant dense<0.000000e+00> : vector<1x1x8xf32>
    %235 = tpu.matmul %233, %234, %cst_90 {dimension_numbers = #tpu.dot_dimension_numbers<[2], [2], [1], [1], [0, 0, 0, 1, 1, 1], [0], [0]>} : vector<1x1x16xf32>, vector<1x8x16xf32>, vector<1x1x8xf32> -> vector<1x1x8xf32>
    "tpu.trace_stop"() : () -> ()
    %cst_91 = arith.constant 2.500000e-01 : f32
    %236 = vector.broadcast %cst_91 : f32 to vector<1x1x8xf32>
    %237 = arith.mulf %235, %236 : vector<1x1x8xf32>
    %cst_92 = arith.constant dense<0xFF800000> : vector<1x1xf32>
    %238 = vector.multi_reduction <maximumf>, %237, %cst_92 [2] : vector<1x1x8xf32> to vector<1x1xf32>
    %239 = vector.shape_cast %238 : vector<1x1xf32> to vector<1x1x1xf32>
    %240 = vector.broadcast %239 : vector<1x1x1xf32> to vector<1x1x8xf32>
    %241 = arith.subf %237, %240 : vector<1x1x8xf32>
    %242 = math.exp %241 : vector<1x1x8xf32>
    %cst_93 = arith.constant dense<0.000000e+00> : vector<1x1xf32>
    %243 = vector.multi_reduction <add>, %242, %cst_93 [2] : vector<1x1x8xf32> to vector<1x1xf32>
    %244 = vector.shape_cast %243 : vector<1x1xf32> to vector<1x1x1xf32>
    %245 = vector.broadcast %244 : vector<1x1x1xf32> to vector<1x1x8xf32>
    %246 = arith.divf %242, %245 : vector<1x1x8xf32>
    %247 = vector.extract_strided_slice %174 {offsets = [0, 0, 48], sizes = [1, 8, 16], strides = [1, 1, 1]} : vector<1x8x64xf32> to vector<1x8x16xf32>
    "tpu.trace_start"() <{level = 10 : i32, message = "bqk,bkd->bqd"}> : () -> ()
    %cst_94 = arith.constant dense<0.000000e+00> : vector<1x1x16xf32>
    %248 = tpu.matmul %246, %247, %cst_94 {dimension_numbers = #tpu.dot_dimension_numbers<[2], [1], [1], [2], [0, 0, 0, 1, 1, 2], [0], [0]>} : vector<1x1x8xf32>, vector<1x8x16xf32>, vector<1x1x16xf32> -> vector<1x1x16xf32>
    "tpu.trace_stop"() : () -> ()
    %249 = tpu.concatenate %200, %216, %232, %248 in 2 : vector<1x1x16xf32>, vector<1x1x16xf32>, vector<1x1x16xf32>, vector<1x1x16xf32> -> vector<1x1x64xf32>
    %250 = vector.shape_cast %249 : vector<1x1x64xf32> to vector<1x64xf32>
    %c1_95 = arith.constant 1 : index
    %c0_96 = arith.constant 0 : index
    %c0_97 = arith.constant 0 : index
    %251 = vector.load %arg6[%c1_95, %c0_96, %c0_97] : memref<2x64x64xf32, #tpu.memory_space<vmem>>, vector<1x64x64xf32>
    %252 = vector.shape_cast %251 : vector<1x64x64xf32> to vector<64x64xf32>
    %cst_98 = arith.constant dense<0.000000e+00> : vector<1x64xf32>
    %253 = tpu.matmul %250, %252, %cst_98 {dimension_numbers = #tpu.dot_dimension_numbers<[1], [0], [0], [1], [0, 0, 1, 1], [], []>} : vector<1x64xf32>, vector<64x64xf32>, vector<1x64xf32> -> vector<1x64xf32>
    %254 = vector.extract_strided_slice %161 {offsets = [0, 0], sizes = [1, 64], strides = [1, 1]} : vector<6x64xf32> to vector<1x64xf32>
    %255 = arith.addf %253, %254 : vector<1x64xf32>
    %256 = arith.addf %177, %255 : vector<1x64xf32>
    %257 = vector.extract_strided_slice %161 {offsets = [1, 0], sizes = [1, 64], strides = [1, 1]} : vector<6x64xf32> to vector<1x64xf32>
    %258 = vector.extract_strided_slice %161 {offsets = [2, 0], sizes = [1, 64], strides = [1, 1]} : vector<6x64xf32> to vector<1x64xf32>
    %cst_99 = arith.constant dense<0.000000e+00> : vector<1xf32>
    %259 = vector.multi_reduction <add>, %256, %cst_99 [1] : vector<1x64xf32> to vector<1xf32>
    %260 = vector.shape_cast %259 : vector<1xf32> to vector<1x1xf32>
    %cst_100 = arith.constant 6.400000e+01 : f32
    %261 = vector.broadcast %cst_100 : f32 to vector<1x1xf32>
    %262 = arith.divf %260, %261 : vector<1x1xf32>
    %263 = vector.broadcast %262 : vector<1x1xf32> to vector<1x64xf32>
    %264 = arith.subf %256, %263 : vector<1x64xf32>
    %265 = arith.mulf %264, %264 : vector<1x64xf32>
    %cst_101 = arith.constant dense<0.000000e+00> : vector<1xf32>
    %266 = vector.multi_reduction <add>, %265, %cst_101 [1] : vector<1x64xf32> to vector<1xf32>
    %267 = vector.shape_cast %266 : vector<1xf32> to vector<1x1xf32>
    %cst_102 = arith.constant 6.400000e+01 : f32
    %268 = vector.broadcast %cst_102 : f32 to vector<1x1xf32>
    %269 = arith.divf %267, %268 : vector<1x1xf32>
    %cst_103 = arith.constant 9.99999974E-6 : f32
    %270 = vector.broadcast %cst_103 : f32 to vector<1x1xf32>
    %271 = arith.addf %269, %270 : vector<1x1xf32>
    %272 = math.rsqrt %271 : vector<1x1xf32>
    %273 = vector.broadcast %272 : vector<1x1xf32> to vector<1x64xf32>
    %274 = arith.mulf %264, %273 : vector<1x64xf32>
    %275 = arith.mulf %274, %257 : vector<1x64xf32>
    %276 = arith.addf %275, %258 : vector<1x64xf32>
    %277 = arith.truncf %276 : vector<1x64xf32> to vector<1x64xbf16>
    %c1_104 = arith.constant 1 : index
    %c0_105 = arith.constant 0 : index
    %c0_106 = arith.constant 0 : index
    %278 = vector.load %arg7[%c1_104, %c0_105, %c0_106] : memref<2x64x2048xbf16, #tpu.memory_space<vmem>>, vector<1x64x2048xbf16>
    %279 = vector.shape_cast %278 : vector<1x64x2048xbf16> to vector<64x2048xbf16>
    %cst_107 = arith.constant dense<0.000000e+00> : vector<1x2048xf32>
    %280 = tpu.matmul %277, %279, %cst_107 {dimension_numbers = #tpu.dot_dimension_numbers<[1], [0], [0], [1], [0, 0, 1, 1], [], []>} : vector<1x64xbf16>, vector<64x2048xbf16>, vector<1x2048xf32> -> vector<1x2048xf32>
    %c1_108 = arith.constant 1 : index
    %c0_109 = arith.constant 0 : index
    %c0_110 = arith.constant 0 : index
    %281 = vector.load %arg8[%c1_108, %c0_109, %c0_110] : memref<2x1x2048xf32, #tpu.memory_space<vmem>>, vector<1x1x2048xf32>
    %282 = vector.shape_cast %281 : vector<1x1x2048xf32> to vector<1x2048xf32>
    %283 = arith.addf %280, %282 : vector<1x2048xf32>
    %cst_111 = arith.constant 0.000000e+00 : f32
    %284 = vector.broadcast %cst_111 : f32 to vector<1x2048xf32>
    %285 = arith.maximumf %283, %284 : vector<1x2048xf32>
    %286 = arith.truncf %285 : vector<1x2048xf32> to vector<1x2048xbf16>
    %c1_112 = arith.constant 1 : index
    %c0_113 = arith.constant 0 : index
    %c0_114 = arith.constant 0 : index
    %287 = vector.load %arg9[%c1_112, %c0_113, %c0_114] : memref<2x2048x64xbf16, #tpu.memory_space<vmem>>, vector<1x2048x64xbf16>
    %288 = vector.shape_cast %287 : vector<1x2048x64xbf16> to vector<2048x64xbf16>
    %cst_115 = arith.constant dense<0.000000e+00> : vector<1x64xf32>
    %289 = tpu.matmul %286, %288, %cst_115 {dimension_numbers = #tpu.dot_dimension_numbers<[1], [0], [0], [1], [0, 0, 1, 1], [], []>} : vector<1x2048xbf16>, vector<2048x64xbf16>, vector<1x64xf32> -> vector<1x64xf32>
    %290 = vector.extract_strided_slice %161 {offsets = [3, 0], sizes = [1, 64], strides = [1, 1]} : vector<6x64xf32> to vector<1x64xf32>
    %291 = arith.addf %289, %290 : vector<1x64xf32>
    %292 = arith.addf %276, %291 : vector<1x64xf32>
    %293 = vector.extract_strided_slice %161 {offsets = [4, 0], sizes = [1, 64], strides = [1, 1]} : vector<6x64xf32> to vector<1x64xf32>
    %294 = vector.extract_strided_slice %161 {offsets = [5, 0], sizes = [1, 64], strides = [1, 1]} : vector<6x64xf32> to vector<1x64xf32>
    %cst_116 = arith.constant dense<0.000000e+00> : vector<1xf32>
    %295 = vector.multi_reduction <add>, %292, %cst_116 [1] : vector<1x64xf32> to vector<1xf32>
    %296 = vector.shape_cast %295 : vector<1xf32> to vector<1x1xf32>
    %cst_117 = arith.constant 6.400000e+01 : f32
    %297 = vector.broadcast %cst_117 : f32 to vector<1x1xf32>
    %298 = arith.divf %296, %297 : vector<1x1xf32>
    %299 = vector.broadcast %298 : vector<1x1xf32> to vector<1x64xf32>
    %300 = arith.subf %292, %299 : vector<1x64xf32>
    %301 = arith.mulf %300, %300 : vector<1x64xf32>
    %cst_118 = arith.constant dense<0.000000e+00> : vector<1xf32>
    %302 = vector.multi_reduction <add>, %301, %cst_118 [1] : vector<1x64xf32> to vector<1xf32>
    %303 = vector.shape_cast %302 : vector<1xf32> to vector<1x1xf32>
    %cst_119 = arith.constant 6.400000e+01 : f32
    %304 = vector.broadcast %cst_119 : f32 to vector<1x1xf32>
    %305 = arith.divf %303, %304 : vector<1x1xf32>
    %cst_120 = arith.constant 9.99999974E-6 : f32
    %306 = vector.broadcast %cst_120 : f32 to vector<1x1xf32>
    %307 = arith.addf %305, %306 : vector<1x1xf32>
    %308 = math.rsqrt %307 : vector<1x1xf32>
    %309 = vector.broadcast %308 : vector<1x1xf32> to vector<1x64xf32>
    %310 = arith.mulf %300, %309 : vector<1x64xf32>
    %311 = arith.mulf %310, %293 : vector<1x64xf32>
    %312 = arith.addf %311, %294 : vector<1x64xf32>
    %c0_121 = arith.constant 0 : index
    %c0_122 = arith.constant 0 : index
    %313 = vector.load %arg11[%c0_121, %c0_122] : memref<64x4xf32, #tpu.memory_space<vmem>>, vector<64x4xf32>
    %cst_123 = arith.constant dense<0.000000e+00> : vector<1x4xf32>
    %314 = tpu.matmul %312, %313, %cst_123 {dimension_numbers = #tpu.dot_dimension_numbers<[1], [0], [0], [1], [0, 0, 1, 1], [], []>} : vector<1x64xf32>, vector<64x4xf32>, vector<1x4xf32> -> vector<1x4xf32>
    %c0_124 = arith.constant 0 : index
    %c0_125 = arith.constant 0 : index
    %315 = vector.load %arg12[%c0_124, %c0_125] : memref<1x4xf32, #tpu.memory_space<vmem>>, vector<1x4xf32>
    %316 = arith.addf %314, %315 : vector<1x4xf32>
    %317 = vector.shape_cast %316 : vector<1x4xf32> to vector<1x1x4xf32>
    %c0_126 = arith.constant 0 : index
    %c0_127 = arith.constant 0 : index
    %c0_128 = arith.constant 0 : index
    %318 = vector.load %arg13[%c0_126, %c0_127, %c0_128] : memref<1x1x4xf32, #tpu.memory_space<vmem>>, vector<1x1x4xf32>
    tpu.vector_store %arg13[%c0_126, %c0_127, %c0_128], %317 {strides = array<i32>} : memref<1x1x4xf32, #tpu.memory_space<vmem>>, vector<1x1x4xf32>,
    return
  }
  func.func @transform_0(%arg0: i32) -> (i32, i32, i32) {
    %c0_i32 = arith.constant 0 : i32
    %c0_i32_0 = arith.constant 0 : i32
    %c0_i32_1 = arith.constant 0 : i32
    return %arg0, %c0_i32, %c0_i32_0 : i32, i32, i32
  }
  func.func @transform_1(%arg0: i32) -> (i32, i32) {
    %c0_i32 = arith.constant 0 : i32
    %c0_i32_0 = arith.constant 0 : i32
    %c0_i32_1 = arith.constant 0 : i32
    return %c0_i32, %c0_i32_0 : i32, i32
  }
  func.func @transform_2(%arg0: i32) -> (i32, i32) {
    %c0_i32 = arith.constant 0 : i32
    %c0_i32_0 = arith.constant 0 : i32
    %c0_i32_1 = arith.constant 0 : i32
    return %c0_i32, %c0_i32_0 : i32, i32
  }
  func.func @transform_3(%arg0: i32) -> (i32, i32, i32) {
    %c0_i32 = arith.constant 0 : i32
    %c0_i32_0 = arith.constant 0 : i32
    %c0_i32_1 = arith.constant 0 : i32
    %c0_i32_2 = arith.constant 0 : i32
    return %c0_i32, %c0_i32_0, %c0_i32_1 : i32, i32, i32
  }
  func.func @transform_4(%arg0: i32) -> (i32, i32, i32) {
    %c0_i32 = arith.constant 0 : i32
    %c0_i32_0 = arith.constant 0 : i32
    %c0_i32_1 = arith.constant 0 : i32
    %c0_i32_2 = arith.constant 0 : i32
    return %c0_i32, %c0_i32_0, %c0_i32_1 : i32, i32, i32
  }
  func.func @transform_5(%arg0: i32) -> (i32, i32, i32) {
    %c0_i32 = arith.constant 0 : i32
    %c0_i32_0 = arith.constant 0 : i32
    %c0_i32_1 = arith.constant 0 : i32
    %c0_i32_2 = arith.constant 0 : i32
    return %c0_i32, %c0_i32_0, %c0_i32_1 : i32, i32, i32
  }
  func.func @transform_6(%arg0: i32) -> (i32, i32, i32) {
    %c0_i32 = arith.constant 0 : i32
    %c0_i32_0 = arith.constant 0 : i32
    %c0_i32_1 = arith.constant 0 : i32
    %c0_i32_2 = arith.constant 0 : i32
    return %c0_i32, %c0_i32_0, %c0_i32_1 : i32, i32, i32
  }
  func.func @transform_7(%arg0: i32) -> (i32, i32, i32) {
    %c0_i32 = arith.constant 0 : i32
    %c0_i32_0 = arith.constant 0 : i32
    %c0_i32_1 = arith.constant 0 : i32
    %c0_i32_2 = arith.constant 0 : i32
    return %c0_i32, %c0_i32_0, %c0_i32_1 : i32, i32, i32
  }
  func.func @transform_8(%arg0: i32) -> (i32, i32, i32) {
    %c0_i32 = arith.constant 0 : i32
    %c0_i32_0 = arith.constant 0 : i32
    %c0_i32_1 = arith.constant 0 : i32
    %c0_i32_2 = arith.constant 0 : i32
    return %c0_i32, %c0_i32_0, %c0_i32_1 : i32, i32, i32
  }
  func.func @transform_9(%arg0: i32) -> (i32, i32, i32) {
    %c0_i32 = arith.constant 0 : i32
    %c0_i32_0 = arith.constant 0 : i32
    %c0_i32_1 = arith.constant 0 : i32
    %c0_i32_2 = arith.constant 0 : i32
    return %c0_i32, %c0_i32_0, %c0_i32_1 : i32, i32, i32
  }
  func.func @transform_10(%arg0: i32) -> (i32, i32) {
    %c0_i32 = arith.constant 0 : i32
    %c0_i32_0 = arith.constant 0 : i32
    %c0_i32_1 = arith.constant 0 : i32
    return %c0_i32, %c0_i32_0 : i32, i32
  }
  func.func @transform_11(%arg0: i32) -> (i32, i32) {
    %c0_i32 = arith.constant 0 : i32
    %c0_i32_0 = arith.constant 0 : i32
    %c0_i32_1 = arith.constant 0 : i32
    return %c0_i32, %c0_i32_0 : i32, i32
  }
  func.func @transform_12(%arg0: i32) -> (i32, i32, i32) {
    %c0_i32 = arith.constant 0 : i32
    %c0_i32_0 = arith.constant 0 : i32
    %c0_i32_1 = arith.constant 0 : i32
    return %arg0, %c0_i32, %c0_i32_0 : i32, i32, i32
  }
}

</mosaic_0001>

<bundles_post_ra>
// kernel: tpu_custom_call.1
= control target key start
LH: loop header
LB: loop body
LE: loop exit
PB: predicated region body
PF: predicated region fallthrough
CT: control target
= control target key end

     0   :  { %s10802_s0 = inlined_call_operand.vmem [shape: f32[2,8,42], index: 0, kind: input, shape index: {}]   ;;  %s10803_s1 = inlined_call_operand.vmem [shape: f32[8,64], index: 1, kind: input, shape index: {}]   ;;  %s10804_s2 = inlined_call_operand.vmem [shape: f32[42,64], index: 2, kind: input, shape index: {}]   ;;  %s10805_s3 = inlined_call_operand.vmem [shape: f32[2,64,192], index: 3, kind: input, shape index: {}]   ;;  %s10806_s4 = inlined_call_operand.vmem [shape: f32[2,1,192], index: 4, kind: input, shape index: {}]   ;;  %s10807_s5 = inlined_call_operand.vmem [shape: f32[2,64,64], index: 5, kind: input, shape index: {}]   ;;  %s10808_s6 = inlined_call_operand.vmem [shape: bf16[2,64,2048], index: 6, kind: input, shape index: {}]   ;;  %s10809_s7 = inlined_call_operand.vmem [shape: f32[2,1,2048], index: 7, kind: input, shape index: {}]   ;;  %s10810_s8 = inlined_call_operand.vmem [shape: bf16[2,2048,64], index: 8, kind: input, shape index: {}]   ;;  %s10811_s9 = inlined_call_operand.vmem [shape: f32[2,6,64], index: 9, kind: input, shape index: {}]   ;;  %s10812_s10 = inlined_call_operand.vmem [shape: f32[64,4], index: 10, kind: input, shape index: {}]   ;;  %s10813_s11 = inlined_call_operand.vmem [shape: f32[1,4], index: 11, kind: input, shape index: {}]   ;;  %s10814_s12 = inlined_call_operand.hbm [shape: f32[2,1,4], index: 12, kind: output, shape index: {}]  }
   0x1   :  { %10826 = sst [smem:[#allocation6_spill]] %s10804_s2 }
   0x2   :  { %17 = vsyncpa [#allocation3], 0 }
   0x3   :  { %19 = vsyncpa [#allocation3 + $0x1], 0  ;;  %s8895_s21 = smov 0   ;;  %s8897_s22 = smov 0  }
   0x4   :  { %s8899_s23 = smov 0   ;;  %s8901_s24 = smov 0  }
   0x5 LB: > { %s8916_s25 = sadd.s32 4294967295, %s8815_s24   ;;  %s6904_s26 = sadd.s32 4294967294, %s8815_s24   ;;  %s8815_s24 = sphi %s8901_s24, %s10843_s24   ;;  %s8811_s23 = sphi %s8899_s23, %s10842_s23   ;;  %s8807_s22 = sphi %s8897_s22, %s10841_s22   ;;  %s8803_s21 = sphi %s8895_s21, %s10840_s21  }
   0x6   : > { %s8920_s27 = sadd.s32 1, %s8815_s24   ;;  %s289_s28 = sadd.s32 1, %s8811_s23 }
   0x7   : > { %s286_s29 = ssub.s32 %s8815_s24, %s8920_s27  ;;  %p299_p0 = scmp.ne.s32.totalorder %s8811_s23, %s8807_s22 }
   0x8   : > { %p287_p1 = scmp.eq.s32.totalorder %s286_s29, 0  ;;  %p300_p2 = scmp.eq.s32.totalorder %s8916_s25, 1 }
   0x9   : > { %p305_p3 = scmp.ne.s32.totalorder %s8807_s22, %s8803_s21  ;;  %p306_p4 = scmp.eq.s32.totalorder %s6904_s26, 1 }
   0xa   : > { %s8931_s30 = scalar_select %p287_p1, %s8811_s23, %s289_s28  }
   0xb   : > { %p8933_p5 = por %p300_p2, %p299_p0  ;;  %p8937_p6 = por %p306_p4, %p305_p3 }
   0xc   : > { %10827 = sst [smem:[#allocation5_spill]] %s8931_s30  ;;  %p6907_p7 = scmp.ge.s32.totalorder %s8815_s24, 1 }
   0xd   : > { %p364_p8 = scmp.lt.s32.totalorder %s8815_s24, 3 }
   0xf   : > { %p365_p9 = pnand %p6907_p7, %p364_p8 }
  0x10   : > { %s10830_s2 = sld [smem:[#allocation6_spill]] (!%p365_p9)  ;;  %v8817_v3 = vmov (!%p365_p9), 0.0|0.0   ;;  %vm8818_vm0 = vmmov (!%p365_p9), 0   ;;  %v8819_v8 = vmov (!%p365_p9), 0.0   ;;  %p404_p10 = scmp.lt.s32.totalorder (!%p365_p9), %s8916_s25, 1  ;;  %v498_v9 = vld [vmem:[%s10805_s3 + $0x8] sm:$0xff] (!%p365_p9)  ;;  %v514_v41 = vlaneseq (!%p365_p9) }
  0x11   : > { %368 = sbr.rel (%p365_p9) target bundleno = 6059 (0x17ab), region = 68  ;;  %8318 = vmatprep.subr.bf16.mxu0 (!%p365_p9), %v8817_v3  ;;  %8140 = vmatprep.mubr.msk.f32.mxu0 (!%p365_p9), %vm8818_vm0, %v8819_v8  ;;  %v500_v10 = vld [vmem:[%s10805_s3 + $0x18] sm:$0xff] (!%p365_p9)  ;;  %vm421_vm1 = vcmask (!%p365_p9), 1041408   ;;  %v497_v13 = vld [vmem:[%s10805_s3] sm:$0xff] (!%p365_p9)  ;;  %v499_v14 = vld [vmem:[%s10805_s3 + $0x10] sm:$0xff] (!%p365_p9)  ;;  %vm8820_vm2 = vmmov (!%p365_p9), 1  }
  0x12   : > { %592 = vmatprep.mubr.f32.mxu1 (!%p365_p9), %v8819_v8  ;;  %v8328_v12 = vpack.c.bf16 (!%p365_p9), %v500_v10, %v498_v9  ;;  %v502_v15 = vld [vmem:[%s10805_s3 + $0x28] sm:$0xff] (!%p365_p9)  ;;  %v8330_v16 = vpack.c.bf16 (!%p365_p9), %v499_v14, %v497_v13  ;;  %v504_v17 = vld [vmem:[%s10805_s3 + $0x38] sm:$0xff] (!%p365_p9)  ;;  %v501_v18 = vld [vmem:[%s10805_s3 + $0x20] sm:$0xff] (!%p365_p9)  ;;  %vm417_vm4 = vcmask (!%p365_p9), 343040   ;;  %vm524_vm5 = vcmask (!%p365_p9), 523264   ;;  %s10820_s16 = smov (!%p365_p9), 112  }
  0x13   : > { %v503_v19 = vld [vmem:[%s10805_s3 + $0x30] sm:$0xff] (!%p365_p9)  ;;  %v8332_v20 = vpack.c.bf16 (!%p365_p9), %v504_v17, %v502_v15  ;;  %v506_v21 = vld [vmem:[%s10805_s3 + $0x48] sm:$0xff] (!%p365_p9)  ;;  %v508_v22 = vld [vmem:[%s10805_s3 + $0x58] sm:$0xff] (!%p365_p9)  ;;  %v9040_v42 = vshrl.u32 (!%p365_p9), %v514_v41, 7  ;;  %vm599_vm6 = vcmask (!%p365_p9), 130048   ;;  %s10815_s18 = smov (!%p365_p9), 80  }
  0x14   : > { %8329 = vmatprep.subr.bf16.mxu1 (!%p365_p9), %v8328_v12  ;;  %vm8999_vm3 = vmpackc.low (!%p365_p9), %vm421_vm1, %vm8820_vm2  ;;  %v8334_v24 = vpack.c.bf16 (!%p365_p9), %v503_v19, %v501_v18  ;;  %v505_v25 = vld [vmem:[%s10805_s3 + $0x40] sm:$0xff] (!%p365_p9)  ;;  %v507_v26 = vld [vmem:[%s10805_s3 + $0x50] sm:$0xff] (!%p365_p9)  ;;  %v8336_v28 = vpack.c.bf16 (!%p365_p9), %v508_v22, %v506_v21  ;;  %vm677_vm7 = vcmask (!%p365_p9), 64512   ;;  %s10822_s19 = smov (!%p365_p9), 32   ;;  %s10824_s20 = smov (!%p365_p9), 16   ;;  %vm1276_vm8 = vcmask (!%p365_p9), 261120  }
  0x15   : > { %8331 = vmatpush1.bf16.msra.mxu1 (!%p365_p9), %v8330_v16  ;;  %v510_v29 = vld [vmem:[%s10805_s3 + $0x68] sm:$0xff] (!%p365_p9)  ;;  %v512_v30 = vld [vmem:[%s10805_s3 + $0x78] sm:$0xff] (!%p365_p9)  ;;  %v8338_v32 = vpack.c.bf16 (!%p365_p9), %v507_v26, %v505_v25  ;;  %v509_v34 = vld [vmem:[%s10805_s3 + $0x60] sm:$0xff] (!%p365_p9)  ;;  %v9043_v43 = vsub.s32 (!%p365_p9), 0, %v9040_v42  ;;  %v9050_v46 = vsub.s32 (!%p365_p9), 1, %v9040_v42  ;;  %s8827_s30 = smov (!%p365_p9), 48  }
  0x16   : > { %v410_v0 = vld [vmem:[%s10830_s2] sm:$0xff] (!%p365_p9)  ;;  %v411_v1 = vld [vmem:[%s10830_s2 + $0x8] sm:$0xff] (!%p365_p9)  ;;  %v412_v2 = vld [vmem:[%s10830_s2 + $0x10] sm:$0xff] (!%p365_p9)  ;;  %8333 = vmatprep.subr.bf16.mxu1 (!%p365_p9), %v8332_v20  ;;  %v8340_v33 = vpack.c.bf16 (!%p365_p9), %v512_v30, %v510_v29  ;;  %vm1278_vm9 = vcmask (!%p365_p9), 392192   ;;  %vm3846_vm10 = vcmask (!%p365_p9), 57344   ;;  %s10835_s26 = smov (!%p365_p9), 96  }
  0x17   : > { %v8319_v4 = vpack.c.bf16 (!%p365_p9), %v411_v1, %v410_v0  ;;  %v413_v5 = vld [vmem:[%s10830_s2 + $0x18] sm:$0xff] (!%p365_p9)  ;;  %v414_v6 = vld [vmem:[%s10830_s2 + $0x20] sm:$0xff] (!%p365_p9)  ;;  %v415_v7 = vld [vmem:[%s10830_s2 + $0x28] sm:$0x3] (!%p365_p9)  ;;  %s10836_s28 = smov (!%p365_p9), 80   ;;  %vm4530_vm11 = vcmask (!%p365_p9), 516096  }
  0x18   : > { %v8322_v11 = vpack.c.bf16 %v413_v5, %v412_v2  ;;  %s405_s17 = scalar_select %p404_p10, %s8916_s25, 1  ;;  %v8325_v27 = vpack.c.bf16 %v415_v7, %v414_v6  ;;  %v511_v35 = vld [vmem:[%s10805_s3 + $0x70] sm:$0xff]  ;;  %v416_v37 = vld [vmem:[%s10803_s1] sm:$0xff]  ;;  %vm6834_vm12 = vcmask 24576  }
  0x19   : > { %8320 = vmatpush3.bf16.msra.mxu0 %v8319_v4  ;;  %8335 = vmatpush1.bf16.msra.mxu1 %v8334_v24  ;;  %v8342_v36 = vpack.c.bf16 %v511_v35, %v509_v34  ;;  %v496_v44 = vld [vmem:[%s10806_s4] sm:$0x3] }
  0x1a   : > { %8321 = vmatprep.subr.bf16.mxu0 %v8817_v3  ;;  %s6908_s2 = sshll.u32 %s405_s17, 3  ;;  %8337 = vmatprep.subr.bf16.mxu1 %v8336_v28  ;;  %v517_v45 = vrot.slane %v496_v44, %v9043_v43  ;;  %v521_v49 = vrot.slane %v496_v44, %v9050_v46  ;;  %s10817_s17 = smov 96  }
  0x1b   : > { %s407_s29 = scalar_lea.vmem %s10802_s0, %s6908_s2  ;;  %s10819_s2 = smov 64  }
  0x1c   : > { %v409_v31 = vld [vmem:[%s407_s29] sm:$0xff] }
  0x1d   : > { %8323 = vmatpush3.bf16.msra.mxu0 %v8322_v11  ;;  %8339 = vmatpush1.bf16.msra.mxu1 %v8338_v32 }
  0x1e   : > { %8324 = vmatprep.subr.bf16.mxu0 %v8817_v3  ;;  %8341 = vmatprep.subr.bf16.mxu1 %v8340_v33 }
  0x21   : > { %8327 = vmatpush3.bf16.msk.msra.mxu0 %vm8999_vm3, %v8325_v27  ;;  %8343 = vmatpush1.bf16.msra.mxu1 %v8342_v36 }
  0x22   : > { %8143 = vmatprep.subr.mxu0 %v8819_v8  ;;  %8153 = vmatprep.subr.mxu1 %v8819_v8 }
  0x24   : > { %8141 = vmatmul.mubr.msk.f32.vlgmr.msra.gmra.mrb[0].mxu0 %vm417_vm4, %v409_v31 }
  0x25   : > { %8145 = vmatprep.mubr.msk.f32.mxu0 %vm8818_vm0, %v8819_v8 }
  0xf7   : > { %v491_v38 = vpop.f32.mrb[0].mxu0 }
  0xf8   : > { %v9034_v39 = vadd.f32 %v491_v38, %v416_v37  ;;  %v8142_v40 = vpop.f32.mrb[1].mxu0 }
  0xfa   : > { %6911 = vmatmul.mubr.msk.f32.vlgmr.msra.gmra.mrb[0].mxu1 %vm524_vm5, %v9034_v39 }
  0xfb   : > { %8155 = vmatprep.mubr.msk.f32.mxu1 %vm8818_vm0, %v8819_v8 }
 0x1cd   : > { %v594_v47 = vpop.f32.mrb[0].mxu1 }
 0x1ce   : > { %v9052_v48 = vadd.f32 %v594_v47, %v517_v45  ;;  %v596_v50 = vpop.f32.mrb[1].mxu1 }
 0x1cf   : > { %v597_v51 = vadd.f32 %v596_v50, %v521_v49 }
 0x1d0   : > { %933 = vrot.lane.b32.xlu1 %v9052_v48, %s10817_s17  ;;  %767 = vrot.lane.b32.xlu0 %v9052_v48, %s10820_s16 }
 0x1d1   : > { %8144 = vmatpush3.xpose.msk.msra.mxu0 %vm599_vm6, %v9052_v48 }
 0x1d2   : > { %8148 = vmatprep.subr.mxu0 %v8819_v8 }
 0x1d4   : > { %8146 = vmatmul.mubr.msk.f32.vlgmr.msra.gmra.mrb[2].mxu0 %vm599_vm6, %v597_v51  ;;  %931 = vrot.lane.b32.xlu1 %v597_v51, %s10817_s17  ;;  %s10837_s17 = smov 16  }
 0x1d5   : > { %765 = vrot.lane.b32.xlu0 %v597_v51, %s10820_s16  ;;  %8150 = vmatprep.mubr.msk.f32.mxu0 %vm8818_vm0, %v8819_v8 }
 0x1d8   : > { %1097 = vrot.lane.b32.xlu1 %v597_v51, %s10815_s18 }
 0x1d9   : > { %1099 = vrot.lane.b32.xlu0 %v9052_v48, %s10815_s18  ;;  %s10838_s18 = smov 32  }
 0x242   : > { %v768_v52 = vpop.permute.xlu0 %767  ;;  %v934_v53 = vpop.permute.xlu1 %933 }
 0x243   : > { %8154 = vmatpush3.xpose.msk.msra.mxu1 %vm599_vm6, %v768_v52  ;;  %v1280_v52 = vld [vmem:[%s10807_s5] sm:$0xff] }
 0x244   : > { %8163 = vmatprep.subr.mxu1 %v8819_v8 }
 0x246   : > { %v932_v55 = vpop.permute.xlu1 %931 }
 0x247   : > { %v766_v54 = vpop.permute.xlu0 %765 }
 0x248   : > { %8156 = vmatmul.mubr.msk.f32.vlgmr.msra.gmra.mrb[2].mxu1 %vm599_vm6, %v766_v54  ;;  %v1282_v54 = vld [vmem:[%s10807_s5 + $0x10] sm:$0xff] }
 0x249   : > { %8164 = vmatpush3.xpose.msk.msra.mxu1 %vm599_vm6, %v934_v53  ;;  %8165 = vmatprep.mubr.msk.f32.mxu1 %vm8818_vm0, %v8819_v8  ;;  %v1281_v53 = vld [vmem:[%s10807_s5 + $0x8] sm:$0xff] }
 0x24a   : > { %8173 = vmatprep.subr.mxu1 %v8819_v8  ;;  %v1098_v57 = vpop.permute.xlu1 %1097 }
 0x24b   : > { %v1100_v56 = vpop.permute.xlu0 %1099 }
 0x24c   : > { %8166 = vmatmul.mubr.msk.f32.vlgmr.msra.gmra.mrb[4].mxu1 %vm599_vm6, %v932_v55  ;;  %v8345_v55 = vpack.c.bf16 %v1281_v53, %v1280_v52 }
 0x24d   : > { %8174 = vmatpush3.xpose.msk.msra.mxu1 %vm599_vm6, %v1100_v56  ;;  %8175 = vmatprep.mubr.msk.f32.mxu1 %vm8818_vm0, %v8819_v8  ;;  %v1283_v56 = vld [vmem:[%s10807_s5 + $0x18] sm:$0xff] }
 0x24e   : > { %8344 = vmatprep.subr.bf16.mxu1 %v8817_v3 }
 0x250   : > { %8176 = vmatmul.mubr.msk.f32.vlgmr.msra.gmra.mrb[6].mxu1 %vm599_vm6, %v1098_v57  ;;  %v8348_v57 = vpack.c.bf16 %v1283_v56, %v1282_v54  ;;  %v1447_v56 = vld [vmem:[%s10808_s6 + $0x1c0] sm:$0xff] }
 0x251   : > { %8199 = vmatprep.mubr.msk.f32.mxu1 %vm8818_vm0, %v8819_v8  ;;  %8346 = vmatpush3.bf16.msra.mxu1 %v8345_v55  ;;  %v1439_v55 = vld [vmem:[%s10808_s6 + $0x180] sm:$0xff] }
 0x252   : > { %8347 = vmatprep.subr.bf16.mxu1 %v8817_v3 }
 0x255   : > { %8349 = vmatpush3.bf16.msra.mxu1 %v8348_v57  ;;  %v1440_v57 = vld [vmem:[%s10808_s6 + $0x188] sm:$0xff] }
 0x256   : > { %8350 = vmatprep.subr.bf16.mxu1 %v8817_v3 }
 0x2a7   : > { %v672_v58 = vpop.f32.mrb[2].mxu0 }
 0x2a8   : > { %v676_v59 = vmul.f32 0.25, %v672_v58  ;;  %v8147_v60 = vpop.f32.mrb[3].mxu0 }
 0x2a9   : > { %v1284_v60 = vld [vmem:[%s10807_s5 + $0x20] sm:$0xff] }
 0x2aa   : > { %v678_v61 = vsel %vm677_vm7, %v676_v59, -inf }
 0x2ab   : > { %679 = vmax.xlane.f32.xlu0 %v678_v61  ;;  %v1285_v61 = vld [vmem:[%s10807_s5 + $0x28] sm:$0xff] }
 0x31b   : > { %v839_v62 = vpop.f32.mrb[2].mxu1 }
 0x31c   : > { %v843_v63 = vmul.f32 0.25, %v839_v62  ;;  %v8157_v0 = vpop.f32.mrb[3].mxu1  ;;  %v8351_v62 = vpack.c.bf16 %v1285_v61, %v1284_v60  ;;  %v6973_v60 = vcombine.low %v1439_v55, %v1447_v56 }
 0x31d   : > { %v1287_v0 = vld [vmem:[%s10807_s5 + $0x38] sm:$0xff] }
 0x31e   : > { %v844_v1 = vsel %vm677_vm7, %v843_v63, -inf  ;;  %8352 = vmatpush3.bf16.msra.mxu1 %v8351_v62 }
 0x31f   : > { %845 = vmax.xlane.f32.xlu1 %v844_v1  ;;  %v1005_v2 = vpop.f32.mrb[4].mxu1  ;;  %8353 = vmatprep.subr.bf16.mxu1 %v8817_v3 }
 0x320   : > { %v1009_v4 = vmul.f32 0.25, %v1005_v2  ;;  %v8167_v5 = vpop.f32.mrb[5].mxu1 }
 0x322   : > { %v1010_v6 = vsel %vm677_vm7, %v1009_v4, -inf }
 0x323   : > { %v1171_v7 = vpop.f32.mrb[6].mxu1  ;;  %1011 = vmax.xlane.f32.xlu0 %v1010_v6 }
 0x324   : > { %v1175_v9 = vmul.f32 0.25, %v1171_v7  ;;  %v8177_v10 = vpop.f32.mrb[7].mxu1 }
 0x326   : > { %v1176_v11 = vsel %vm677_vm7, %v1175_v9, -inf }
 0x327   : > { %1177 = vmax.xlane.f32.xlu0 %v1176_v11 }
 0x330   : > { %689 = vrot.lane.b32.xlu1 %v9052_v48, %s10819_s2  ;;  %s7689_s2 = sshll.u32 %s8916_s25, 4  ;;  %s8829_s25 = smov [#allocation2]  }
 0x338   : > { %v680_v12 = vpop.xlane.xlu0 %679 }
 0x339   : > { %v681_v13 = vsub.f32 %v676_v59, %v680_v12 }
 0x33b   : > { %v682_v14 = vmul.f32 1.442695, %v681_v13 }
 0x33d   : > { %8711 = vpow2.f32 %v682_v14 }
 0x347   : > { %v8712_v15 = vpop.eup %8711 }
 0x348   : > { %v684_v16 = vsel %vm677_vm7, %v8712_v15, 0.0 }
 0x354   : > { %685 = vadd.xlane.f32.xlu1 %v684_v16  ;;  %v9151_v16 = vld [vmem:[%s10811_s9] sm:$0x3f] }
 0x3ac   : > { %v846_v17 = vpop.xlane.xlu1 %845 }
 0x3ad   : > { %v847_v18 = vsub.f32 %v843_v63, %v846_v17  ;;  %v1286_v63 = vld [vmem:[%s10807_s5 + $0x30] sm:$0xff]  ;;  %v1291_v17 = vrot.slane %v9151_v16, %v9043_v43 }
 0x3ae   : > { %v8354_v1 = vpack.c.bf16 %v1287_v0, %v1286_v63  ;;  %v1393_v63 = vld [vmem:[%s10808_s6 + $0x10] sm:$0xff] }
 0x3af   : > { %v848_v19 = vmul.f32 1.442695, %v847_v18  ;;  %v1401_v0 = vld [vmem:[%s10808_s6 + $0x50] sm:$0xff] }
 0x3b0   : > { %v690_v20 = vpop.permute.xlu1 %689  ;;  %v1012_v21 = vpop.xlane.xlu0 %1011  ;;  %8355 = vmatpush3.bf16.msra.mxu1 %v8354_v1  ;;  %v1394_v1 = vld [vmem:[%s10808_s6 + $0x18] sm:$0xff] }
 0x3b1   : > { %8713 = vpow2.f32 %v848_v19  ;;  %v1013_v22 = vsub.f32 %v1009_v4, %v1012_v21  ;;  %8149 = vmatpush3.msra.mxu0 %v690_v20 }
 0x3b2   : > { %8158 = vmatprep.subr.mxu0 %v8819_v8 }
 0x3b3   : > { %v1014_v23 = vmul.f32 1.442695, %v1013_v22 }
 0x3b4   : > { %v1178_v24 = vpop.xlane.xlu0 %1177 }
 0x3b5   : > { %8715 = vpow2.f32 %v1014_v23  ;;  %v1179_v25 = vsub.f32 %v1175_v9, %v1178_v24 }
 0x3b7   : > { %v1180_v26 = vmul.f32 1.442695, %v1179_v25 }
 0x3b9   : > { %8717 = vpow2.f32 %v1180_v26 }
 0x3bb   : > { %v8714_v27 = vpop.eup %8713 }
 0x3bc   : > { %v850_v28 = vsel %vm677_vm7, %v8714_v27, 0.0 }
 0x3bd   : > { %851 = vadd.xlane.f32.xlu0 %v850_v28  ;;  %v1391_v28 = vld [vmem:[%s10808_s6] sm:$0xff] }
 0x3bf   : > { %v8716_v29 = vpop.eup %8715 }
 0x3c0   : > { %v1016_v30 = vsel %vm677_vm7, %v8716_v29, 0.0 }
 0x3c1   : > { %1017 = vadd.xlane.f32.xlu1 %v1016_v30 }
 0x3c3   : > { %v8718_v31 = vpop.eup %8717 }
 0x3c4   : > { %v1182_v32 = vsel %vm677_vm7, %v8718_v31, 0.0 }
 0x3c5   : > { %1183 = vadd.xlane.f32.xlu0 %v1182_v32 }
 0x3d2   : > { %1021 = vrot.lane.b32.xlu1 %v9052_v48, %s10822_s19 }
 0x3d6   : > { %1187 = vrot.lane.b32.xlu1 %v9052_v48, %s10824_s20 }
 0x3db   : > { %855 = vrot.lane.b32.xlu0 %v9052_v48, %s8827_s30 }
 0x3e1   : > { %v686_v33 = vpop.xlane.xlu1 %685 }
 0x3e2   : > { %8719 = vrcp.f32 %v686_v33 }
 0x3ec   : > { %v8720_v34 = vpop.eup %8719 }
 0x3ed   : > { %v688_v35 = vmul.f32 %v8720_v34, %v8712_v15 }
 0x3ef   : > { %8151 = vmatmul.mubr.msk.f32.vlgmr.msra.gmra.mrb[4].mxu0 %vm677_vm7, %v688_v35  ;;  %v1407_v35 = vld [vmem:[%s10808_s6 + $0x80] sm:$0xff] }
 0x3f0   : > { %8160 = vmatprep.mubr.msk.f32.mxu0 %vm8818_vm0, %v8819_v8 }
 0x44a   : > { %v852_v36 = vpop.xlane.xlu0 %851 }
 0x44b   : > { %8721 = vrcp.f32 %v852_v36  ;;  %v1415_v36 = vld [vmem:[%s10808_s6 + $0xc0] sm:$0xff] }
 0x44e   : > { %v1018_v37 = vpop.xlane.xlu1 %1017 }
 0x44f   : > { %8723 = vrcp.f32 %v1018_v37  ;;  %v1408_v37 = vld [vmem:[%s10808_s6 + $0x88] sm:$0xff] }
 0x452   : > { %v1184_v38 = vpop.xlane.xlu0 %1183  ;;  %v1022_v44 = vpop.permute.xlu1 %1021 }
 0x453   : > { %8725 = vrcp.f32 %v1184_v38  ;;  %v6942_v38 = vcombine.high %v1407_v35, %v1415_v36 }
 0x455   : > { %v8722_v40 = vpop.eup %8721 }
 0x456   : > { %v854_v41 = vmul.f32 %v8722_v40, %v8714_v27  ;;  %v856_v45 = vpop.permute.xlu0 %855  ;;  %v1188_v49 = vpop.permute.xlu1 %1187  ;;  %v1416_v40 = vld [vmem:[%s10808_s6 + $0xc8] sm:$0xff] }
 0x457   : > { %8159 = vmatpush3.msra.mxu0 %v856_v45  ;;  %v6944_v45 = vcombine.high %v1408_v37, %v1416_v40 }
 0x458   : > { %8161 = vmatmul.mubr.msk.f32.vlgmr.msra.gmra.mrb[6].mxu0 %vm677_vm7, %v854_v41  ;;  %8168 = vmatprep.subr.mxu0 %v8819_v8  ;;  %v6941_v41 = vcombine.low %v1407_v35, %v1415_v36  ;;  %v1449_v35 = vld [vmem:[%s10808_s6 + $0x1d0] sm:$0xff]  ;;  %v1442_v36 = vld [vmem:[%s10808_s6 + $0x198] sm:$0xff] }
 0x459   : > { %v8724_v47 = vpop.eup %8723  ;;  %8169 = vmatpush3.msra.mxu0 %v1022_v44  ;;  %8170 = vmatprep.mubr.msk.f32.mxu0 %vm8818_vm0, %v8819_v8  ;;  %v6943_v44 = vcombine.low %v1408_v37, %v1416_v40  ;;  %v1450_v37 = vld [vmem:[%s10808_s6 + $0x1d8] sm:$0xff] }
 0x45a   : > { %v1020_v48 = vmul.f32 %v8724_v47, %v8716_v29  ;;  %8178 = vmatprep.subr.mxu0 %v8819_v8  ;;  %v1392_v29 = vld [vmem:[%s10808_s6 + $0x8] sm:$0xff]  ;;  %v1423_v47 = vld [vmem:[%s10808_s6 + $0x100] sm:$0xff] }
 0x45c   : > { %8171 = vmatmul.mubr.msk.f32.vlgmr.msra.gmra.mrb[8].mxu0 %vm677_vm7, %v1020_v48  ;;  %v1431_v48 = vld [vmem:[%s10808_s6 + $0x140] sm:$0xff] }
 0x45d   : > { %v8726_v50 = vpop.eup %8725  ;;  %8179 = vmatpush3.msra.mxu0 %v1188_v49  ;;  %8180 = vmatprep.mubr.msk.f32.mxu0 %vm8818_vm0, %v8819_v8  ;;  %v1424_v49 = vld [vmem:[%s10808_s6 + $0x108] sm:$0xff]  ;;  %v6957_v52 = vcombine.low %v1423_v47, %v1431_v48 }
 0x45e   : > { %v1186_v51 = vmul.f32 %v8726_v50, %v8718_v31  ;;  %v1400_v31 = vld [vmem:[%s10808_s6 + $0x48] sm:$0xff]  ;;  %v6958_v50 = vcombine.high %v1423_v47, %v1431_v48  ;;  %v1403_v47 = vld [vmem:[%s10808_s6 + $0x60] sm:$0xff] }
 0x45f   : > { %v6927_v33 = vcombine.low %v1392_v29, %v1400_v31  ;;  %v6928_v34 = vcombine.high %v1392_v29, %v1400_v31  ;;  %v1434_v29 = vld [vmem:[%s10808_s6 + $0x158] sm:$0xff]  ;;  %v1396_v48 = vld [vmem:[%s10808_s6 + $0x28] sm:$0xff] }
 0x460   : > { %8181 = vmatmul.mubr.msk.f32.vlgmr.msra.gmra.mrb[10].mxu0 %vm677_vm7, %v1186_v51  ;;  %v1432_v51 = vld [vmem:[%s10808_s6 + $0x148] sm:$0xff] }
 0x461   : > { %1903 = vmatprep.subr.bf16.mxu1 %v6928_v34  ;;  %v6959_v53 = vcombine.low %v1424_v49, %v1432_v51  ;;  %v6960_v54 = vcombine.high %v1424_v49, %v1432_v51  ;;  %v1441_v34 = vld [vmem:[%s10808_s6 + $0x190] sm:$0xff]  ;;  %v1404_v49 = vld [vmem:[%s10808_s6 + $0x68] sm:$0xff]  ;;  %v6979_v51 = vcombine.low %v1442_v36, %v1450_v37 }
 0x4c2   : > { %v761_v58 = vpop.f32.mrb[4].mxu0 }
 0x4c3   : > { %v8152_v59 = vpop.f32.mrb[5].mxu0 }
 0x4c4   : > { %v1448_v59 = vld [vmem:[%s10808_s6 + $0x1c8] sm:$0xff] }
 0x4c5   : > { %v6975_v61 = vcombine.low %v1440_v57, %v1448_v59  ;;  %v6976_v62 = vcombine.high %v1440_v57, %v1448_v59  ;;  %v1420_v57 = vld [vmem:[%s10808_s6 + $0xe8] sm:$0xff]  ;;  %v6935_v59 = vcombine.low %v1396_v48, %v1404_v49 }
 0x52b   : > { %v927_v2 = vpop.f32.mrb[6].mxu0 }
 0x52c   : > { %1264 = vrot.lane.b32.xlu0 %v927_v2, %s10824_s20  ;;  %v8162_v4 = vpop.f32.mrb[7].mxu0  ;;  %v6929_v2 = vcombine.low %v1393_v63, %v1401_v0  ;;  %s10834_s20 = smov 64  }
 0x52d   : > { %v6930_v4 = vcombine.high %v1393_v63, %v1401_v0  ;;  %v1435_v63 = vld [vmem:[%s10808_s6 + $0x160] sm:$0xff]  ;;  %v1428_v0 = vld [vmem:[%s10808_s6 + $0x128] sm:$0xff] }
 0x52f   : > { %v1093_v5 = vpop.f32.mrb[8].mxu0 }
 0x530   : > { %1268 = vrot.lane.b32.xlu1 %v1093_v5, %s10822_s19  ;;  %v8172_v6 = vpop.f32.mrb[9].mxu0  ;;  %v1402_v5 = vld [vmem:[%s10808_s6 + $0x58] sm:$0xff]  ;;  %s10833_s19 = smov 112  }
 0x531   : > { %v8828_v6 = vmov 0  }
 0x532   : > { %1894 = vmatprep.mubr.bf16.mxu0 %v8828_v6 }
 0x533   : > { %v1259_v7 = vpop.f32.mrb[10].mxu0 }
 0x534   : > { %1272 = vrot.lane.b32.xlu0 %v1259_v7, %s8827_s30  ;;  %v8182_v9 = vpop.f32.mrb[11].mxu0  ;;  %v6931_v7 = vcombine.low %v1394_v1, %v1402_v5 }
 0x535   : > { %v6932_v9 = vcombine.high %v1394_v1, %v1402_v5  ;;  %v1436_v1 = vld [vmem:[%s10808_s6 + $0x168] sm:$0xff] }
 0x59e   : > { %v1265_v10 = vpop.permute.xlu0 %1264 }
 0x59f   : > { %v1275_v12 = vsel %vm599_vm6, %v761_v58, %v1265_v10  ;;  %v6974_v58 = vcombine.high %v1439_v55, %v1447_v56  ;;  %v1419_v55 = vld [vmem:[%s10808_s6 + $0xe0] sm:$0xff]  ;;  %v1412_v56 = vld [vmem:[%s10808_s6 + $0xa8] sm:$0xff] }
 0x5a2   : > { %v1269_v11 = vpop.permute.xlu1 %1268 }
 0x5a3   : > { %v1277_v13 = vsel %vm1276_vm8, %v1275_v12, %v1269_v11 }
 0x5a6   : > { %v1273_v14 = vpop.permute.xlu0 %1272 }
 0x5a7   : > { %v1279_v15 = vsel %vm1278_vm9, %v1277_v13, %v1273_v14  ;;  %v9225_v13 = vsub.s32 2, %v9040_v42  ;;  %v1383_v14 = vrot.slane %v9151_v16, %v9050_v46 }
 0x5a8   : > { %8200 = vmatmul.mubr.msk.f32.vlgmr.msra.gmra.mrb[8].mxu1 %vm524_vm5, %v1279_v15 }
 0x5a9   : > { %1904 = vmatpush1.bf16.msra.mxu1 %v6927_v33  ;;  %1935 = vmatprep.mubr.bf16.mxu1 %v8828_v6 }
 0x5aa   : > { %1905 = vmatprep.subr.bf16.mxu1 %v6944_v45  ;;  %v1395_v45 = vld [vmem:[%s10808_s6 + $0x20] sm:$0xff] }
 0x5ad   : > { %1906 = vmatpush1.bf16.msra.mxu1 %v6943_v44  ;;  %v6980_v44 = vcombine.high %v1442_v36, %v1450_v37  ;;  %v1437_v36 = vld [vmem:[%s10808_s6 + $0x170] sm:$0xff]  ;;  %v1430_v37 = vld [vmem:[%s10808_s6 + $0x138] sm:$0xff] }
 0x5ae   : > { %1907 = vmatprep.subr.bf16.mxu1 %v6960_v54  ;;  %v1411_v54 = vld [vmem:[%s10808_s6 + $0xa0] sm:$0xff] }
 0x5b1   : > { %1908 = vmatpush1.bf16.msra.mxu1 %v6959_v53  ;;  %v6936_v53 = vcombine.high %v1396_v48, %v1404_v49  ;;  %v1453_v48 = vld [vmem:[%s10808_s6 + $0x1f0] sm:$0xff]  ;;  %v1446_v49 = vld [vmem:[%s10808_s6 + $0x1b8] sm:$0xff] }
 0x5b2   : > { %1909 = vmatprep.subr.bf16.mxu1 %v6976_v62  ;;  %v1427_v62 = vld [vmem:[%s10808_s6 + $0x120] sm:$0xff] }
 0x5b3   : > { %v6966_v5 = vcombine.high %v1427_v62, %v1435_v63 }
 0x5b5   : > { %1910 = vmatpush1.bf16.msra.mxu1 %v6975_v61  ;;  %v6952_v61 = vcombine.high %v1412_v56, %v1420_v57 }
 0x5b6   : > { %1985 = vmatprep.subr.bf16.mxu1 %v6932_v9  ;;  %v1443_v9 = vld [vmem:[%s10808_s6 + $0x1a0] sm:$0xff] }
 0x67b   : > { %v1361_v18 = vpop.f32.mrb[8].mxu1 }
 0x67c   : > { %v1362_v19 = vadd.f32 %v1361_v18, %v1291_v17  ;;  %v8201_v20 = vpop.f32.mrb[9].mxu1  ;;  %v1388_v17 = vrot.slane %v9151_v16, %v9225_v13 }
 0x67d   : > { %v1409_v20 = vld [vmem:[%s10808_s6 + $0x90] sm:$0xff] }
 0x67e   : > { %v1365_v21 = vadd.f32 %v1362_v19, %v9034_v39  ;;  %v1399_v39 = vld [vmem:[%s10808_s6 + $0x40] sm:$0xff] }
 0x67f   : > { %v6926_v30 = vcombine.high %v1391_v28, %v1399_v39  ;;  %v6925_v32 = vcombine.low %v1391_v28, %v1399_v39  ;;  %v1433_v28 = vld [vmem:[%s10808_s6 + $0x150] sm:$0xff]  ;;  %v1426_v39 = vld [vmem:[%s10808_s6 + $0x118] sm:$0xff] }
 0x680   : > { %v1366_v22 = vsel %vm524_vm5, %v1365_v21, 0.0  ;;  %v6964_v33 = vcombine.high %v1426_v39, %v1434_v29  ;;  %v6963_v40 = vcombine.low %v1426_v39, %v1434_v29  ;;  %v1421_v39 = vld [vmem:[%s10808_s6 + $0xf0] sm:$0xff]  ;;  %v1414_v29 = vld [vmem:[%s10808_s6 + $0xb8] sm:$0xff] }
 0x681   : > { %1367 = vadd.xlane.f32.xlu1 %v1366_v22  ;;  %1862 = vmatprep.subr.bf16.mxu0 %v6926_v30  ;;  %v1410_v22 = vld [vmem:[%s10808_s6 + $0x98] sm:$0xff] }
 0x682   : > { %1863 = vmatpush1.bf16.msra.mxu0 %v6925_v32 }
 0x683   : > { %1864 = vmatprep.subr.bf16.mxu0 %v6942_v38 }
 0x686   : > { %1865 = vmatpush1.bf16.msra.mxu0 %v6941_v41  ;;  %v6978_v41 = vcombine.high %v1441_v34, %v1449_v35 }
 0x687   : > { %1866 = vmatprep.subr.bf16.mxu0 %v6958_v50  ;;  %v6977_v50 = vcombine.low %v1441_v34, %v1449_v35  ;;  %v1429_v35 = vld [vmem:[%s10808_s6 + $0x130] sm:$0xff] }
 0x68a   : > { %1867 = vmatpush1.bf16.msra.mxu0 %v6957_v52  ;;  %v6934_v52 = vcombine.high %v1395_v45, %v1403_v47 }
 0x68b   : > { %1868 = vmatprep.subr.bf16.mxu0 %v6974_v58  ;;  %v6933_v58 = vcombine.low %v1395_v45, %v1403_v47  ;;  %v1445_v47 = vld [vmem:[%s10808_s6 + $0x1b0] sm:$0xff] }
 0x68e   : > { %1869 = vmatpush1.bf16.msra.mxu0 %v6973_v60  ;;  %v6950_v60 = vcombine.high %v1411_v54, %v1419_v55 }
 0x68f   : > { %1944 = vmatprep.subr.bf16.mxu0 %v6930_v4  ;;  %v6951_v4 = vcombine.low %v1412_v56, %v1420_v57  ;;  %v8455_v57 = vld [vmem:[%s10810_s8 + $0x40] sm:$0xff]  }
 0x70e   : > { %v1368_v23 = vpop.xlane.xlu1 %1367 }
 0x70f   : > { %v1370_v24 = vmul.f32 0.015625, %v1368_v23  ;;  %v1418_v23 = vld [vmem:[%s10808_s6 + $0xd8] sm:$0xff] }
 0x710   : > { %v6947_v31 = vcombine.low %v1410_v22, %v1418_v23 }
 0x711   : > { %v9157_v25 = vsub.f32 %v1365_v21, %v1370_v24  ;;  %v1417_v21 = vld [vmem:[%s10808_s6 + $0xd0] sm:$0xff] }
 0x712   : > { %v6945_v30 = vcombine.low %v1409_v20, %v1417_v21 }
 0x713   : > { %v1372_v26 = vmul.f32 %v9157_v25, %v9157_v25 }
 0x715   : > { %v1373_v27 = vsel %vm524_vm5, %v1372_v26, 0.0  ;;  %v6948_v26 = vcombine.high %v1410_v22, %v1418_v23  ;;  %v1406_v22 = vld [vmem:[%s10808_s6 + $0x78] sm:$0xff] }
 0x716   : > { %1374 = vadd.xlane.f32.xlu0 %v1373_v27  ;;  %v1425_v27 = vld [vmem:[%s10808_s6 + $0x110] sm:$0xff] }
 0x717   : > { %v6962_v32 = vcombine.high %v1425_v27, %v1433_v28  ;;  %v6961_v38 = vcombine.low %v1425_v27, %v1433_v28  ;;  %v1413_v28 = vld [vmem:[%s10808_s6 + $0xb0] sm:$0xff] }
 0x7a3   : > { %v1375_v10 = vpop.xlane.xlu0 %1374 }
 0x7a4   : > { %v1376_v11 = vmul.f32 0.015625, %v1375_v10  ;;  %v1451_v10 = vld [vmem:[%s10808_s6 + $0x1e0] sm:$0xff] }
 0x7a5   : > { %v6981_v23 = vcombine.low %v1443_v9, %v1451_v10 }
 0x7a6   : > { %v1377_v12 = vadd.f32 1e-05, %v1376_v11  ;;  %v1444_v11 = vld [vmem:[%s10808_s6 + $0x1a8] sm:$0xff] }
 0x7a8   : > { %8727 = vrsqrt.f32 %v1377_v12  ;;  %v1452_v12 = vld [vmem:[%s10808_s6 + $0x1e8] sm:$0xff] }
 0x7b2   : > { %v8728_v15 = vpop.eup %8727 }
 0x7b3   : > { %v1379_v18 = vmul.f32 %v8728_v15, %v9157_v25  ;;  %v6946_v25 = vcombine.high %v1409_v20, %v1417_v21  ;;  %v6967_v15 = vcombine.low %v1428_v0, %v1436_v1  ;;  %v1405_v20 = vld [vmem:[%s10808_s6 + $0x70] sm:$0xff]  ;;  %v1398_v21 = vld [vmem:[%s10808_s6 + $0x38] sm:$0xff] }
 0x7b4   : > { %v6940_v27 = vcombine.high %v1398_v21, %v1406_v22 }
 0x7b5   : > { %v1384_v19 = vmul.f32 %v1383_v14, %v1379_v18  ;;  %v6965_v14 = vcombine.low %v1427_v62, %v1435_v63  ;;  %v6984_v18 = vcombine.high %v1444_v11, %v1452_v12  ;;  %v8460_v62 = vld [vmem:[%s10810_s8 + $0xc8] sm:$0xff]  }
 0x7b6   : > { %v8461_v63 = vld [vmem:[%s10810_s8 + $0x8] sm:$0xff]  }
 0x7b7   : > { %v9244_v16 = vadd.f32 %v1388_v17, %v1384_v19  ;;  %v6982_v17 = vcombine.high %v1443_v9, %v1451_v10  ;;  %v1397_v19 = vld [vmem:[%s10808_s6 + $0x30] sm:$0xff]  ;;  %v8469_v9 = vld [vmem:[%s10810_s8 + $0x18] sm:$0xff]  }
 0x7b8   : > { %v8470_v10 = vld [vmem:[%s10810_s8 + $0x98] sm:$0xff]  }
 0x7b9   : > { %v9248_v24 = vpack.c.bf16 %v9244_v16, %v9244_v16 }
 0x7bb   : > { %6989 = vmatmul.mubr.msk.bf16.vlgmr.msra.gmra.mrb[12].mxu0 %vm524_vm5, %v9248_v24  ;;  %6990 = vmatmul.mubr.msk.bf16.vlgmr.msra.gmra.mrb[12].mxu1 %vm524_vm5, %v9248_v24 }
 0x7bc   : > { %1945 = vmatpush1.bf16.msra.mxu0 %v6929_v2  ;;  %1986 = vmatpush1.bf16.msra.mxu1 %v6931_v7  ;;  %v6949_v2 = vcombine.low %v1411_v54, %v1419_v55  ;;  %v6968_v7 = vcombine.high %v1428_v0, %v1436_v1  ;;  %v6985_v55 = vcombine.low %v1445_v47, %v1453_v48  ;;  %v8462_v0 = vld [vmem:[%s10810_s8 + $0x88] sm:$0xff]   ;;  %v8463_v1 = vld [vmem:[%s10810_s8 + $0x50] sm:$0xff]  }
 0x7bd   : > { %1946 = vmatprep.subr.bf16.mxu0 %v6946_v25  ;;  %1987 = vmatprep.subr.bf16.mxu1 %v6948_v26  ;;  %v6983_v25 = vcombine.low %v1444_v11, %v1452_v12  ;;  %v6938_v26 = vcombine.high %v1397_v19, %v1405_v20  ;;  %v8471_v11 = vld [vmem:[%s10810_s8 + $0x60] sm:$0xff]  }
 0x7be   : > { %1976 = vmatprep.mubr.bf16.mxu0 %v8828_v6  ;;  %2017 = vmatprep.mubr.bf16.mxu1 %v8828_v6  ;;  %v8472_v12 = vld [vmem:[%s10810_s8 + $0xe0] sm:$0xff]  }
 0x7c0   : > { %1947 = vmatpush1.bf16.msra.mxu0 %v6945_v30  ;;  %1988 = vmatpush1.bf16.msra.mxu1 %v6947_v31  ;;  %v1422_v30 = vld [vmem:[%s10808_s6 + $0xf8] sm:$0xff]  ;;  %v6937_v31 = vcombine.low %v1397_v19, %v1405_v20  ;;  %v8477_v19 = vld [vmem:[%s10810_s8 + $0x28] sm:$0xff]  }
 0x7c1   : > { %1948 = vmatprep.subr.bf16.mxu0 %v6962_v32  ;;  %1989 = vmatprep.subr.bf16.mxu1 %v6964_v33  ;;  %v6939_v32 = vcombine.low %v1398_v21, %v1406_v22  ;;  %v6954_v33 = vcombine.high %v1413_v28, %v1421_v39  ;;  %v6956_v34 = vcombine.high %v1414_v29, %v1422_v30  ;;  %v8478_v20 = vld [vmem:[%s10810_s8 + $0xa8] sm:$0xff]   ;;  %v8479_v21 = vld [vmem:[%s10810_s8 + $0x70] sm:$0xff]  }
 0x7c2   : > { %v8480_v22 = vld [vmem:[%s10810_s8 + $0xf0] sm:$0xff]  }
 0x7c4   : > { %1949 = vmatpush1.bf16.msra.mxu0 %v6961_v38  ;;  %1990 = vmatpush1.bf16.msra.mxu1 %v6963_v40  ;;  %v1438_v38 = vld [vmem:[%s10808_s6 + $0x178] sm:$0xff]  ;;  %v6953_v40 = vcombine.low %v1413_v28, %v1421_v39 }
 0x7c5   : > { %1950 = vmatprep.subr.bf16.mxu0 %v6978_v41  ;;  %1991 = vmatprep.subr.bf16.mxu1 %v6980_v44  ;;  %v6955_v41 = vcombine.low %v1414_v29, %v1422_v30  ;;  %v6970_v44 = vcombine.high %v1429_v35, %v1437_v36  ;;  %v6972_v45 = vcombine.high %v1430_v37, %v1438_v38  ;;  %v8485_v28 = vld [vmem:[%s10810_s8 + $0x38] sm:$0xff]   ;;  %v8487_v29 = vld [vmem:[%s10810_s8 + $0x140] sm:$0xff]  }
 0x7c6   : > { %v8486_v39 = vld [vmem:[%s10810_s8 + $0xb8] sm:$0xff]   ;;  %v8488_v30 = vld [vmem:[%s10810_s8 + $0x1c0] sm:$0xff]  }
 0x7c8   : > { %1951 = vmatpush1.bf16.msra.mxu0 %v6977_v50  ;;  %1992 = vmatpush1.bf16.msra.mxu1 %v6979_v51  ;;  %v1454_v50 = vld [vmem:[%s10808_s6 + $0x1f8] sm:$0xff]  ;;  %v6969_v51 = vcombine.low %v1429_v35, %v1437_v36 }
 0x7c9   : > { %2026 = vmatprep.subr.bf16.mxu0 %v6934_v52  ;;  %2067 = vmatprep.subr.bf16.mxu1 %v6936_v53  ;;  %v6971_v52 = vcombine.low %v1430_v37, %v1438_v38  ;;  %v6986_v53 = vcombine.high %v1445_v47, %v1453_v48  ;;  %v6988_v54 = vcombine.high %v1446_v49, %v1454_v50 }
 0x7ca   : > { %v6987_v56 = vcombine.low %v1446_v49, %v1454_v50 }
 0x7cb   : > { %6991 = vmatmul.mubr.msk.bf16.vlgmr.msra.gmra.mrb[16].mxu0 %vm524_vm5, %v9248_v24  ;;  %6992 = vmatmul.mubr.msk.bf16.vlgmr.msra.gmra.mrb[16].mxu1 %vm524_vm5, %v9248_v24 }
 0x7cc   : > { %2027 = vmatpush1.bf16.msra.mxu0 %v6933_v58  ;;  %2068 = vmatpush1.bf16.msra.mxu1 %v6935_v59  ;;  %v8456_v58 = vld [vmem:[%s10810_s8 + $0xc0] sm:$0xff]  }
 0x7cd   : > { %2028 = vmatprep.subr.bf16.mxu0 %v6950_v60  ;;  %2069 = vmatprep.subr.bf16.mxu1 %v6952_v61  ;;  %v8457_v59 = vld [vmem:[%s10810_s8] sm:$0xff]   ;;  %v8459_v61 = vld [vmem:[%s10810_s8 + $0x48] sm:$0xff]  }
 0x7ce   : > { %2058 = vmatprep.mubr.bf16.mxu0 %v8828_v6  ;;  %2099 = vmatprep.mubr.bf16.mxu1 %v8828_v6  ;;  %v8458_v60 = vld [vmem:[%s10810_s8 + $0x80] sm:$0xff]  }
 0x7d0   : > { %2029 = vmatpush1.bf16.msra.mxu0 %v6949_v2  ;;  %2070 = vmatpush1.bf16.msra.mxu1 %v6951_v4  ;;  %v8465_v2 = vld [vmem:[%s10810_s8 + $0x10] sm:$0xff]  }
 0x7d1   : > { %2030 = vmatprep.subr.bf16.mxu0 %v6966_v5  ;;  %2071 = vmatprep.subr.bf16.mxu1 %v6968_v7  ;;  %v8466_v4 = vld [vmem:[%s10810_s8 + $0x90] sm:$0xff]   ;;  %v8467_v5 = vld [vmem:[%s10810_s8 + $0x58] sm:$0xff]  }
 0x7d2   : > { %v8468_v7 = vld [vmem:[%s10810_s8 + $0xd8] sm:$0xff]  }
 0x7d4   : > { %2031 = vmatpush1.bf16.msra.mxu0 %v6965_v14  ;;  %2072 = vmatpush1.bf16.msra.mxu1 %v6967_v15  ;;  %v8473_v14 = vld [vmem:[%s10810_s8 + $0x20] sm:$0xff]  }
 0x7d5   : > { %2032 = vmatprep.subr.bf16.mxu0 %v6982_v17  ;;  %2073 = vmatprep.subr.bf16.mxu1 %v6984_v18  ;;  %v8474_v15 = vld [vmem:[%s10810_s8 + $0xa0] sm:$0xff]   ;;  %v8475_v17 = vld [vmem:[%s10810_s8 + $0x68] sm:$0xff]  }
 0x7d6   : > { %v8476_v18 = vld [vmem:[%s10810_s8 + $0xe8] sm:$0xff]  }
 0x7d8   : > { %2033 = vmatpush1.bf16.msra.mxu0 %v6981_v23  ;;  %2074 = vmatpush1.bf16.msra.mxu1 %v6983_v25  ;;  %v8481_v23 = vld [vmem:[%s10810_s8 + $0x30] sm:$0xff]  }
 0x7d9   : > { %2108 = vmatprep.subr.bf16.mxu0 %v6938_v26  ;;  %2149 = vmatprep.subr.bf16.mxu1 %v6940_v27  ;;  %v8482_v25 = vld [vmem:[%s10810_s8 + $0xb0] sm:$0xff]   ;;  %v8483_v26 = vld [vmem:[%s10810_s8 + $0x78] sm:$0xff]  }
 0x7da   : > { %v8484_v27 = vld [vmem:[%s10810_s8 + $0xf8] sm:$0xff]  }
 0x7db   : > { %6993 = vmatmul.mubr.msk.bf16.vlgmr.msra.gmra.mrb[20].mxu0 %vm524_vm5, %v9248_v24  ;;  %6994 = vmatmul.mubr.msk.bf16.vlgmr.msra.gmra.mrb[20].mxu1 %vm524_vm5, %v9248_v24 }
 0x7dc   : > { %2109 = vmatpush1.bf16.msra.mxu0 %v6937_v31  ;;  %2150 = vmatpush1.bf16.msra.mxu1 %v6939_v32  ;;  %v9497_v31 = vld [vmem:[%s10809_s7] sm:$0xff]  ;;  %v9500_v32 = vsub.s32 3, %v9040_v42 }
 0x7dd   : > { %2110 = vmatprep.subr.bf16.mxu0 %v6954_v33  ;;  %2151 = vmatprep.subr.bf16.mxu1 %v6956_v34  ;;  %v1462_v33 = vrot.slane %v9497_v31, %v9043_v43  ;;  %v1470_v34 = vrot.slane %v9497_v31, %v9225_v13  ;;  %v1466_v35 = vrot.slane %v9497_v31, %v9050_v46 }
 0x7de   : > { %2140 = vmatprep.mubr.bf16.mxu0 %v8828_v6  ;;  %2181 = vmatprep.mubr.bf16.mxu1 %v8828_v6  ;;  %v1474_v36 = vrot.slane %v9497_v31, %v9500_v32 }
 0x7e0   : > { %2111 = vmatpush1.bf16.msra.mxu0 %v6953_v40  ;;  %2152 = vmatpush1.bf16.msra.mxu1 %v6955_v41 }
 0x7e1   : > { %2112 = vmatprep.subr.bf16.mxu0 %v6970_v44  ;;  %2153 = vmatprep.subr.bf16.mxu1 %v6972_v45 }
 0x7e4   : > { %2113 = vmatpush1.bf16.msra.mxu0 %v6969_v51  ;;  %2154 = vmatpush1.bf16.msra.mxu1 %v6971_v52 }
 0x7e5   : > { %2114 = vmatprep.subr.bf16.mxu0 %v6986_v53  ;;  %2155 = vmatprep.subr.bf16.mxu1 %v6988_v54 }
 0x7e8   : > { %2115 = vmatpush1.bf16.msra.mxu0 %v6985_v55  ;;  %2156 = vmatpush1.bf16.msra.mxu1 %v6987_v56 }
 0x7e9   : > { %7724 = vmatprep.subr.bf16.mxu0 %v8455_v57  ;;  %7746 = vmatprep.subr.bf16.mxu1 %v8456_v58 }
 0x7eb   : > { %6995 = vmatmul.mubr.msk.bf16.vlgmr.msra.gmra.mrb[24].mxu0 %vm524_vm5, %v9248_v24  ;;  %6996 = vmatmul.mubr.msk.bf16.vlgmr.msra.gmra.mrb[24].mxu1 %vm524_vm5, %v9248_v24  ;;  %v8464_v24 = vld [vmem:[%s10810_s8 + $0xd0] sm:$0xff]  }
 0x7ec   : > { %7725 = vmatpush3.bf16.msra.mxu0 %v8457_v59  ;;  %7747 = vmatpush3.bf16.msra.mxu1 %v8458_v60  ;;  %v8489_v59 = vld [vmem:[%s10810_s8 + $0x100] sm:$0xff]  }
 0x7ed   : > { %7726 = vmatprep.subr.bf16.mxu0 %v8459_v61  ;;  %7748 = vmatprep.subr.bf16.mxu1 %v8460_v62  ;;  %v8490_v60 = vld [vmem:[%s10810_s8 + $0x180] sm:$0xff]  }
 0x7f0   : > { %7727 = vmatpush3.bf16.msra.mxu0 %v8461_v63  ;;  %7749 = vmatpush3.bf16.msra.mxu1 %v8462_v0  ;;  %v8491_v63 = vld [vmem:[%s10810_s8 + $0x148] sm:$0xff]  }
 0x7f1   : > { %7728 = vmatprep.subr.bf16.mxu0 %v8463_v1  ;;  %7750 = vmatprep.subr.bf16.mxu1 %v8464_v24  ;;  %v8492_v0 = vld [vmem:[%s10810_s8 + $0x1c8] sm:$0xff]  }
 0x7f2   : > { %v8493_v1 = vld [vmem:[%s10810_s8 + $0x108] sm:$0xff]  }
 0x7f3   : > { %v8494_v24 = vld [vmem:[%s10810_s8 + $0x188] sm:$0xff]  }
 0x7f4   : > { %7729 = vmatpush3.bf16.msra.mxu0 %v8465_v2  ;;  %7751 = vmatpush3.bf16.msra.mxu1 %v8466_v4  ;;  %v9529_v2 = vsub.s32 5, %v9040_v42  ;;  %v9532_v4 = vsub.s32 7, %v9040_v42 }
 0x7f5   : > { %7730 = vmatprep.subr.bf16.mxu0 %v8467_v5  ;;  %7752 = vmatprep.subr.bf16.mxu1 %v8468_v7  ;;  %v8495_v5 = vld [vmem:[%s10810_s8 + $0x150] sm:$0xff]  }
 0x7f6   : > { %v8496_v7 = vld [vmem:[%s10810_s8 + $0x1d0] sm:$0xff]  }
 0x7f8   : > { %7731 = vmatpush3.bf16.msra.mxu0 %v8469_v9  ;;  %7753 = vmatpush3.bf16.msra.mxu1 %v8470_v10  ;;  %v1482_v9 = vrot.slane %v9497_v31, %v9529_v2  ;;  %v1490_v10 = vrot.slane %v9497_v31, %v9532_v4 }
 0x7f9   : > { %7732 = vmatprep.subr.bf16.mxu0 %v8471_v11  ;;  %7754 = vmatprep.subr.bf16.mxu1 %v8472_v12  ;;  %v8497_v11 = vld [vmem:[%s10810_s8 + $0x110] sm:$0xff]  }
 0x7fa   : > { %v8498_v12 = vld [vmem:[%s10810_s8 + $0x190] sm:$0xff]  }
 0x7fc   : > { %7733 = vmatpush3.bf16.msra.mxu0 %v8473_v14  ;;  %7755 = vmatpush3.bf16.msra.mxu1 %v8474_v15  ;;  %v8499_v14 = vld [vmem:[%s10810_s8 + $0x158] sm:$0xff]  }
 0x7fd   : > { %7734 = vmatprep.subr.bf16.mxu0 %v8475_v17  ;;  %7756 = vmatprep.subr.bf16.mxu1 %v8476_v18  ;;  %v8500_v15 = vld [vmem:[%s10810_s8 + $0x1d8] sm:$0xff]  }
 0x800   : > { %7735 = vmatpush3.bf16.msra.mxu0 %v8477_v19  ;;  %7757 = vmatpush3.bf16.msra.mxu1 %v8478_v20 }
 0x801   : > { %7736 = vmatprep.subr.bf16.mxu0 %v8479_v21  ;;  %7758 = vmatprep.subr.bf16.mxu1 %v8480_v22 }
 0x804   : > { %7737 = vmatpush3.bf16.msra.mxu0 %v8481_v23  ;;  %7759 = vmatpush3.bf16.msra.mxu1 %v8482_v25 }
 0x805   : > { %7738 = vmatprep.subr.bf16.mxu0 %v8483_v26  ;;  %7760 = vmatprep.subr.bf16.mxu1 %v8484_v27  ;;  %v8501_v26 = vld [vmem:[%s10810_s8 + $0x118] sm:$0xff]  }
 0x806   : > { %v8502_v27 = vld [vmem:[%s10810_s8 + $0x198] sm:$0xff]  }
 0x808   : > { %7739 = vmatpush3.bf16.msra.mxu0 %v8485_v28  ;;  %7761 = vmatpush3.bf16.msra.mxu1 %v8486_v39 }
 0x809   : > { %7768 = vmatprep.subr.bf16.mxu0 %v8487_v29  ;;  %7790 = vmatprep.subr.bf16.mxu1 %v8488_v30  ;;  %v8503_v29 = vld [vmem:[%s10810_s8 + $0x160] sm:$0xff]  }
 0x80a   : > { %v8504_v30 = vld [vmem:[%s10810_s8 + $0x1e0] sm:$0xff]  }
 0x88e   : > { %v1896_v37 = vpop.f32.mrb[12].mxu0  ;;  %v1937_v38 = vpop.f32.mrb[12].mxu1 }
 0x88f   : > { %v1897_v40 = vadd.f32 %v1896_v37, %v1462_v33  ;;  %v1938_v41 = vadd.f32 %v1937_v38, %v1470_v34  ;;  %v1898_v44 = vpop.f32.mrb[13].mxu0  ;;  %v1939_v45 = vpop.f32.mrb[13].mxu1  ;;  %v8505_v37 = vld [vmem:[%s10810_s8 + $0x120] sm:$0xff]  }
 0x890   : > { %v1899_v47 = vadd.f32 %v1898_v44, %v1466_v35  ;;  %v1940_v48 = vadd.f32 %v1939_v45, %v1474_v36  ;;  %v1900_v49 = vpop.f32.mrb[14].mxu0  ;;  %v1941_v50 = vpop.f32.mrb[14].mxu1  ;;  %v8506_v38 = vld [vmem:[%s10810_s8 + $0x1a0] sm:$0xff]   ;;  %v8507_v44 = vld [vmem:[%s10810_s8 + $0x168] sm:$0xff]  }
 0x891   : > { %v2190_v51 = vmax.f32 %v1897_v40, 0.0  ;;  %v2192_v52 = vmax.f32 %v1938_v41, 0.0  ;;  %v1901_v53 = vpop.f32.mrb[15].mxu0  ;;  %v1942_v54 = vpop.f32.mrb[15].mxu1  ;;  %v9575_v40 = vsub.s32 4, %v9040_v42  ;;  %v9578_v41 = vsub.s32 6, %v9040_v42 }
 0x892   : > { %v2191_v55 = vmax.f32 %v1899_v47, 0.0  ;;  %v2193_v56 = vmax.f32 %v1940_v48, 0.0  ;;  %v8508_v45 = vld [vmem:[%s10810_s8 + $0x1e8] sm:$0xff]   ;;  %v8513_v54 = vld [vmem:[%s10810_s8 + $0x130] sm:$0xff]  }
 0x893   : > { %v2206_v61 = vpack.c.bf16 %v2190_v51, %v2190_v51  ;;  %v2208_v62 = vpack.c.bf16 %v2192_v52, %v2192_v52  ;;  %v8509_v47 = vld [vmem:[%s10810_s8 + $0x128] sm:$0xff]   ;;  %v1478_v48 = vrot.slane %v9497_v31, %v9575_v40  ;;  %v1486_v49 = vrot.slane %v9497_v31, %v9578_v41  ;;  %v8511_v51 = vld [vmem:[%s10810_s8 + $0x170] sm:$0xff]  }
 0x894   : > { %v2207_v57 = vpack.c.bf16 %v2191_v55, %v2191_v55  ;;  %v2209_v58 = vpack.c.bf16 %v2193_v56, %v2193_v56  ;;  %v8510_v42 = vld [vmem:[%s10810_s8 + $0x1a8] sm:$0xff]   ;;  %v8512_v52 = vld [vmem:[%s10810_s8 + $0x1f0] sm:$0xff]  }
 0x895   : > { %v9599_v50 = vld [vmem:[%s10809_s7 + $0x8] sm:$0xff]  ;;  %v8514_v55 = vld [vmem:[%s10810_s8 + $0x1b0] sm:$0xff]  }
 0x896   : > { %3282 = vmatprep.mubr.bf16.mxu0 %v2207_v57  ;;  %3322 = vmatprep.mubr.bf16.mxu1 %v2209_v58  ;;  %v1498_v31 = vrot.slane %v9599_v50, %v9050_v46  ;;  %v1506_v53 = vrot.slane %v9599_v50, %v9500_v32  ;;  %v8515_v58 = vld [vmem:[%s10810_s8 + $0x178] sm:$0xff]  }
 0x897   : > { %3283 = vmatmul.mubr.bf16.vlgmr.msra.gmra.mrb[28].mxu0 %v2206_v61  ;;  %3323 = vmatmul.mubr.bf16.vlgmr.msra.gmra.mrb[28].mxu1 %v2208_v62 }
 0x898   : > { %7769 = vmatpush3.bf16.msra.mxu0 %v8489_v59  ;;  %7791 = vmatpush3.bf16.msra.mxu1 %v8490_v60  ;;  %v8516_v59 = vld [vmem:[%s10810_s8 + $0x1f8] sm:$0xff]  }
 0x899   : > { %7770 = vmatprep.subr.bf16.mxu0 %v8491_v63  ;;  %7792 = vmatprep.subr.bf16.mxu1 %v8492_v0 }
 0x89c   : > { %7771 = vmatpush3.bf16.msra.mxu0 %v8493_v1  ;;  %7793 = vmatpush3.bf16.msra.mxu1 %v8494_v24 }
 0x89d   : > { %7772 = vmatprep.subr.bf16.mxu0 %v8495_v5  ;;  %7794 = vmatprep.subr.bf16.mxu1 %v8496_v7  ;;  %v8517_v7 = vld [vmem:[%s10810_s8 + $0x138] sm:$0xff]  }
 0x89e   : > { %v1978_v17 = vpop.f32.mrb[16].mxu0  ;;  %v2019_v18 = vpop.f32.mrb[16].mxu1 }
 0x89f   : > { %v1980_v19 = vpop.f32.mrb[17].mxu0  ;;  %v2021_v20 = vpop.f32.mrb[17].mxu1  ;;  %v1979_v56 = vadd.f32 %v1978_v17, %v1478_v48  ;;  %v2020_v57 = vadd.f32 %v2019_v18, %v1486_v49  ;;  %v8520_v17 = vld [vmem:[%s10810_s8 + $0x2c0] sm:$0xff]  }
 0x8a0   : > { %v1981_v21 = vadd.f32 %v1980_v19, %v1482_v9  ;;  %v2022_v22 = vadd.f32 %v2021_v20, %v1490_v10  ;;  %v1982_v23 = vpop.f32.mrb[18].mxu0  ;;  %v2023_v25 = vpop.f32.mrb[18].mxu1  ;;  %7773 = vmatpush3.bf16.msra.mxu0 %v8497_v11  ;;  %7795 = vmatpush3.bf16.msra.mxu1 %v8498_v12  ;;  %v8518_v9 = vld [vmem:[%s10810_s8 + $0x1b8] sm:$0xff]   ;;  %v8521_v20 = vld [vmem:[%s10810_s8 + $0x200] sm:$0xff]  }
 0x8a1   : > { %v1983_v28 = vpop.f32.mrb[19].mxu0  ;;  %v2024_v39 = vpop.f32.mrb[19].mxu1  ;;  %7774 = vmatprep.subr.bf16.mxu0 %v8499_v14  ;;  %7796 = vmatprep.subr.bf16.mxu1 %v8500_v15  ;;  %v2194_v10 = vmax.f32 %v1979_v56, 0.0  ;;  %v2196_v11 = vmax.f32 %v2020_v57, 0.0  ;;  %v8519_v15 = vld [vmem:[%s10810_s8 + $0x240] sm:$0xff]  }
 0x8a2   : > { %v2195_v33 = vmax.f32 %v1981_v21, 0.0  ;;  %v2197_v34 = vmax.f32 %v2022_v22, 0.0  ;;  %v8522_v23 = vld [vmem:[%s10810_s8 + $0x280] sm:$0xff]   ;;  %v8525_v39 = vld [vmem:[%s10810_s8 + $0x208] sm:$0xff]  }
 0x8a3   : > { %v2210_v21 = vpack.c.bf16 %v2194_v10, %v2194_v10  ;;  %v2212_v22 = vpack.c.bf16 %v2196_v11, %v2196_v11  ;;  %v8536_v56 = vld [vmem:[%s10810_s8 + $0x2e0] sm:$0xff]   ;;  %v1522_v10 = vrot.slane %v9599_v50, %v9532_v4  ;;  %v8545_v11 = vld [vmem:[%s10810_s8 + $0x230] sm:$0xff]  }
 0x8a4   : > { %v2211_v35 = vpack.c.bf16 %v2195_v33, %v2195_v33  ;;  %v2213_v36 = vpack.c.bf16 %v2197_v34, %v2197_v34  ;;  %7775 = vmatpush3.bf16.msra.mxu0 %v8501_v26  ;;  %7797 = vmatpush3.bf16.msra.mxu1 %v8502_v27  ;;  %v8523_v26 = vld [vmem:[%s10810_s8 + $0x248] sm:$0xff]   ;;  %v8528_v33 = vld [vmem:[%s10810_s8 + $0x2d0] sm:$0xff]   ;;  %v1518_v34 = vrot.slane %v9599_v50, %v9578_v41  ;;  %v8537_v57 = vld [vmem:[%s10810_s8 + $0x220] sm:$0xff]  }
 0x8a5   : > { %7776 = vmatprep.subr.bf16.mxu0 %v8503_v29  ;;  %7798 = vmatprep.subr.bf16.mxu1 %v8504_v30  ;;  %v8524_v27 = vld [vmem:[%s10810_s8 + $0x2c8] sm:$0xff]   ;;  %v8527_v30 = vld [vmem:[%s10810_s8 + $0x250] sm:$0xff]  }
 0x8a6   : > { %3362 = vmatprep.mubr.bf16.mxu0 %v2211_v35  ;;  %3402 = vmatprep.mubr.bf16.mxu1 %v2213_v36  ;;  %v8526_v29 = vld [vmem:[%s10810_s8 + $0x288] sm:$0xff]   ;;  %v8529_v35 = vld [vmem:[%s10810_s8 + $0x210] sm:$0xff]  }
 0x8a7   : > { %v8530_v36 = vld [vmem:[%s10810_s8 + $0x290] sm:$0xff]  }
 0x8a8   : > { %7777 = vmatpush3.bf16.msra.mxu0 %v8505_v37  ;;  %7799 = vmatpush3.bf16.msra.mxu1 %v8506_v38  ;;  %v8531_v37 = vld [vmem:[%s10810_s8 + $0x258] sm:$0xff]  }
 0x8a9   : > { %7778 = vmatprep.subr.bf16.mxu0 %v8507_v44  ;;  %7800 = vmatprep.subr.bf16.mxu1 %v8508_v45  ;;  %v8532_v45 = vld [vmem:[%s10810_s8 + $0x2d8] sm:$0xff]  }
 0x8ac   : > { %7779 = vmatpush3.bf16.msra.mxu0 %v8509_v47  ;;  %7801 = vmatpush3.bf16.msra.mxu1 %v8510_v42 }
 0x8ad   : > { %7780 = vmatprep.subr.bf16.mxu0 %v8511_v51  ;;  %7802 = vmatprep.subr.bf16.mxu1 %v8512_v52  ;;  %v8533_v52 = vld [vmem:[%s10810_s8 + $0x218] sm:$0xff]  }
 0x8ae   : > { %v9623_v60 = vpop.f32.mrb[20].mxu0  ;;  %v9625_v61 = vpop.f32.mrb[20].mxu1 }
 0x8af   : > { %v2062_v62 = vpop.f32.mrb[21].mxu0  ;;  %v2103_v63 = vpop.f32.mrb[21].mxu1 }
 0x8b0   : > { %v2063_v0 = vadd.f32 %v2062_v62, %v1498_v31  ;;  %v2104_v1 = vadd.f32 %v2103_v63, %v1506_v53  ;;  %v2064_v24 = vpop.f32.mrb[22].mxu0  ;;  %v2105_v5 = vpop.f32.mrb[22].mxu1  ;;  %7781 = vmatpush3.bf16.msra.mxu0 %v8513_v54  ;;  %7803 = vmatpush3.bf16.msra.mxu1 %v8514_v55  ;;  %v8534_v54 = vld [vmem:[%s10810_s8 + $0x298] sm:$0xff]   ;;  %v8535_v55 = vld [vmem:[%s10810_s8 + $0x260] sm:$0xff]   ;;  %v8540_v62 = vld [vmem:[%s10810_s8 + $0x2e8] sm:$0xff]  }
 0x8b1   : > { %v2065_v12 = vpop.f32.mrb[23].mxu0  ;;  %v2106_v14 = vpop.f32.mrb[23].mxu1  ;;  %7782 = vmatprep.subr.bf16.mxu0 %v8515_v58  ;;  %7804 = vmatprep.subr.bf16.mxu1 %v8516_v59  ;;  %v8538_v58 = vld [vmem:[%s10810_s8 + $0x2a0] sm:$0xff]   ;;  %v8539_v59 = vld [vmem:[%s10810_s8 + $0x268] sm:$0xff]   ;;  %v8543_v24 = vld [vmem:[%s10810_s8 + $0x270] sm:$0xff]   ;;  %v1502_v5 = vrot.slane %v9599_v50, %v9225_v13 }
 0x8b2   : > { %v2199_v18 = vmax.f32 %v2063_v0, 0.0  ;;  %v2201_v19 = vmax.f32 %v2104_v1, 0.0  ;;  %v8541_v63 = vld [vmem:[%s10810_s8 + $0x228] sm:$0xff]   ;;  %v1494_v0 = vrot.slane %v9599_v50, %v9043_v43  ;;  %v8546_v14 = vld [vmem:[%s10810_s8 + $0x2b0] sm:$0xff]  }
 0x8b3   : > { %v8542_v1 = vld [vmem:[%s10810_s8 + $0x2a8] sm:$0xff]  }
 0x8b4   : > { %7783 = vmatpush3.bf16.msra.mxu0 %v8517_v7  ;;  %7805 = vmatpush3.bf16.msra.mxu1 %v8518_v9  ;;  %v2215_v25 = vpack.c.bf16 %v2199_v18, %v2199_v18  ;;  %v2217_v28 = vpack.c.bf16 %v2201_v19, %v2201_v19  ;;  %v8544_v7 = vld [vmem:[%s10810_s8 + $0x2f0] sm:$0xff]   ;;  %v1514_v9 = vrot.slane %v9599_v50, %v9529_v2  ;;  %v8548_v18 = vld [vmem:[%s10810_s8 + $0x2f8] sm:$0xff]  }
 0x8b5   : > { %7812 = vmatprep.subr.bf16.mxu0 %v8519_v15  ;;  %7834 = vmatprep.subr.bf16.mxu1 %v8520_v17  ;;  %v2061_v12 = vadd.f32 %v9623_v60, %v1494_v0  ;;  %v8547_v15 = vld [vmem:[%s10810_s8 + $0x278] sm:$0xff]   ;;  %v2102_v17 = vadd.f32 %v9625_v61, %v1502_v5  ;;  %v8551_v61 = vld [vmem:[%s10810_s8 + $0x340] sm:$0xff]   ;;  %v8574_v0 = vld [vmem:[%s10810_s8 + $0x3a8] sm:$0xff]  }
 0x8b6   : > { %v8549_v60 = vld [vmem:[%s10810_s8 + $0x238] sm:$0xff]  }
 0x8b7   : > { %3363 = vmatmul.mubr.bf16.vlgmr.msra.gmra.mrb[32].mxu0 %v2210_v21  ;;  %3403 = vmatmul.mubr.bf16.vlgmr.msra.gmra.mrb[32].mxu1 %v2212_v22  ;;  %v2198_v21 = vmax.f32 %v2061_v12, 0.0  ;;  %v8550_v22 = vld [vmem:[%s10810_s8 + $0x2b8] sm:$0xff]  }
 0x8b8   : > { %7813 = vmatpush3.bf16.msra.mxu0 %v8521_v20  ;;  %3442 = vmatprep.mubr.bf16.mxu0 %v2215_v25  ;;  %v8552_v25 = vld [vmem:[%s10810_s8 + $0x3c0] sm:$0xff]   ;;  %v8582_v12 = vld [vmem:[%s10810_s8 + $0x3b8] sm:$0xff]  }
 0x8b9   : > { %7835 = vmatpush3.bf16.msra.mxu1 %v8522_v23  ;;  %3482 = vmatprep.mubr.bf16.mxu1 %v2217_v28  ;;  %v2200_v23 = vmax.f32 %v2102_v17, 0.0  ;;  %v8553_v28 = vld [vmem:[%s10810_s8 + $0x300] sm:$0xff]  }
 0x8ba   : > { %7814 = vmatprep.subr.bf16.mxu0 %v8523_v26  ;;  %7836 = vmatprep.subr.bf16.mxu1 %v8524_v27 }
 0x8bc   : > { %7815 = vmatpush3.bf16.msra.mxu0 %v8525_v39  ;;  %v2214_v39 = vpack.c.bf16 %v2198_v21, %v2198_v21 }
 0x8bd   : > { %7837 = vmatpush3.bf16.msra.mxu1 %v8526_v29  ;;  %7816 = vmatprep.subr.bf16.mxu0 %v8527_v30  ;;  %v8554_v29 = vld [vmem:[%s10810_s8 + $0x380] sm:$0xff]   ;;  %v2216_v30 = vpack.c.bf16 %v2200_v23, %v2200_v23 }
 0x8be   : > { %v9674_v38 = vpop.f32.mrb[24].mxu0  ;;  %v2183_v44 = vpop.f32.mrb[24].mxu1  ;;  %7838 = vmatprep.subr.bf16.mxu1 %v8528_v33  ;;  %v8555_v33 = vld [vmem:[%s10810_s8 + $0x348] sm:$0xff]  }
 0x8bf   : > { %v9679_v47 = vadd.f32 %v2183_v44, %v1518_v34  ;;  %v2144_v42 = vpop.f32.mrb[25].mxu0  ;;  %v2185_v48 = vpop.f32.mrb[25].mxu1  ;;  %v8558_v44 = vld [vmem:[%s10810_s8 + $0x388] sm:$0xff]  }
 0x8c0   : > { %v2146_v49 = vpop.f32.mrb[26].mxu0  ;;  %v2187_v51 = vpop.f32.mrb[26].mxu1  ;;  %7817 = vmatpush3.bf16.msra.mxu0 %v8529_v35  ;;  %v2145_v19 = vadd.f32 %v2144_v42, %v1514_v9  ;;  %v2186_v20 = vadd.f32 %v2185_v48, %v1522_v10  ;;  %v8556_v35 = vld [vmem:[%s10810_s8 + $0x3c8] sm:$0xff]   ;;  %v8560_v42 = vld [vmem:[%s10810_s8 + $0x3d0] sm:$0xff]   ;;  %v8579_v9 = vld [vmem:[%s10810_s8 + $0x378] sm:$0xff]  }
 0x8c1   : > { %7839 = vmatpush3.bf16.msra.mxu1 %v8530_v36  ;;  %v2147_v31 = vpop.f32.mrb[27].mxu0  ;;  %v2188_v53 = vpop.f32.mrb[27].mxu1  ;;  %7818 = vmatprep.subr.bf16.mxu0 %v8531_v37  ;;  %v8557_v37 = vld [vmem:[%s10810_s8 + $0x308] sm:$0xff]   ;;  %v8561_v48 = vld [vmem:[%s10810_s8 + $0x310] sm:$0xff]   ;;  %v8563_v51 = vld [vmem:[%s10810_s8 + $0x358] sm:$0xff]  }
 0x8c2   : > { %7840 = vmatprep.subr.bf16.mxu1 %v8532_v45  ;;  %v2203_v26 = vmax.f32 %v2145_v19, 0.0  ;;  %v2205_v27 = vmax.f32 %v2186_v20, 0.0  ;;  %v8559_v45 = vld [vmem:[%s10810_s8 + $0x350] sm:$0xff]   ;;  %v8565_v31 = vld [vmem:[%s10810_s8 + $0x318] sm:$0xff]  }
 0x8c3   : > { %v8562_v49 = vld [vmem:[%s10810_s8 + $0x390] sm:$0xff]   ;;  %v8566_v53 = vld [vmem:[%s10810_s8 + $0x398] sm:$0xff]  }
 0x8c4   : > { %7819 = vmatpush3.bf16.msra.mxu0 %v8533_v52  ;;  %v2219_v34 = vpack.c.bf16 %v2203_v26, %v2203_v26  ;;  %v2221_v36 = vpack.c.bf16 %v2205_v27, %v2205_v27  ;;  %v8564_v52 = vld [vmem:[%s10810_s8 + $0x3d8] sm:$0xff]  }
 0x8c5   : > { %7841 = vmatpush3.bf16.msra.mxu1 %v8534_v54  ;;  %7820 = vmatprep.subr.bf16.mxu0 %v8535_v55  ;;  %v8567_v54 = vld [vmem:[%s10810_s8 + $0x360] sm:$0xff]   ;;  %v8580_v10 = vld [vmem:[%s10810_s8 + $0x3f8] sm:$0xff]  }
 0x8c6   : > { %7842 = vmatprep.subr.bf16.mxu1 %v8536_v56  ;;  %v8568_v55 = vld [vmem:[%s10810_s8 + $0x3e0] sm:$0xff]  }
 0x8c7   : > { %v8569_v56 = vld [vmem:[%s10810_s8 + $0x320] sm:$0xff]  }
 0x8c8   : > { %7821 = vmatpush3.bf16.msra.mxu0 %v8537_v57  ;;  %v8570_v57 = vld [vmem:[%s10810_s8 + $0x3a0] sm:$0xff]  }
 0x8c9   : > { %7843 = vmatpush3.bf16.msra.mxu1 %v8538_v58  ;;  %7822 = vmatprep.subr.bf16.mxu0 %v8539_v59  ;;  %v8571_v58 = vld [vmem:[%s10810_s8 + $0x368] sm:$0xff]  }
 0x8ca   : > { %7844 = vmatprep.subr.bf16.mxu1 %v8540_v62  ;;  %v8572_v59 = vld [vmem:[%s10810_s8 + $0x3e8] sm:$0xff]  }
 0x8cb   : > { %v8573_v62 = vld [vmem:[%s10810_s8 + $0x328] sm:$0xff]  }
 0x8cc   : > { %7823 = vmatpush3.bf16.msra.mxu0 %v8541_v63  ;;  %v1510_v63 = vrot.slane %v9599_v50, %v9575_v40  ;;  %v8577_v50 = vld [vmem:[%s10810_s8 + $0x330] sm:$0xff]  }
 0x8cd   : > { %7845 = vmatpush3.bf16.msra.mxu1 %v8542_v1  ;;  %7824 = vmatprep.subr.bf16.mxu0 %v8543_v24  ;;  %v8575_v1 = vld [vmem:[%s10810_s8 + $0x370] sm:$0xff]  }
 0x8ce   : > { %7846 = vmatprep.subr.bf16.mxu1 %v8544_v7  ;;  %v8576_v24 = vld [vmem:[%s10810_s8 + $0x3f0] sm:$0xff]   ;;  %v2143_v5 = vadd.f32 %v9674_v38, %v1510_v63  ;;  %v8581_v38 = vld [vmem:[%s10810_s8 + $0x338] sm:$0xff]  }
 0x8cf   : > { %v8578_v7 = vld [vmem:[%s10810_s8 + $0x3b0] sm:$0xff]  }
 0x8d0   : > { %7825 = vmatpush3.bf16.msra.mxu0 %v8545_v11  ;;  %v2202_v11 = vmax.f32 %v2143_v5, 0.0 }
 0x8d1   : > { %7847 = vmatpush3.bf16.msra.mxu1 %v8546_v14  ;;  %7826 = vmatprep.subr.bf16.mxu0 %v8547_v15  ;;  %v2204_v14 = vmax.f32 %v9679_v47, 0.0  ;;  %v9854_v47 = vld [vmem:[%s10811_s9] sm:$0x3f] }
 0x8d2   : > { %7848 = vmatprep.subr.bf16.mxu1 %v8548_v18  ;;  %v2218_v15 = vpack.c.bf16 %v2202_v11, %v2202_v11  ;;  %v2481_v20 = vrot.slane %v9854_v47, %v9500_v32 }
 0x8d3   : > { %v2220_v17 = vpack.c.bf16 %v2204_v14, %v2204_v14 }
 0x8d4   : > { %7827 = vmatpush3.bf16.msra.mxu0 %v8549_v60 }
 0x8d5   : > { %7849 = vmatpush3.bf16.msra.mxu1 %v8550_v22  ;;  %7856 = vmatprep.subr.bf16.mxu0 %v8551_v61 }
 0x8d6   : > { %7878 = vmatprep.subr.bf16.mxu1 %v8552_v25 }
 0x8d7   : > { %3443 = vmatmul.mubr.bf16.vlgmr.msra.gmra.mrb[36].mxu0 %v2214_v39 }
 0x8d8   : > { %3483 = vmatmul.mubr.bf16.vlgmr.msra.gmra.mrb[36].mxu1 %v2216_v30  ;;  %7857 = vmatpush3.bf16.msra.mxu0 %v8553_v28 }
 0x8d9   : > { %3522 = vmatprep.mubr.bf16.mxu0 %v2219_v34  ;;  %7879 = vmatpush3.bf16.msra.mxu1 %v8554_v29 }
 0x8da   : > { %3562 = vmatprep.mubr.bf16.mxu1 %v2221_v36  ;;  %7858 = vmatprep.subr.bf16.mxu0 %v8555_v33 }
 0x8db   : > { %7880 = vmatprep.subr.bf16.mxu1 %v8556_v35 }
 0x8dc   : > { %7859 = vmatpush3.bf16.msra.mxu0 %v8557_v37 }
 0x8dd   : > { %7881 = vmatpush3.bf16.msra.mxu1 %v8558_v44  ;;  %7860 = vmatprep.subr.bf16.mxu0 %v8559_v45 }
 0x8de   : > { %7882 = vmatprep.subr.bf16.mxu1 %v8560_v42 }
 0x8e0   : > { %7861 = vmatpush3.bf16.msra.mxu0 %v8561_v48 }
 0x8e1   : > { %7883 = vmatpush3.bf16.msra.mxu1 %v8562_v49  ;;  %7862 = vmatprep.subr.bf16.mxu0 %v8563_v51 }
 0x8e2   : > { %7884 = vmatprep.subr.bf16.mxu1 %v8564_v52 }
 0x8e4   : > { %7863 = vmatpush3.bf16.msra.mxu0 %v8565_v31 }
 0x8e5   : > { %7885 = vmatpush3.bf16.msra.mxu1 %v8566_v53  ;;  %7864 = vmatprep.subr.bf16.mxu0 %v8567_v54 }
 0x8e6   : > { %7886 = vmatprep.subr.bf16.mxu1 %v8568_v55 }
 0x8e8   : > { %7865 = vmatpush3.bf16.msra.mxu0 %v8569_v56 }
 0x8e9   : > { %7887 = vmatpush3.bf16.msra.mxu1 %v8570_v57  ;;  %7866 = vmatprep.subr.bf16.mxu0 %v8571_v58 }
 0x8ea   : > { %7888 = vmatprep.subr.bf16.mxu1 %v8572_v59 }
 0x8ec   : > { %7867 = vmatpush3.bf16.msra.mxu0 %v8573_v62 }
 0x8ed   : > { %7889 = vmatpush3.bf16.msra.mxu1 %v8574_v0  ;;  %7868 = vmatprep.subr.bf16.mxu0 %v8575_v1 }
 0x8ee   : > { %7890 = vmatprep.subr.bf16.mxu1 %v8576_v24 }
 0x8f0   : > { %7869 = vmatpush3.bf16.msra.mxu0 %v8577_v50 }
 0x8f1   : > { %7891 = vmatpush3.bf16.msra.mxu1 %v8578_v7  ;;  %7870 = vmatprep.subr.bf16.mxu0 %v8579_v9 }
 0x8f2   : > { %7892 = vmatprep.subr.bf16.mxu1 %v8580_v10 }
 0x8f4   : > { %7871 = vmatpush3.bf16.msra.mxu0 %v8581_v38 }
 0x8f5   : > { %7893 = vmatpush3.bf16.msra.mxu1 %v8582_v12  ;;  %8356 = vmatprep.subr.bf16.mxu0 %v8817_v3 }
 0x8f6   : > { %8368 = vmatprep.subr.bf16.mxu1 %v8817_v3 }
 0x8f7   : > { %3523 = vmatmul.mubr.bf16.vlgmr.msra.gmra.mrb[40].mxu0 %v2218_v15 }
 0x8f8   : > { %3563 = vmatmul.mubr.bf16.vlgmr.msra.gmra.mrb[40].mxu1 %v2220_v17  ;;  %8218 = vmatprep.mubr.msk.f32.mxu0 %vm8818_vm0, %v8819_v8 }
 0x8f9   : > { %8237 = vmatprep.mubr.msk.f32.mxu1 %vm8818_vm0, %v8819_v8 }
 0x96a   : > { %v7740_v18 = vpop.f32.mrb[28].mxu0  ;;  %v7762_v19 = vpop.f32.mrb[28].mxu1 }
 0x96b   : > { %v7741_v60 = vpop.f32.mrb[29].mxu0  ;;  %v7763_v21 = vpop.f32.mrb[29].mxu1 }
 0x96c   : > { %v7742_v22 = vadd.f32 %v7741_v60, %v7740_v18  ;;  %v7764_v61 = vadd.f32 %v7763_v21, %v7762_v19  ;;  %v7743_v23 = vpop.f32.mrb[30].mxu0  ;;  %v7765_v25 = vpop.f32.mrb[30].mxu1 }
 0x96d   : > { %v7744_v26 = vpop.f32.mrb[31].mxu0  ;;  %v7766_v27 = vpop.f32.mrb[31].mxu1  ;;  %v7130_v25 = vld [vmem:[%s10805_s3 + $0x98] sm:$0xff] }
 0x96e   : > { %v3285_v28 = vadd.f32 %v7742_v22, %v2481_v20  ;;  %v7127_v22 = vld [vmem:[%s10805_s3 + $0x80] sm:$0xff] }
 0x96f   : > { %v7131_v27 = vld [vmem:[%s10805_s3 + $0xa0] sm:$0xff] }
 0x970   : > { %v3325_v39 = vadd.f32 %v7764_v61, %v3285_v28  ;;  %v7129_v61 = vld [vmem:[%s10805_s3 + $0x90] sm:$0xff] }
 0x971   : > { %v8357_v23 = vpack.c.bf16 %v7129_v61, %v7127_v22  ;;  %v7133_v28 = vld [vmem:[%s10805_s3 + $0xb0] sm:$0xff] }
 0x973   : > { %8358 = vmatpush3.bf16.msra.mxu0 %v8357_v23 }
 0x974   : > { %8359 = vmatprep.subr.bf16.mxu0 %v8817_v3 }
 0x98a   : > { %v7784_v29 = vpop.f32.mrb[32].mxu0  ;;  %v7806_v30 = vpop.f32.mrb[32].mxu1 }
 0x98b   : > { %v7785_v33 = vpop.f32.mrb[33].mxu0  ;;  %v7807_v34 = vpop.f32.mrb[33].mxu1 }
 0x98c   : > { %v7786_v35 = vadd.f32 %v7785_v33, %v7784_v29  ;;  %v7808_v36 = vadd.f32 %v7807_v34, %v7806_v30  ;;  %v7787_v37 = vpop.f32.mrb[34].mxu0  ;;  %v7809_v44 = vpop.f32.mrb[34].mxu1  ;;  %v8360_v29 = vpack.c.bf16 %v7133_v28, %v7131_v27  ;;  %v7134_v30 = vld [vmem:[%s10805_s3 + $0xb8] sm:$0xff]  ;;  %v7135_v34 = vld [vmem:[%s10805_s3 + $0xc0] sm:$0xff] }
 0x98d   : > { %v7788_v45 = vpop.f32.mrb[35].mxu0  ;;  %v7810_v42 = vpop.f32.mrb[35].mxu1  ;;  %v7138_v44 = vld [vmem:[%s10805_s3 + $0xd8] sm:$0xff] }
 0x98e   : > { %v3365_v48 = vadd.f32 %v7786_v35, %v3325_v39  ;;  %v7132_v39 = vld [vmem:[%s10805_s3 + $0xa8] sm:$0xff]  ;;  %8361 = vmatpush3.bf16.msra.mxu0 %v8360_v29  ;;  %v7137_v35 = vld [vmem:[%s10805_s3 + $0xd0] sm:$0xff]  ;;  %v7139_v42 = vld [vmem:[%s10805_s3 + $0xe0] sm:$0xff] }
 0x98f   : > { %v8372_v33 = vpack.c.bf16 %v7134_v30, %v7132_v39  ;;  %8362 = vmatprep.subr.bf16.mxu0 %v8817_v3  ;;  %v8363_v37 = vpack.c.bf16 %v7137_v35, %v7135_v34 }
 0x990   : > { %v3405_v49 = vadd.f32 %v7808_v36, %v3365_v48  ;;  %v7136_v36 = vld [vmem:[%s10805_s3 + $0xc8] sm:$0xff]  ;;  %v7141_v48 = vld [vmem:[%s10805_s3 + $0xf0] sm:$0xff] }
 0x991   : > { %v8375_v45 = vpack.c.bf16 %v7138_v44, %v7136_v36 }
 0x992   : > { %8364 = vmatpush3.bf16.msra.mxu0 %v8363_v37 }
 0x993   : > { %8365 = vmatprep.subr.bf16.mxu0 %v8817_v3 }
 0x9aa   : > { %v7828_v51 = vpop.f32.mrb[36].mxu0 }
 0x9ab   : > { %v7850_v52 = vpop.f32.mrb[36].mxu1  ;;  %v7829_v31 = vpop.f32.mrb[37].mxu0 }
 0x9ac   : > { %v7830_v53 = vadd.f32 %v7829_v31, %v7828_v51  ;;  %v7851_v54 = vpop.f32.mrb[37].mxu1  ;;  %v7831_v55 = vpop.f32.mrb[38].mxu0  ;;  %v8366_v51 = vpack.c.bf16 %v7141_v48, %v7139_v42 }
 0x9ad   : > { %v7852_v56 = vadd.f32 %v7851_v54, %v7850_v52  ;;  %v7853_v57 = vpop.f32.mrb[38].mxu1  ;;  %v7832_v58 = vpop.f32.mrb[39].mxu0  ;;  %v7142_v52 = vld [vmem:[%s10805_s3 + $0xf8] sm:$0xff] }
 0x9ae   : > { %v3445_v59 = vadd.f32 %v7830_v53, %v3405_v49  ;;  %v7854_v62 = vpop.f32.mrb[39].mxu1  ;;  %v7140_v49 = vld [vmem:[%s10805_s3 + $0xe8] sm:$0xff]  ;;  %8367 = vmatpush3.bf16.msra.mxu0 %v8366_v51 }
 0x9af   : > { %v8378_v31 = vpack.c.bf16 %v7142_v52, %v7140_v49  ;;  %8240 = vmatprep.subr.mxu0 %v8819_v8 }
 0x9b0   : > { %v3485_v63 = vadd.f32 %v7852_v56, %v3445_v59  ;;  %v3587_v56 = vrot.slane %v9854_v47, %v9575_v40  ;;  %v3592_v59 = vrot.slane %v9854_v47, %v9529_v2 }
 0x9ca   : > { %v7872_v0 = vpop.f32.mrb[40].mxu0 }
 0x9cb   : > { %v7894_v1 = vpop.f32.mrb[40].mxu1  ;;  %v7873_v24 = vpop.f32.mrb[41].mxu0 }
 0x9cc   : > { %v7874_v50 = vadd.f32 %v7873_v24, %v7872_v0  ;;  %v7895_v5 = vpop.f32.mrb[41].mxu1  ;;  %v7875_v7 = vpop.f32.mrb[42].mxu0  ;;  %v7126_v0 = vld [vmem:[%s10806_s4 + $0x2] sm:$0x3] }
 0x9cd   : > { %v7896_v9 = vadd.f32 %v7895_v5, %v7894_v1  ;;  %v7897_v10 = vpop.f32.mrb[42].mxu1  ;;  %v7876_v38 = vpop.f32.mrb[43].mxu0  ;;  %v3619_v47 = vrot.slane %v7126_v0, %v9043_v43  ;;  %v3697_v24 = vrot.slane %v7126_v0, %v9050_v46 }
 0x9ce   : > { %v3525_v11 = vadd.f32 %v7874_v50, %v3485_v63  ;;  %v7898_v12 = vpop.f32.mrb[43].mxu1 }
 0x9d0   : > { %v3565_v14 = vadd.f32 %v7896_v9, %v3525_v11 }
 0x9d2   : > { %v3570_v15 = vadd.f32 %v3565_v14, %v9244_v16  ;;  %v7128_v16 = vld [vmem:[%s10805_s3 + $0x88] sm:$0xff] }
 0x9d3   : > { %v8369_v26 = vpack.c.bf16 %v7130_v25, %v7128_v16 }
 0x9d4   : > { %v3571_v17 = vsel %vm524_vm5, %v3570_v15, 0.0 }
 0x9d5   : > { %3572 = vadd.xlane.f32.xlu0 %v3571_v17  ;;  %8370 = vmatpush3.bf16.msra.mxu1 %v8369_v26 }
 0x9d6   : > { %8371 = vmatprep.subr.bf16.mxu1 %v8817_v3 }
 0x9d9   : > { %8373 = vmatpush3.bf16.msra.mxu1 %v8372_v33 }
 0x9da   : > { %8374 = vmatprep.subr.bf16.mxu1 %v8817_v3 }
 0x9dd   : > { %8376 = vmatpush3.bf16.msra.mxu1 %v8375_v45 }
 0x9de   : > { %8377 = vmatprep.subr.bf16.mxu1 %v8817_v3 }
 0x9e1   : > { %8379 = vmatpush3.bf16.msra.mxu1 %v8378_v31 }
 0x9e2   : > { %8260 = vmatprep.subr.mxu1 %v8819_v8 }
 0xa62   : > { %v3573_v18 = vpop.xlane.xlu0 %3572 }
 0xa63   : > { %v3574_v19 = vmul.f32 0.015625, %v3573_v18 }
 0xa65   : > { %v3575_v20 = vsub.f32 %v3570_v15, %v3574_v19 }
 0xa67   : > { %v3576_v60 = vmul.f32 %v3575_v20, %v3575_v20 }
 0xa69   : > { %v3577_v21 = vsel %vm524_vm5, %v3576_v60, 0.0 }
 0xa6a   : > { %3578 = vadd.xlane.f32.xlu1 %v3577_v21 }
 0xaf7   : > { %v3579_v53 = vpop.xlane.xlu1 %3578 }
 0xaf8   : > { %v3580_v54 = vmul.f32 0.015625, %v3579_v53 }
 0xafa   : > { %v3581_v55 = vadd.f32 1e-05, %v3580_v54 }
 0xafc   : > { %8729 = vrsqrt.f32 %v3581_v55 }
 0xb06   : > { %v8730_v57 = vpop.eup %8729 }
 0xb07   : > { %v3583_v58 = vmul.f32 %v8730_v57, %v3575_v20 }
 0xb09   : > { %v3588_v62 = vmul.f32 %v3587_v56, %v3583_v58 }
 0xb0b   : > { %v9921_v63 = vadd.f32 %v3592_v59, %v3588_v62 }
 0xb0d   : > { %8219 = vmatmul.mubr.msk.f32.vlgmr.msra.gmra.mrb[44].mxu0 %vm524_vm5, %v9921_v63  ;;  %8238 = vmatmul.mubr.msk.f32.vlgmr.msra.gmra.mrb[10].mxu1 %vm524_vm5, %v9921_v63 }
 0xb0e   : > { %8242 = vmatprep.mubr.msk.f32.mxu0 %vm8818_vm0, %v8819_v8  ;;  %8262 = vmatprep.mubr.msk.f32.mxu1 %vm8818_vm0, %v8819_v8 }
 0xbe0   : > { %v3690_v1 = vpop.f32.mrb[44].mxu0  ;;  %v3765_v50 = vpop.f32.mrb[10].mxu1 }
 0xbe1   : > { %v9936_v5 = vadd.f32 %v3690_v1, %v3619_v47  ;;  %v8220_v7 = vpop.f32.mrb[45].mxu0  ;;  %v8239_v9 = vpop.f32.mrb[11].mxu1  ;;  %v3766_v10 = vadd.f32 %v3765_v50, %v3697_v24 }
 0xbe3   : > { %3936 = vrot.lane.b32.xlu1 %v9936_v5, %s10833_s19  ;;  %8241 = vmatpush3.xpose.msk.msra.mxu0 %vm599_vm6, %v9936_v5 }
 0xbe4   : > { %8245 = vmatprep.subr.mxu0 %v8819_v8 }
 0xbe6   : > { %8243 = vmatmul.mubr.msk.f32.vlgmr.msra.gmra.mrb[46].mxu0 %vm599_vm6, %v3766_v10 }
 0xbe7   : > { %3934 = vrot.lane.b32.xlu1 %v3766_v10, %s10833_s19  ;;  %8247 = vmatprep.mubr.msk.f32.mxu0 %vm8818_vm0, %v8819_v8 }
 0xc55   : > { %v3937_v22 = vpop.permute.xlu1 %3936 }
 0xc59   : > { %v3935_v61 = vpop.permute.xlu1 %3934 }
 0xcb9   : > { %v3841_v38 = vpop.f32.mrb[46].mxu0 }
 0xcba   : > { %v3845_v11 = vmul.f32 0.25, %v3841_v38  ;;  %v8244_v12 = vpop.f32.mrb[47].mxu0 }
 0xcbc   : > { %v3847_v14 = vsel %vm3846_vm10, %v3845_v11, -inf }
 0xcbd   : > { %3848 = vmax.xlane.f32.xlu0 %v3847_v14 }
 0xcd3   : > { %3858 = vrot.lane.b32.xlu0 %v9936_v5, %s10834_s20 }
 0xcd7   : > { %4102 = vrot.lane.b32.xlu0 %v9936_v5, %s10835_s26 }
 0xcdb   : > { %4268 = vrot.lane.b32.xlu0 %v9936_v5, %s10836_s28 }
 0xd4a   : > { %v3849_v15 = vpop.xlane.xlu0 %3848 }
 0xd4b   : > { %v3850_v17 = vsub.f32 %v3845_v11, %v3849_v15 }
 0xd4d   : > { %v3851_v18 = vmul.f32 1.442695, %v3850_v17 }
 0xd4e   : > { %v3859_v19 = vpop.permute.xlu0 %3858 }
 0xd4f   : > { %8731 = vpow2.f32 %v3851_v18  ;;  %8246 = vmatpush3.msra.mxu0 %v3859_v19 }
 0xd50   : > { %8250 = vmatprep.subr.mxu0 %v8819_v8 }
 0xd52   : > { %v4103_v20 = vpop.permute.xlu0 %4102 }
 0xd53   : > { %8261 = vmatpush3.xpose.msk.msra.mxu1 %vm599_vm6, %v4103_v20  ;;  %v7157_v20 = vld [vmem:[%s10807_s5 + $0x40] sm:$0xff] }
 0xd54   : > { %8270 = vmatprep.subr.mxu1 %v8819_v8 }
 0xd56   : > { %v4269_v25 = vpop.permute.xlu0 %4268 }
 0xd59   : > { %v8732_v60 = vpop.eup %8731 }
 0xd5a   : > { %v3853_v21 = vsel %vm3846_vm10, %v8732_v60, 0.0 }
 0xd5b   : > { %3854 = vadd.xlane.f32.xlu1 %v3853_v21  ;;  %v7159_v21 = vld [vmem:[%s10807_s5 + $0x50] sm:$0xff] }
 0xd6c   : > { %4100 = vrot.lane.b32.xlu1 %v3766_v10, %s10835_s26  ;;  %s10760_s26 = scalar_lea.hbm %s10814_s12, %s7689_s2 }
 0xd70   : > { %4266 = vrot.lane.b32.xlu1 %v3766_v10, %s10836_s28 }
 0xde8   : > { %v3855_v16 = vpop.xlane.xlu1 %3854 }
 0xde9   : > { %8733 = vrcp.f32 %v3855_v16 }
 0xdec   : > { %v4101_v23 = vpop.permute.xlu1 %4100 }
 0xded   : > { %8263 = vmatmul.mubr.msk.f32.vlgmr.msra.gmra.mrb[44].mxu1 %vm599_vm6, %v4101_v23  ;;  %v7161_v23 = vld [vmem:[%s10807_s5 + $0x60] sm:$0xff] }
 0xdee   : > { %8271 = vmatpush3.xpose.msk.msra.mxu1 %vm599_vm6, %v4269_v25  ;;  %8272 = vmatprep.mubr.msk.f32.mxu1 %vm8818_vm0, %v8819_v8  ;;  %v7162_v25 = vld [vmem:[%s10807_s5 + $0x68] sm:$0xff] }
 0xdef   : > { %8380 = vmatprep.subr.bf16.mxu1 %v8817_v3 }
 0xdf0   : > { %v4267_v26 = vpop.permute.xlu1 %4266 }
 0xdf1   : > { %8273 = vmatmul.mubr.msk.f32.vlgmr.msra.gmra.mrb[46].mxu1 %vm599_vm6, %v4267_v26  ;;  %v8387_v26 = vpack.c.bf16 %v7162_v25, %v7161_v23  ;;  %v7214_v23 = vld [vmem:[%s10808_s6 + $0x380] sm:$0xff] }
 0xdf2   : > { %8296 = vmatprep.mubr.msk.f32.mxu1 %vm8818_vm0, %v8819_v8  ;;  %v7222_v25 = vld [vmem:[%s10808_s6 + $0x3c0] sm:$0xff] }
 0xdf3   : > { %v8734_v27 = vpop.eup %8733 }
 0xdf4   : > { %v3857_v28 = vmul.f32 %v8734_v27, %v8732_v60  ;;  %v7158_v60 = vld [vmem:[%s10807_s5 + $0x48] sm:$0xff]  ;;  %v7163_v27 = vld [vmem:[%s10807_s5 + $0x70] sm:$0xff] }
 0xdf6   : > { %8248 = vmatmul.mubr.msk.f32.vlgmr.msra.gmra.mrb[48].mxu0 %vm677_vm7, %v3857_v28  ;;  %v7164_v28 = vld [vmem:[%s10807_s5 + $0x78] sm:$0xff] }
 0xdf7   : > { %8251 = vmatpush3.xpose.msk.msra.mxu0 %vm599_vm6, %v3937_v22  ;;  %8252 = vmatprep.mubr.msk.f32.mxu0 %vm8818_vm0, %v8819_v8  ;;  %v8381_v22 = vpack.c.bf16 %v7158_v60, %v7157_v20  ;;  %v7199_v20 = vld [vmem:[%s10808_s6 + $0x308] sm:$0xff] }
 0xdf8   : > { %8255 = vmatprep.subr.mxu0 %v8819_v8 }
 0xdf9   : > { %8382 = vmatpush3.bf16.msra.mxu1 %v8381_v22 }
 0xdfa   : > { %8253 = vmatmul.mubr.msk.f32.vlgmr.msra.gmra.mrb[50].mxu0 %vm599_vm6, %v3935_v61  ;;  %v7160_v61 = vld [vmem:[%s10807_s5 + $0x58] sm:$0xff]  ;;  %8383 = vmatprep.subr.bf16.mxu1 %v8817_v3 }
 0xdfb   : > { %8257 = vmatprep.mubr.msk.f32.mxu0 %vm8818_vm0, %v8819_v8  ;;  %v8384_v16 = vpack.c.bf16 %v7160_v61, %v7159_v21  ;;  %v7207_v21 = vld [vmem:[%s10808_s6 + $0x348] sm:$0xff] }
 0xdfc   : > { %v7266_v61 = vcombine.low %v7199_v20, %v7207_v21 }
 0xdfd   : > { %8385 = vmatpush3.bf16.msra.mxu1 %v8384_v16  ;;  %v7267_v16 = vcombine.high %v7199_v20, %v7207_v21  ;;  %v7178_v21 = vld [vmem:[%s10808_s6 + $0x260] sm:$0xff] }
 0xdfe   : > { %8386 = vmatprep.subr.bf16.mxu1 %v8817_v3 }
 0xe01   : > { %8388 = vmatpush3.bf16.msra.mxu1 %v8387_v26  ;;  %v7215_v26 = vld [vmem:[%s10808_s6 + $0x388] sm:$0xff] }
 0xe02   : > { %8389 = vmatprep.subr.bf16.mxu1 %v8817_v3 }
 0xec0   : > { %v4174_v39 = vpop.f32.mrb[44].mxu1 }
 0xec1   : > { %v4178_v29 = vmul.f32 0.25, %v4174_v39  ;;  %v8264_v30 = vpop.f32.mrb[45].mxu1  ;;  %v8390_v39 = vpack.c.bf16 %v7164_v28, %v7163_v27  ;;  %v7281_v27 = vcombine.high %v7214_v23, %v7222_v25  ;;  %v7223_v28 = vld [vmem:[%s10808_s6 + $0x3c8] sm:$0xff] }
 0xec3   : > { %v4179_v33 = vsel %vm3846_vm10, %v4178_v29, -inf  ;;  %8391 = vmatpush3.bf16.msra.mxu1 %v8390_v39  ;;  %v7280_v39 = vcombine.low %v7214_v23, %v7222_v25 }
 0xec4   : > { %4180 = vmax.xlane.f32.xlu1 %v4179_v33  ;;  %v4340_v34 = vpop.f32.mrb[46].mxu1 }
 0xec5   : > { %v8274_v35 = vpop.f32.mrb[47].mxu1  ;;  %v4344_v48 = vmul.f32 0.25, %v4340_v34 }
 0xec7   : > { %v4345_v51 = vsel %vm3846_vm10, %v4344_v48, -inf }
 0xec9   : > { %v9977_v36 = vpop.f32.mrb[48].mxu0 }
 0xeca   : > { %v8249_v37 = vpop.f32.mrb[49].mxu0 }
 0xecd   : > { %v4008_v44 = vpop.f32.mrb[50].mxu0 }
 0xece   : > { %v4012_v45 = vmul.f32 0.25, %v4008_v44  ;;  %v8254_v42 = vpop.f32.mrb[51].mxu0 }
 0xed0   : > { %v4013_v49 = vsel %vm3846_vm10, %v4012_v45, -inf }
 0xed1   : > { %4014 = vmax.xlane.f32.xlu0 %v4013_v49 }
 0xed5   : > { %4346 = vmax.xlane.f32.xlu0 %v4345_v51 }
 0xf51   : > { %v4181_v52 = vpop.xlane.xlu1 %4180 }
 0xf52   : > { %v4182_v31 = vsub.f32 %v4178_v29, %v4181_v52  ;;  %v10039_v52 = vld [vmem:[%s10811_s9 + $0x8] sm:$0x3f] }
 0xf54   : > { %v4183_v53 = vmul.f32 1.442695, %v4182_v31 }
 0xf56   : > { %8735 = vpow2.f32 %v4183_v53 }
 0xf5e   : > { %v4015_v54 = vpop.xlane.xlu0 %4014 }
 0xf5f   : > { %v4016_v56 = vsub.f32 %v4012_v45, %v4015_v54 }
 0xf60   : > { %v8736_v55 = vpop.eup %8735 }
 0xf61   : > { %v4185_v57 = vsel %vm3846_vm10, %v8736_v55, 0.0  ;;  %v4017_v62 = vmul.f32 1.442695, %v4016_v56 }
 0xf62   : > { %4186 = vadd.xlane.f32.xlu1 %v4185_v57  ;;  %v4347_v58 = vpop.xlane.xlu0 %4346 }
 0xf63   : > { %v4348_v59 = vsub.f32 %v4344_v48, %v4347_v58 }
 0xf65   : > { %v4349_v0 = vmul.f32 1.442695, %v4348_v59 }
 0xf67   : > { %8737 = vpow2.f32 %v4349_v0  ;;  %v7166_v0 = vld [vmem:[%s10808_s6 + $0x200] sm:$0xff] }
 0xf68   : > { %8739 = vpow2.f32 %v4017_v62 }
 0xf71   : > { %v8738_v47 = vpop.eup %8737 }
 0xf72   : > { %v4351_v1 = vsel %vm3846_vm10, %v8738_v47, 0.0  ;;  %v8740_v24 = vpop.eup %8739 }
 0xf73   : > { %4024 = vrot.lane.b32.xlu1 %v9936_v5, %s8827_s30  ;;  %4352 = vadd.xlane.f32.xlu0 %v4351_v1  ;;  %v4019_v50 = vsel %vm3846_vm10, %v8740_v24, 0.0 }
 0xf77   : > { %4356 = vrot.lane.b32.xlu1 %v9936_v5, %s10837_s17  ;;  %4020 = vadd.xlane.f32.xlu0 %v4019_v50 }
 0xf8d   : > { %4190 = vrot.lane.b32.xlu0 %v9936_v5, %s10838_s18 }
 0xfef   : > { %v4187_v7 = vpop.xlane.xlu1 %4186 }
 0xff3   : > { %v4025_v9 = vpop.permute.xlu1 %4024 }
 0xff4   : > { %8256 = vmatpush3.msra.mxu0 %v4025_v9 }
 0xff5   : > { %8265 = vmatprep.subr.mxu0 %v8819_v8 }
 0xff7   : > { %v4357_v18 = vpop.permute.xlu1 %4356 }
0x1000   : > { %v4353_v10 = vpop.xlane.xlu0 %4352 }
0x1004   : > { %v4021_v38 = vpop.xlane.xlu0 %4020 }
0x1005   : > { %8741 = vrcp.f32 %v4021_v38  ;;  %v7190_v38 = vld [vmem:[%s10808_s6 + $0x2c0] sm:$0xff] }
0x1006   : > { %8743 = vrcp.f32 %v4187_v7 }
0x1007   : > { %8745 = vrcp.f32 %v4353_v10  ;;  %v7182_v10 = vld [vmem:[%s10808_s6 + $0x280] sm:$0xff] }
0x1008   : > { %v4191_v15 = vpop.permute.xlu0 %4190 }
0x100f   : > { %v8742_v11 = vpop.eup %8741 }
0x1010   : > { %v4023_v12 = vmul.f32 %v8742_v11, %v8740_v24  ;;  %v8744_v14 = vpop.eup %8743  ;;  %v7175_v24 = vld [vmem:[%s10808_s6 + $0x248] sm:$0xff] }
0x1011   : > { %v4189_v5 = vmul.f32 %v8744_v14, %v8736_v55  ;;  %v8746_v17 = vpop.eup %8745  ;;  %v7183_v11 = vld [vmem:[%s10808_s6 + $0x288] sm:$0xff] }
0x1012   : > { %8258 = vmatmul.mubr.msk.f32.vlgmr.msra.gmra.mrb[52].mxu0 %vm677_vm7, %v4023_v12  ;;  %v4355_v19 = vmul.f32 %v8746_v17, %v8738_v47  ;;  %v7167_v47 = vld [vmem:[%s10808_s6 + $0x208] sm:$0xff]  ;;  %v7249_v12 = vcombine.high %v7182_v10, %v7190_v38 }
0x1013   : > { %8266 = vmatpush3.msra.mxu0 %v4191_v15  ;;  %8267 = vmatprep.mubr.msk.f32.mxu0 %vm8818_vm0, %v8819_v8  ;;  %v7234_v7 = vcombine.low %v7167_v47, %v7175_v24  ;;  %v7235_v9 = vcombine.high %v7167_v47, %v7175_v24  ;;  %v7191_v14 = vld [vmem:[%s10808_s6 + $0x2c8] sm:$0xff]  ;;  %v7248_v15 = vcombine.low %v7182_v10, %v7190_v38  ;;  %v7208_v24 = vld [vmem:[%s10808_s6 + $0x350] sm:$0xff] }
0x1014   : > { %8275 = vmatprep.subr.mxu0 %v8819_v8  ;;  %v7251_v17 = vcombine.high %v7183_v11, %v7191_v14 }
0x1015   : > { %5066 = vmatprep.subr.bf16.mxu1 %v7235_v9 }
0x1016   : > { %8268 = vmatmul.mubr.msk.f32.vlgmr.msra.gmra.mrb[54].mxu0 %vm677_vm7, %v4189_v5  ;;  %v7250_v5 = vcombine.low %v7183_v11, %v7191_v14  ;;  %v7224_v14 = vld [vmem:[%s10808_s6 + $0x3d0] sm:$0xff] }
0x1017   : > { %8276 = vmatpush3.msra.mxu0 %v4357_v18  ;;  %8277 = vmatprep.mubr.msk.f32.mxu0 %vm8818_vm0, %v8819_v8  ;;  %v7198_v18 = vld [vmem:[%s10808_s6 + $0x300] sm:$0xff] }
0x101a   : > { %8278 = vmatmul.mubr.msk.f32.vlgmr.msra.gmra.mrb[56].mxu0 %vm677_vm7, %v4355_v19  ;;  %v7206_v19 = vld [vmem:[%s10808_s6 + $0x340] sm:$0xff] }
0x101b   : > { %5057 = vmatprep.mubr.bf16.mxu0 %v8828_v6  ;;  %v7265_v60 = vcombine.high %v7198_v18, %v7206_v19  ;;  %v7264_v22 = vcombine.low %v7198_v18, %v7206_v19 }
0x10e5   : > { %v4096_v29 = vpop.f32.mrb[52].mxu0 }
0x10e6   : > { %4433 = vrot.lane.b32.xlu1 %v4096_v29, %s10837_s17  ;;  %v8259_v30 = vpop.f32.mrb[53].mxu0  ;;  %v7282_v29 = vcombine.low %v7215_v26, %v7223_v28 }
0x10e7   : > { %v7283_v30 = vcombine.high %v7215_v26, %v7223_v28  ;;  %v7194_v28 = vld [vmem:[%s10808_s6 + $0x2e0] sm:$0xff] }
0x10e9   : > { %v4262_v33 = vpop.f32.mrb[54].mxu0 }
0x10ea   : > { %4437 = vrot.lane.b32.xlu0 %v4262_v33, %s10838_s18  ;;  %v8269_v34 = vpop.f32.mrb[55].mxu0  ;;  %v7168_v33 = vld [vmem:[%s10808_s6 + $0x210] sm:$0xff]  ;;  %s402_s18 = sand.u32 1, %s8807_s22  }
0x10eb   : > { %v7176_v34 = vld [vmem:[%s10808_s6 + $0x250] sm:$0xff]  ;;  %s403_s29 = scalar_lea.vmem [#allocation2], %s402_s18  ;;  %s6837_s28 = scalar_lea.sflag [#allocation3], %s402_s18 }
0x10ec   : > { %s6849_s15 = sshll.u32 %s403_s29, 4  ;;  %s10762_s15 = int_to_ptr.vmem [resolvable:$true] %s6849_s15 }
0x10ed   : > { %v4428_v35 = vpop.f32.mrb[56].mxu0  ;;  %s8753_s17 = scalar_lea.vmem %s10762_s15, 16 }
0x10ee   : > { %4441 = vrot.lane.b32.xlu1 %v4428_v35, %s8827_s30  ;;  %v8279_v37 = vpop.f32.mrb[57].mxu0  ;;  %v7169_v35 = vld [vmem:[%s10808_s6 + $0x218] sm:$0xff]  ;;  %p8754_p11 = scmp.ne.s32.totalorder %s10762_s15, %s8753_s17  ;;  %s8757_s30 = sshll.u32 %s8829_s25, 4  ;;  %s8758_s30 = int_to_ptr.vmem [resolvable:$false] %s8757_s30 }
0x10ef   : > { %v7236_v37 = vcombine.low %v7168_v33, %v7176_v34  ;;  %s8759_s16 = scalar_lea.vmem %s8758_s30, 32  ;;  %p8760_p0 = scmp.lt.s32.totalorder %s10762_s15, %s8758_s30 }
0x10f0   : > { %p8755_p12 = pnand %p8754_p11, %p8933_p5  ;;  %p8761_p1 = scmp.lt.s32.totalorder %s8759_s16, %s8753_s17 }
0x10f2   : > { %p8756_p13 = pneg %p8755_p12  ;;  %p8762_p2 = por %p8761_p1, %p8760_p0 }
0x10f4   : > { %p8763_p3 = pnand %p8762_p2, %p8756_p13 }
0x1158   : > { %v4434_v44 = vpop.permute.xlu1 %4433 }
0x1159   : > { %v4444_v42 = vsel %vm599_vm6, %v9977_v36, %v4434_v44  ;;  %v7237_v44 = vcombine.high %v7168_v33, %v7176_v34 }
0x115c   : > { %v4438_v45 = vpop.permute.xlu0 %4437 }
0x115d   : > { %v4445_v48 = vsel %vm1276_vm8, %v4444_v42, %v4438_v45  ;;  %v7177_v45 = vld [vmem:[%s10808_s6 + $0x258] sm:$0xff] }
0x115e   : > { %v7238_v42 = vcombine.low %v7169_v35, %v7177_v45 }
0x1160   : > { %v4442_v49 = vpop.permute.xlu1 %4441 }
0x1161   : > { %v4446_v51 = vsel %vm1278_vm9, %v4445_v48, %v4442_v49  ;;  %v7239_v48 = vcombine.high %v7169_v35, %v7177_v45  ;;  %v7203_v45 = vld [vmem:[%s10808_s6 + $0x328] sm:$0xff] }
0x1162   : > { %8297 = vmatmul.mubr.msk.f32.vlgmr.msra.gmra.mrb[48].mxu1 %vm524_vm5, %v4446_v51 }
0x1163   : > { %5098 = vmatprep.mubr.bf16.mxu1 %v8828_v6  ;;  %5067 = vmatpush1.bf16.msra.mxu1 %v7234_v7  ;;  %v7209_v7 = vld [vmem:[%s10808_s6 + $0x358] sm:$0xff] }
0x1164   : > { %5068 = vmatprep.subr.bf16.mxu1 %v7251_v17 }
0x1167   : > { %5069 = vmatpush1.bf16.msra.mxu1 %v7250_v5  ;;  %v7225_v5 = vld [vmem:[%s10808_s6 + $0x3d8] sm:$0xff] }
0x1168   : > { %5070 = vmatprep.subr.bf16.mxu1 %v7267_v16 }
0x116b   : > { %5071 = vmatpush1.bf16.msra.mxu1 %v7266_v61  ;;  %v7179_v61 = vld [vmem:[%s10808_s6 + $0x268] sm:$0xff] }
0x116c   : > { %5072 = vmatprep.subr.bf16.mxu1 %v7283_v30 }
0x116f   : > { %5073 = vmatpush1.bf16.msra.mxu1 %v7282_v29  ;;  %v7195_v29 = vld [vmem:[%s10808_s6 + $0x2e8] sm:$0xff] }
0x1170   : > { %5148 = vmatprep.subr.bf16.mxu1 %v7239_v48 }
0x1235   : > { %v4525_v31 = vpop.f32.mrb[48].mxu1 }
0x1236   : > { %v4526_v53 = vadd.f32 %v10039_v52, %v4525_v31  ;;  %v8298_v54 = vpop.f32.mrb[49].mxu1 }
0x1238   : > { %v4529_v36 = vadd.f32 %v4526_v53, %v9921_v63  ;;  %v7174_v63 = vld [vmem:[%s10808_s6 + $0x240] sm:$0xff]  ;;  %v4545_v53 = vrot.slane %v10039_v52, 1 }
0x1239   : > { %v7233_v1 = vcombine.high %v7166_v0, %v7174_v63  ;;  %v7232_v50 = vcombine.low %v7166_v0, %v7174_v63  ;;  %v7193_v0 = vld [vmem:[%s10808_s6 + $0x2d8] sm:$0xff] }
0x123a   : > { %v4531_v55 = vsel %vm4530_vm11, %v4529_v36, 0.0 }
0x123b   : > { %4532 = vadd.xlane.f32.xlu0 %v4531_v55  ;;  %5025 = vmatprep.subr.bf16.mxu0 %v7233_v1  ;;  %v7200_v1 = vld [vmem:[%s10808_s6 + $0x310] sm:$0xff] }
0x123c   : > { %5026 = vmatpush1.bf16.msra.mxu0 %v7232_v50  ;;  %v7201_v50 = vld [vmem:[%s10808_s6 + $0x318] sm:$0xff]  ;;  %v7269_v38 = vcombine.high %v7200_v1, %v7208_v24  ;;  %v7268_v17 = vcombine.low %v7200_v1, %v7208_v24 }
0x123d   : > { %5027 = vmatprep.subr.bf16.mxu0 %v7249_v12  ;;  %v7271_v11 = vcombine.high %v7201_v50, %v7209_v7  ;;  %v7216_v12 = vld [vmem:[%s10808_s6 + $0x390] sm:$0xff]  ;;  %v7270_v18 = vcombine.low %v7201_v50, %v7209_v7  ;;  %v7181_v1 = vld [vmem:[%s10808_s6 + $0x278] sm:$0xff] }
0x123e   : > { %v7285_v19 = vcombine.high %v7216_v12, %v7224_v14  ;;  %v7284_v16 = vcombine.low %v7216_v12, %v7224_v14  ;;  %v7197_v12 = vld [vmem:[%s10808_s6 + $0x2f8] sm:$0xff] }
0x1240   : > { %5028 = vmatpush1.bf16.msra.mxu0 %v7248_v15  ;;  %v7217_v15 = vld [vmem:[%s10808_s6 + $0x398] sm:$0xff] }
0x1241   : > { %5029 = vmatprep.subr.bf16.mxu0 %v7265_v60  ;;  %v7287_v20 = vcombine.high %v7217_v15, %v7225_v5  ;;  %v7170_v60 = vld [vmem:[%s10808_s6 + $0x220] sm:$0xff]  ;;  %v7286_v23 = vcombine.low %v7217_v15, %v7225_v5 }
0x1242   : > { %v7241_v25 = vcombine.high %v7170_v60, %v7178_v21  ;;  %v7240_v30 = vcombine.low %v7170_v60, %v7178_v21  ;;  %v7213_v60 = vld [vmem:[%s10808_s6 + $0x378] sm:$0xff] }
0x1244   : > { %5030 = vmatpush1.bf16.msra.mxu0 %v7264_v22  ;;  %v7171_v22 = vld [vmem:[%s10808_s6 + $0x228] sm:$0xff] }
0x1245   : > { %5031 = vmatprep.subr.bf16.mxu0 %v7281_v27  ;;  %v7243_v26 = vcombine.high %v7171_v22, %v7179_v61  ;;  %v7186_v27 = vld [vmem:[%s10808_s6 + $0x2a0] sm:$0xff]  ;;  %v7242_v33 = vcombine.low %v7171_v22, %v7179_v61 }
0x1246   : > { %v7257_v34 = vcombine.high %v7186_v27, %v7194_v28  ;;  %v7256_v48 = vcombine.low %v7186_v27, %v7194_v28  ;;  %v7229_v27 = vld [vmem:[%s10808_s6 + $0x3f8] sm:$0xff] }
0x1248   : > { %5032 = vmatpush1.bf16.msra.mxu0 %v7280_v39  ;;  %v7187_v39 = vld [vmem:[%s10808_s6 + $0x2a8] sm:$0xff] }
0x1249   : > { %5107 = vmatprep.subr.bf16.mxu0 %v7237_v44  ;;  %v7259_v35 = vcombine.high %v7187_v39, %v7195_v29  ;;  %v7210_v44 = vld [vmem:[%s10808_s6 + $0x360] sm:$0xff] }
0x12c8   : > { %v4533_v56 = vpop.xlane.xlu0 %4532 }
0x12c9   : > { %v4534_v57 = vmul.f32 0.015625, %v4533_v56 }
0x12cb   : > { %v10044_v58 = vsub.f32 %v4529_v36, %v4534_v57  ;;  %v4548_v36 = vrot.slane %v10039_v52, 2  ;;  %v7184_v57 = vld [vmem:[%s10808_s6 + $0x290] sm:$0xff] }
0x12cd   : > { %v4536_v59 = vmul.f32 %v10044_v58, %v10044_v58 }
0x12cf   : > { %v4537_v62 = vsel %vm4530_vm11, %v4536_v59, 0.0  ;;  %v7192_v59 = vld [vmem:[%s10808_s6 + $0x2d0] sm:$0xff] }
0x12d0   : > { %4538 = vadd.xlane.f32.xlu1 %v4537_v62  ;;  %v7185_v62 = vld [vmem:[%s10808_s6 + $0x298] sm:$0xff]  ;;  %v7253_v63 = vcombine.high %v7184_v57, %v7192_v59  ;;  %v7252_v9 = vcombine.low %v7184_v57, %v7192_v59 }
0x12d1   : > { %v7255_v47 = vcombine.high %v7185_v62, %v7193_v0  ;;  %v7254_v10 = vcombine.low %v7185_v62, %v7193_v0  ;;  %v7172_v0 = vld [vmem:[%s10808_s6 + $0x230] sm:$0xff] }
0x135d   : > { %v4539_v49 = vpop.xlane.xlu1 %4538 }
0x135e   : > { %v4540_v51 = vmul.f32 0.015625, %v4539_v49  ;;  %v7258_v49 = vcombine.low %v7187_v39, %v7195_v29 }
0x1360   : > { %v4541_v31 = vadd.f32 1e-05, %v4540_v51 }
0x1362   : > { %8747 = vrsqrt.f32 %v4541_v31 }
0x136c   : > { %v8748_v54 = vpop.eup %8747 }
0x136d   : > { %v4543_v55 = vmul.f32 %v8748_v54, %v10044_v58  ;;  %v7226_v54 = vld [vmem:[%s10808_s6 + $0x3e0] sm:$0xff] }
0x136f   : > { %v4547_v56 = vmul.f32 %v4545_v53, %v4543_v55  ;;  %v7218_v53 = vld [vmem:[%s10808_s6 + $0x3a0] sm:$0xff]  ;;  %v7227_v55 = vld [vmem:[%s10808_s6 + $0x3e8] sm:$0xff] }
0x1370   : > { %v7289_v59 = vcombine.high %v7218_v53, %v7226_v54  ;;  %v7288_v24 = vcombine.low %v7218_v53, %v7226_v54  ;;  %v8594_v53 = vld [vmem:[%s10810_s8 + $0x490] sm:$0xff]   ;;  %v8595_v54 = vld [vmem:[%s10810_s8 + $0x458] sm:$0xff]  }
0x1371   : > { %v10124_v52 = vadd.f32 %v4548_v36, %v4547_v56  ;;  %v7219_v36 = vld [vmem:[%s10808_s6 + $0x3a8] sm:$0xff] }
0x1372   : > { %v7291_v62 = vcombine.high %v7219_v36, %v7227_v55  ;;  %v7290_v50 = vcombine.low %v7219_v36, %v7227_v55  ;;  %v8596_v36 = vld [vmem:[%s10810_s8 + $0x4d8] sm:$0xff]  }
0x1373   : > { %v10128_v58 = vpack.c.bf16 %v10124_v52, %v10124_v52  ;;  %v8597_v55 = vld [vmem:[%s10810_s8 + $0x418] sm:$0xff]  }
0x1375   : > { %7296 = vmatmul.mubr.msk.bf16.vlgmr.msra.gmra.mrb[60].mxu0 %vm524_vm5, %v10128_v58  ;;  %7297 = vmatmul.mubr.msk.bf16.vlgmr.msra.gmra.mrb[52].mxu1 %vm524_vm5, %v10128_v58 }
0x1376   : > { %5108 = vmatpush1.bf16.msra.mxu0 %v7236_v37  ;;  %5149 = vmatpush1.bf16.msra.mxu1 %v7238_v42  ;;  %v7202_v37 = vld [vmem:[%s10808_s6 + $0x320] sm:$0xff]  ;;  %v7211_v42 = vld [vmem:[%s10808_s6 + $0x368] sm:$0xff] }
0x1377   : > { %5109 = vmatprep.subr.bf16.mxu0 %v7253_v63  ;;  %5150 = vmatprep.subr.bf16.mxu1 %v7255_v47  ;;  %v7273_v51 = vcombine.high %v7202_v37, %v7210_v44  ;;  %v7275_v31 = vcombine.high %v7203_v45, %v7211_v42  ;;  %v7272_v56 = vcombine.low %v7202_v37, %v7210_v44  ;;  %v7180_v63 = vld [vmem:[%s10808_s6 + $0x270] sm:$0xff]  ;;  %v7173_v47 = vld [vmem:[%s10808_s6 + $0x238] sm:$0xff]  ;;  %v8585_v37 = vld [vmem:[%s10810_s8 + $0x400] sm:$0xff]  }
0x1378   : > { %5139 = vmatprep.mubr.bf16.mxu0 %v8828_v6  ;;  %5180 = vmatprep.mubr.bf16.mxu1 %v8828_v6  ;;  %v7274_v57 = vcombine.low %v7203_v45, %v7211_v42  ;;  %v7245_v7 = vcombine.high %v7172_v0, %v7180_v63  ;;  %v7244_v14 = vcombine.low %v7172_v0, %v7180_v63  ;;  %v8586_v44 = vld [vmem:[%s10810_s8 + $0x480] sm:$0xff]   ;;  %v8587_v45 = vld [vmem:[%s10810_s8 + $0x448] sm:$0xff]  }
0x1379   : > { %v7246_v15 = vcombine.low %v7173_v47, %v7181_v1  ;;  %v8588_v42 = vld [vmem:[%s10810_s8 + $0x4c8] sm:$0xff]   ;;  %v8602_v0 = vld [vmem:[%s10810_s8 + $0x4a0] sm:$0xff]  }
0x137a   : > { %5110 = vmatpush1.bf16.msra.mxu0 %v7252_v9  ;;  %5151 = vmatpush1.bf16.msra.mxu1 %v7254_v10  ;;  %v7247_v9 = vcombine.high %v7173_v47, %v7181_v1  ;;  %v7188_v10 = vld [vmem:[%s10808_s6 + $0x2b0] sm:$0xff]  ;;  %v8603_v63 = vld [vmem:[%s10810_s8 + $0x468] sm:$0xff]  }
0x137b   : > { %5111 = vmatprep.subr.bf16.mxu0 %v7269_v38  ;;  %5152 = vmatprep.subr.bf16.mxu1 %v7271_v11  ;;  %v7196_v38 = vld [vmem:[%s10808_s6 + $0x2f0] sm:$0xff]  ;;  %v7189_v11 = vld [vmem:[%s10808_s6 + $0x2b8] sm:$0xff]  ;;  %v8604_v47 = vld [vmem:[%s10810_s8 + $0x4e8] sm:$0xff]  }
0x137c   : > { %v7261_v5 = vcombine.high %v7188_v10, %v7196_v38  ;;  %v7260_v21 = vcombine.low %v7188_v10, %v7196_v38  ;;  %v7262_v22 = vcombine.low %v7189_v11, %v7197_v12  ;;  %v8605_v1 = vld [vmem:[%s10810_s8 + $0x428] sm:$0xff]   ;;  %v8610_v10 = vld [vmem:[%s10810_s8 + $0x4b0] sm:$0xff]   ;;  %v8611_v38 = vld [vmem:[%s10810_s8 + $0x478] sm:$0xff]  }
0x137e   : > { %5112 = vmatpush1.bf16.msra.mxu0 %v7268_v17  ;;  %5153 = vmatpush1.bf16.msra.mxu1 %v7270_v18  ;;  %v7263_v17 = vcombine.high %v7189_v11, %v7197_v12  ;;  %v7204_v18 = vld [vmem:[%s10808_s6 + $0x330] sm:$0xff]  ;;  %v8612_v11 = vld [vmem:[%s10810_s8 + $0x4f8] sm:$0xff]  }
0x137f   : > { %5113 = vmatprep.subr.bf16.mxu0 %v7285_v19  ;;  %5154 = vmatprep.subr.bf16.mxu1 %v7287_v20  ;;  %v7212_v19 = vld [vmem:[%s10808_s6 + $0x370] sm:$0xff]  ;;  %v7205_v20 = vld [vmem:[%s10808_s6 + $0x338] sm:$0xff] }
0x1380   : > { %v7277_v61 = vcombine.high %v7204_v18, %v7212_v19  ;;  %v7276_v28 = vcombine.low %v7204_v18, %v7212_v19  ;;  %v7278_v39 = vcombine.low %v7205_v20, %v7213_v60  ;;  %v8613_v12 = vld [vmem:[%s10810_s8 + $0x438] sm:$0xff]  }
0x1382   : > { %5114 = vmatpush1.bf16.msra.mxu0 %v7284_v16  ;;  %5155 = vmatpush1.bf16.msra.mxu1 %v7286_v23  ;;  %v7279_v16 = vcombine.high %v7205_v20, %v7213_v60  ;;  %v7220_v23 = vld [vmem:[%s10808_s6 + $0x3b0] sm:$0xff] }
0x1383   : > { %5189 = vmatprep.subr.bf16.mxu0 %v7241_v25  ;;  %5230 = vmatprep.subr.bf16.mxu1 %v7243_v26  ;;  %v7228_v25 = vld [vmem:[%s10808_s6 + $0x3f0] sm:$0xff]  ;;  %v7221_v26 = vld [vmem:[%s10808_s6 + $0x3b8] sm:$0xff] }
0x1384   : > { %v7293_v29 = vcombine.high %v7220_v23, %v7228_v25 }
0x1385   : > { %7298 = vmatmul.mubr.msk.bf16.vlgmr.msra.gmra.mrb[64].mxu0 %vm524_vm5, %v10128_v58  ;;  %7299 = vmatmul.mubr.msk.bf16.vlgmr.msra.gmra.mrb[56].mxu1 %vm524_vm5, %v10128_v58 }
0x1386   : > { %5190 = vmatpush1.bf16.msra.mxu0 %v7240_v30  ;;  %5231 = vmatpush1.bf16.msra.mxu1 %v7242_v33  ;;  %v7295_v30 = vcombine.high %v7221_v26, %v7229_v27  ;;  %v7292_v33 = vcombine.low %v7220_v23, %v7228_v25 }
0x1387   : > { %5191 = vmatprep.subr.bf16.mxu0 %v7257_v34  ;;  %5232 = vmatprep.subr.bf16.mxu1 %v7259_v35  ;;  %v7294_v34 = vcombine.low %v7221_v26, %v7229_v27  ;;  %v8583_v35 = vld [vmem:[%s10810_s8 + $0x440] sm:$0xff]  }
0x1388   : > { %5221 = vmatprep.mubr.bf16.mxu0 %v8828_v6  ;;  %5262 = vmatprep.mubr.bf16.mxu1 %v8828_v6 }
0x138a   : > { %5192 = vmatpush1.bf16.msra.mxu0 %v7256_v48  ;;  %5233 = vmatpush1.bf16.msra.mxu1 %v7258_v49  ;;  %v8589_v48 = vld [vmem:[%s10810_s8 + $0x408] sm:$0xff]  }
0x138b   : > { %5193 = vmatprep.subr.bf16.mxu0 %v7273_v51  ;;  %5234 = vmatprep.subr.bf16.mxu1 %v7275_v31  ;;  %v8590_v49 = vld [vmem:[%s10810_s8 + $0x488] sm:$0xff]   ;;  %v8591_v51 = vld [vmem:[%s10810_s8 + $0x450] sm:$0xff]  }
0x138c   : > { %v8593_v31 = vld [vmem:[%s10810_s8 + $0x410] sm:$0xff]  }
0x138e   : > { %5194 = vmatpush1.bf16.msra.mxu0 %v7272_v56  ;;  %5235 = vmatpush1.bf16.msra.mxu1 %v7274_v57  ;;  %v8598_v56 = vld [vmem:[%s10810_s8 + $0x498] sm:$0xff]   ;;  %v8599_v57 = vld [vmem:[%s10810_s8 + $0x460] sm:$0xff]  }
0x138f   : > { %5195 = vmatprep.subr.bf16.mxu0 %v7289_v59  ;;  %5236 = vmatprep.subr.bf16.mxu1 %v7291_v62  ;;  %v8600_v59 = vld [vmem:[%s10810_s8 + $0x4e0] sm:$0xff]  }
0x1390   : > { %v8601_v62 = vld [vmem:[%s10810_s8 + $0x420] sm:$0xff]  }
0x1392   : > { %5196 = vmatpush1.bf16.msra.mxu0 %v7288_v24  ;;  %5237 = vmatpush1.bf16.msra.mxu1 %v7290_v50  ;;  %v8606_v24 = vld [vmem:[%s10810_s8 + $0x4a8] sm:$0xff]   ;;  %v8607_v50 = vld [vmem:[%s10810_s8 + $0x470] sm:$0xff]  }
0x1393   : > { %5271 = vmatprep.subr.bf16.mxu0 %v7245_v7  ;;  %5312 = vmatprep.subr.bf16.mxu1 %v7247_v9  ;;  %v8608_v7 = vld [vmem:[%s10810_s8 + $0x4f0] sm:$0xff]  }
0x1394   : > { %v8609_v9 = vld [vmem:[%s10810_s8 + $0x430] sm:$0xff]  }
0x1395   : > { %7300 = vmatmul.mubr.msk.bf16.vlgmr.msra.gmra.mrb[68].mxu0 %vm524_vm5, %v10128_v58  ;;  %7301 = vmatmul.mubr.msk.bf16.vlgmr.msra.gmra.mrb[60].mxu1 %vm524_vm5, %v10128_v58 }
0x1396   : > { %5272 = vmatpush1.bf16.msra.mxu0 %v7244_v14  ;;  %5313 = vmatpush1.bf16.msra.mxu1 %v7246_v15  ;;  %v8614_v14 = vld [vmem:[%s10810_s8 + $0x4b8] sm:$0xff]   ;;  %v8615_v15 = vld [vmem:[%s10810_s8 + $0x540] sm:$0xff]  }
0x1397   : > { %5273 = vmatprep.subr.bf16.mxu0 %v7261_v5  ;;  %5314 = vmatprep.subr.bf16.mxu1 %v7263_v17  ;;  %v8616_v5 = vld [vmem:[%s10810_s8 + $0x5c0] sm:$0xff]   ;;  %v10377_v17 = vld [vmem:[%s10809_s7 + $0x10] sm:$0xff] }
0x1398   : > { %5303 = vmatprep.mubr.bf16.mxu0 %v8828_v6  ;;  %5344 = vmatprep.mubr.bf16.mxu1 %v8828_v6  ;;  %v8584_v6 = vld [vmem:[%s10810_s8 + $0x4c0] sm:$0xff]   ;;  %v4945_v18 = vrot.slane %v10377_v17, %v9043_v43  ;;  %v4953_v19 = vrot.slane %v10377_v17, %v9225_v13  ;;  %v4949_v20 = vrot.slane %v10377_v17, %v9050_v46 }
0x1399   : > { %v4957_v60 = vrot.slane %v10377_v17, %v9500_v32 }
0x139a   : > { %5274 = vmatpush1.bf16.msra.mxu0 %v7260_v21  ;;  %5315 = vmatpush1.bf16.msra.mxu1 %v7262_v22 }
0x139b   : > { %5275 = vmatprep.subr.bf16.mxu0 %v7277_v61  ;;  %5316 = vmatprep.subr.bf16.mxu1 %v7279_v16 }
0x139e   : > { %5276 = vmatpush1.bf16.msra.mxu0 %v7276_v28  ;;  %5317 = vmatpush1.bf16.msra.mxu1 %v7278_v39 }
0x139f   : > { %5277 = vmatprep.subr.bf16.mxu0 %v7293_v29  ;;  %5318 = vmatprep.subr.bf16.mxu1 %v7295_v30 }
0x13a2   : > { %5278 = vmatpush1.bf16.msra.mxu0 %v7292_v33  ;;  %5319 = vmatpush1.bf16.msra.mxu1 %v7294_v34 }
0x13a3   : > { %7943 = vmatprep.subr.bf16.mxu0 %v8583_v35  ;;  %7965 = vmatprep.subr.bf16.mxu1 %v8584_v6 }
0x13a5   : > { %7302 = vmatmul.mubr.msk.bf16.vlgmr.msra.gmra.mrb[72].mxu0 %vm524_vm5, %v10128_v58  ;;  %7303 = vmatmul.mubr.msk.bf16.vlgmr.msra.gmra.mrb[64].mxu1 %vm524_vm5, %v10128_v58  ;;  %v8592_v58 = vld [vmem:[%s10810_s8 + $0x4d0] sm:$0xff]  }
0x13a6   : > { %7944 = vmatpush3.bf16.msra.mxu0 %v8585_v37  ;;  %7966 = vmatpush3.bf16.msra.mxu1 %v8586_v44 }
0x13a7   : > { %7945 = vmatprep.subr.bf16.mxu0 %v8587_v45  ;;  %7967 = vmatprep.subr.bf16.mxu1 %v8588_v42  ;;  %v8617_v45 = vld [vmem:[%s10810_s8 + $0x500] sm:$0xff]  }
0x13a8   : > { %v8618_v42 = vld [vmem:[%s10810_s8 + $0x580] sm:$0xff]  }
0x13aa   : > { %7946 = vmatpush3.bf16.msra.mxu0 %v8589_v48  ;;  %7968 = vmatpush3.bf16.msra.mxu1 %v8590_v49 }
0x13ab   : > { %7947 = vmatprep.subr.bf16.mxu0 %v8591_v51  ;;  %7969 = vmatprep.subr.bf16.mxu1 %v8592_v58  ;;  %v8619_v51 = vld [vmem:[%s10810_s8 + $0x548] sm:$0xff]  }
0x13ac   : > { %v8620_v58 = vld [vmem:[%s10810_s8 + $0x5c8] sm:$0xff]  }
0x13ae   : > { %7948 = vmatpush3.bf16.msra.mxu0 %v8593_v31  ;;  %7970 = vmatpush3.bf16.msra.mxu1 %v8594_v53  ;;  %v8621_v31 = vld [vmem:[%s10810_s8 + $0x508] sm:$0xff]  }
0x13af   : > { %7949 = vmatprep.subr.bf16.mxu0 %v8595_v54  ;;  %7971 = vmatprep.subr.bf16.mxu1 %v8596_v36  ;;  %v8622_v53 = vld [vmem:[%s10810_s8 + $0x588] sm:$0xff]   ;;  %v8623_v54 = vld [vmem:[%s10810_s8 + $0x550] sm:$0xff]  }
0x13b0   : > { %v8624_v36 = vld [vmem:[%s10810_s8 + $0x5d0] sm:$0xff]  }
0x13b2   : > { %7950 = vmatpush3.bf16.msra.mxu0 %v8597_v55  ;;  %7972 = vmatpush3.bf16.msra.mxu1 %v8598_v56  ;;  %v4965_v55 = vrot.slane %v10377_v17, %v9529_v2  ;;  %v4973_v56 = vrot.slane %v10377_v17, %v9532_v4 }
0x13b3   : > { %7951 = vmatprep.subr.bf16.mxu0 %v8599_v57  ;;  %7973 = vmatprep.subr.bf16.mxu1 %v8600_v59  ;;  %v8625_v57 = vld [vmem:[%s10810_s8 + $0x510] sm:$0xff]  }
0x13b4   : > { %v8626_v59 = vld [vmem:[%s10810_s8 + $0x590] sm:$0xff]  }
0x13b6   : > { %7952 = vmatpush3.bf16.msra.mxu0 %v8601_v62  ;;  %7974 = vmatpush3.bf16.msra.mxu1 %v8602_v0  ;;  %v8627_v62 = vld [vmem:[%s10810_s8 + $0x558] sm:$0xff]  }
0x13b7   : > { %7953 = vmatprep.subr.bf16.mxu0 %v8603_v63  ;;  %7975 = vmatprep.subr.bf16.mxu1 %v8604_v47  ;;  %v8628_v0 = vld [vmem:[%s10810_s8 + $0x5d8] sm:$0xff]  }
0x13ba   : > { %7954 = vmatpush3.bf16.msra.mxu0 %v8605_v1  ;;  %7976 = vmatpush3.bf16.msra.mxu1 %v8606_v24 }
0x13bb   : > { %7955 = vmatprep.subr.bf16.mxu0 %v8607_v50  ;;  %7977 = vmatprep.subr.bf16.mxu1 %v8608_v7 }
0x13be   : > { %7956 = vmatpush3.bf16.msra.mxu0 %v8609_v9  ;;  %7978 = vmatpush3.bf16.msra.mxu1 %v8610_v10 }
0x13bf   : > { %7957 = vmatprep.subr.bf16.mxu0 %v8611_v38  ;;  %7979 = vmatprep.subr.bf16.mxu1 %v8612_v11  ;;  %v8629_v38 = vld [vmem:[%s10810_s8 + $0x518] sm:$0xff]  }
0x13c0   : > { %v8630_v11 = vld [vmem:[%s10810_s8 + $0x598] sm:$0xff]  }
0x13c2   : > { %7958 = vmatpush3.bf16.msra.mxu0 %v8613_v12  ;;  %7980 = vmatpush3.bf16.msra.mxu1 %v8614_v14 }
0x13c3   : > { %7987 = vmatprep.subr.bf16.mxu0 %v8615_v15  ;;  %8009 = vmatprep.subr.bf16.mxu1 %v8616_v5  ;;  %v8631_v15 = vld [vmem:[%s10810_s8 + $0x560] sm:$0xff]  }
0x13c4   : > { %v8632_v5 = vld [vmem:[%s10810_s8 + $0x5e0] sm:$0xff]  }
0x1448   : > { %v5059_v21 = vpop.f32.mrb[60].mxu0  ;;  %v5100_v22 = vpop.f32.mrb[52].mxu1 }
0x1449   : > { %v5060_v61 = vadd.f32 %v5059_v21, %v4945_v18  ;;  %v5101_v16 = vadd.f32 %v5100_v22, %v4953_v19  ;;  %v5061_v23 = vpop.f32.mrb[61].mxu0  ;;  %v5102_v25 = vpop.f32.mrb[53].mxu1  ;;  %v8633_v21 = vld [vmem:[%s10810_s8 + $0x520] sm:$0xff]  }
0x144a   : > { %v5062_v26 = vadd.f32 %v5061_v23, %v4949_v20  ;;  %v5103_v27 = vadd.f32 %v5102_v25, %v4957_v60  ;;  %v5063_v28 = vpop.f32.mrb[62].mxu0  ;;  %v5104_v39 = vpop.f32.mrb[54].mxu1  ;;  %v8634_v22 = vld [vmem:[%s10810_s8 + $0x5a0] sm:$0xff]   ;;  %v8637_v23 = vld [vmem:[%s10810_s8 + $0x528] sm:$0xff]  }
0x144b   : > { %v5353_v29 = vmax.f32 %v5060_v61, 0.0  ;;  %v5355_v30 = vmax.f32 %v5101_v16, 0.0  ;;  %v5064_v33 = vpop.f32.mrb[63].mxu0  ;;  %v5105_v34 = vpop.f32.mrb[55].mxu1  ;;  %v8635_v61 = vld [vmem:[%s10810_s8 + $0x568] sm:$0xff]   ;;  %v10464_v28 = vld [vmem:[%s10809_s7 + $0x18] sm:$0xff] }
0x144c   : > { %v5354_v35 = vmax.f32 %v5062_v26, 0.0  ;;  %v5356_v6 = vmax.f32 %v5103_v27, 0.0  ;;  %v8636_v16 = vld [vmem:[%s10810_s8 + $0x5e8] sm:$0xff]   ;;  %v4961_v26 = vrot.slane %v10377_v17, %v9575_v40  ;;  %v4969_v27 = vrot.slane %v10377_v17, %v9578_v41  ;;  %v8639_v39 = vld [vmem:[%s10810_s8 + $0x570] sm:$0xff]  }
0x144d   : > { %v5369_v48 = vpack.c.bf16 %v5353_v29, %v5353_v29  ;;  %v5371_v49 = vpack.c.bf16 %v5355_v30, %v5355_v30  ;;  %v8638_v25 = vld [vmem:[%s10810_s8 + $0x5a8] sm:$0xff]   ;;  %v8640_v29 = vld [vmem:[%s10810_s8 + $0x5f0] sm:$0xff]   ;;  %v4981_v17 = vrot.slane %v10464_v28, %v9050_v46  ;;  %v4989_v30 = vrot.slane %v10464_v28, %v9500_v32  ;;  %v8644_v46 = vld [vmem:[%s10810_s8 + $0x5f8] sm:$0xff]  }
0x144e   : > { %v5370_v37 = vpack.c.bf16 %v5354_v35, %v5354_v35  ;;  %v5372_v44 = vpack.c.bf16 %v5356_v6, %v5356_v6  ;;  %v8641_v33 = vld [vmem:[%s10810_s8 + $0x530] sm:$0xff]  }
0x144f   : > { %v8642_v34 = vld [vmem:[%s10810_s8 + $0x5b0] sm:$0xff]  }
0x1450   : > { %6444 = vmatprep.mubr.bf16.mxu0 %v5370_v37  ;;  %6484 = vmatprep.mubr.bf16.mxu1 %v5372_v44  ;;  %v8643_v37 = vld [vmem:[%s10810_s8 + $0x578] sm:$0xff]  }
0x1451   : > { %6445 = vmatmul.mubr.bf16.vlgmr.msra.gmra.mrb[76].mxu0 %v5369_v48  ;;  %6485 = vmatmul.mubr.bf16.vlgmr.msra.gmra.mrb[68].mxu1 %v5371_v49 }
0x1452   : > { %7988 = vmatpush3.bf16.msra.mxu0 %v8617_v45  ;;  %8010 = vmatpush3.bf16.msra.mxu1 %v8618_v42 }
0x1453   : > { %7989 = vmatprep.subr.bf16.mxu0 %v8619_v51  ;;  %8011 = vmatprep.subr.bf16.mxu1 %v8620_v58 }
0x1456   : > { %7990 = vmatpush3.bf16.msra.mxu0 %v8621_v31  ;;  %8012 = vmatpush3.bf16.msra.mxu1 %v8622_v53  ;;  %v8645_v31 = vld [vmem:[%s10810_s8 + $0x538] sm:$0xff]  }
0x1457   : > { %7991 = vmatprep.subr.bf16.mxu0 %v8623_v54  ;;  %8013 = vmatprep.subr.bf16.mxu1 %v8624_v36  ;;  %v8646_v53 = vld [vmem:[%s10810_s8 + $0x5b8] sm:$0xff]  }
0x1458   : > { %v5141_v63 = vpop.f32.mrb[64].mxu0  ;;  %v5182_v47 = vpop.f32.mrb[56].mxu1 }
0x1459   : > { %v5143_v1 = vpop.f32.mrb[65].mxu0  ;;  %v5184_v24 = vpop.f32.mrb[57].mxu1  ;;  %v5142_v35 = vadd.f32 %v5141_v63, %v4961_v26  ;;  %v5183_v6 = vadd.f32 %v5182_v47, %v4969_v27  ;;  %v8649_v63 = vld [vmem:[%s10810_s8 + $0x600] sm:$0xff]  }
0x145a   : > { %v5144_v50 = vadd.f32 %v5143_v1, %v4965_v55  ;;  %v5185_v7 = vadd.f32 %v5184_v24, %v4973_v56  ;;  %v5145_v9 = vpop.f32.mrb[66].mxu0  ;;  %v5186_v10 = vpop.f32.mrb[58].mxu1  ;;  %7992 = vmatpush3.bf16.msra.mxu0 %v8625_v57  ;;  %8014 = vmatpush3.bf16.msra.mxu1 %v8626_v59  ;;  %v8647_v57 = vld [vmem:[%s10810_s8 + $0x640] sm:$0xff]  }
0x145b   : > { %v5146_v12 = vpop.f32.mrb[67].mxu0  ;;  %v5187_v14 = vpop.f32.mrb[59].mxu1  ;;  %7993 = vmatprep.subr.bf16.mxu0 %v8627_v62  ;;  %8015 = vmatprep.subr.bf16.mxu1 %v8628_v0  ;;  %v5357_v54 = vmax.f32 %v5142_v35, 0.0  ;;  %v5359_v36 = vmax.f32 %v5183_v6, 0.0  ;;  %v8648_v59 = vld [vmem:[%s10810_s8 + $0x6c0] sm:$0xff]   ;;  %v8652_v9 = vld [vmem:[%s10810_s8 + $0x6c8] sm:$0xff]  }
0x145c   : > { %v5358_v18 = vmax.f32 %v5144_v50, 0.0  ;;  %v5360_v19 = vmax.f32 %v5185_v7, 0.0  ;;  %v8650_v24 = vld [vmem:[%s10810_s8 + $0x680] sm:$0xff]   ;;  %v8651_v7 = vld [vmem:[%s10810_s8 + $0x648] sm:$0xff]   ;;  %v8655_v12 = vld [vmem:[%s10810_s8 + $0x650] sm:$0xff]  }
0x145d   : > { %v5373_v47 = vpack.c.bf16 %v5357_v54, %v5357_v54  ;;  %v5375_v1 = vpack.c.bf16 %v5359_v36, %v5359_v36  ;;  %v8656_v14 = vld [vmem:[%s10810_s8 + $0x6d0] sm:$0xff]   ;;  %v8668_v35 = vld [vmem:[%s10810_s8 + $0x6e8] sm:$0xff]  }
0x145e   : > { %v5374_v20 = vpack.c.bf16 %v5358_v18, %v5358_v18  ;;  %v5376_v60 = vpack.c.bf16 %v5360_v19, %v5360_v19  ;;  %7994 = vmatpush3.bf16.msra.mxu0 %v8629_v38  ;;  %8016 = vmatpush3.bf16.msra.mxu1 %v8630_v11  ;;  %v8653_v38 = vld [vmem:[%s10810_s8 + $0x608] sm:$0xff]   ;;  %v8658_v18 = vld [vmem:[%s10810_s8 + $0x690] sm:$0xff]   ;;  %v8659_v19 = vld [vmem:[%s10810_s8 + $0x658] sm:$0xff]  }
0x145f   : > { %7995 = vmatprep.subr.bf16.mxu0 %v8631_v15  ;;  %8017 = vmatprep.subr.bf16.mxu1 %v8632_v5  ;;  %v8654_v11 = vld [vmem:[%s10810_s8 + $0x688] sm:$0xff]   ;;  %v5001_v15 = vrot.slane %v10464_v28, %v9578_v41  ;;  %v8657_v5 = vld [vmem:[%s10810_s8 + $0x610] sm:$0xff]   ;;  %v8660_v41 = vld [vmem:[%s10810_s8 + $0x6d8] sm:$0xff]  }
0x1460   : > { %6524 = vmatprep.mubr.bf16.mxu0 %v5374_v20  ;;  %6564 = vmatprep.mubr.bf16.mxu1 %v5376_v60  ;;  %v8669_v6 = vld [vmem:[%s10810_s8 + $0x628] sm:$0xff]  }
0x1462   : > { %7996 = vmatpush3.bf16.msra.mxu0 %v8633_v21  ;;  %8018 = vmatpush3.bf16.msra.mxu1 %v8634_v22 }
0x1463   : > { %7997 = vmatprep.subr.bf16.mxu0 %v8635_v61  ;;  %8019 = vmatprep.subr.bf16.mxu1 %v8636_v16 }
0x1466   : > { %7998 = vmatpush3.bf16.msra.mxu0 %v8637_v23  ;;  %8020 = vmatpush3.bf16.msra.mxu1 %v8638_v25  ;;  %v8661_v25 = vld [vmem:[%s10810_s8 + $0x618] sm:$0xff]  }
0x1467   : > { %7999 = vmatprep.subr.bf16.mxu0 %v8639_v39  ;;  %8021 = vmatprep.subr.bf16.mxu1 %v8640_v29  ;;  %v8662_v39 = vld [vmem:[%s10810_s8 + $0x698] sm:$0xff]   ;;  %v8663_v29 = vld [vmem:[%s10810_s8 + $0x660] sm:$0xff]  }
0x1468   : > { %v10488_v32 = vpop.f32.mrb[68].mxu0  ;;  %v10490_v44 = vpop.f32.mrb[60].mxu1 }
0x1469   : > { %v5225_v45 = vpop.f32.mrb[69].mxu0  ;;  %v5266_v42 = vpop.f32.mrb[61].mxu1 }
0x146a   : > { %v5226_v48 = vadd.f32 %v5225_v45, %v4981_v17  ;;  %v5267_v49 = vadd.f32 %v5266_v42, %v4989_v30  ;;  %v5227_v51 = vpop.f32.mrb[70].mxu0  ;;  %v5268_v58 = vpop.f32.mrb[62].mxu1  ;;  %8000 = vmatpush3.bf16.msra.mxu0 %v8641_v33  ;;  %8022 = vmatpush3.bf16.msra.mxu1 %v8642_v34  ;;  %v8664_v17 = vld [vmem:[%s10810_s8 + $0x6e0] sm:$0xff]   ;;  %v8667_v34 = vld [vmem:[%s10810_s8 + $0x668] sm:$0xff]   ;;  %v8671_v45 = vld [vmem:[%s10810_s8 + $0x670] sm:$0xff]   ;;  %v4985_v42 = vrot.slane %v10464_v28, %v9225_v13 }
0x146b   : > { %v5228_v55 = vpop.f32.mrb[71].mxu0  ;;  %v5269_v56 = vpop.f32.mrb[63].mxu1  ;;  %8001 = vmatprep.subr.bf16.mxu0 %v8643_v37  ;;  %8023 = vmatprep.subr.bf16.mxu1 %v8644_v46  ;;  %v8665_v30 = vld [vmem:[%s10810_s8 + $0x620] sm:$0xff]   ;;  %v4977_v37 = vrot.slane %v10464_v28, %v9043_v43  ;;  %v8670_v46 = vld [vmem:[%s10810_s8 + $0x6a8] sm:$0xff]   ;;  %v4997_v43 = vrot.slane %v10464_v28, %v9529_v2  ;;  %v8673_v51 = vld [vmem:[%s10810_s8 + $0x630] sm:$0xff]  }
0x146c   : > { %v5362_v62 = vmax.f32 %v5226_v48, 0.0  ;;  %v5364_v0 = vmax.f32 %v5267_v49, 0.0  ;;  %v8666_v33 = vld [vmem:[%s10810_s8 + $0x6a0] sm:$0xff]   ;;  %v8672_v48 = vld [vmem:[%s10810_s8 + $0x6f0] sm:$0xff]   ;;  %v5005_v49 = vrot.slane %v10464_v28, %v9532_v4  ;;  %v8675_v2 = vld [vmem:[%s10810_s8 + $0x678] sm:$0xff]  }
0x146d   : > { %v5224_v58 = vadd.f32 %v10488_v32, %v4977_v37  ;;  %v8674_v13 = vld [vmem:[%s10810_s8 + $0x6b0] sm:$0xff]   ;;  %v8676_v4 = vld [vmem:[%s10810_s8 + $0x6f8] sm:$0xff]  }
0x146e   : > { %8002 = vmatpush3.bf16.msra.mxu0 %v8645_v31  ;;  %8024 = vmatpush3.bf16.msra.mxu1 %v8646_v53  ;;  %v5378_v50 = vpack.c.bf16 %v5362_v62, %v5362_v62  ;;  %v5380_v10 = vpack.c.bf16 %v5364_v0, %v5364_v0  ;;  %v5265_v31 = vadd.f32 %v10490_v44, %v4985_v42  ;;  %v8677_v32 = vld [vmem:[%s10810_s8 + $0x638] sm:$0xff]   ;;  %v8679_v44 = vld [vmem:[%s10810_s8 + $0x740] sm:$0xff]  }
0x146f   : > { %8031 = vmatprep.subr.bf16.mxu0 %v8647_v57  ;;  %8053 = vmatprep.subr.bf16.mxu1 %v8648_v59  ;;  %v5361_v36 = vmax.f32 %v5224_v58, 0.0  ;;  %v8678_v55 = vld [vmem:[%s10810_s8 + $0x6b8] sm:$0xff]   ;;  %v8680_v57 = vld [vmem:[%s10810_s8 + $0x7c0] sm:$0xff]  }
0x1470   : > { %v5363_v56 = vmax.f32 %v5265_v31, 0.0  ;;  %v8681_v0 = vld [vmem:[%s10810_s8 + $0x700] sm:$0xff]  }
0x1471   : > { %6525 = vmatmul.mubr.bf16.vlgmr.msra.gmra.mrb[80].mxu0 %v5373_v47  ;;  %6565 = vmatmul.mubr.bf16.vlgmr.msra.gmra.mrb[72].mxu1 %v5375_v1  ;;  %v8682_v47 = vld [vmem:[%s10810_s8 + $0x780] sm:$0xff]  }
0x1472   : > { %8032 = vmatpush3.bf16.msra.mxu0 %v8649_v63  ;;  %6604 = vmatprep.mubr.bf16.mxu0 %v5378_v50  ;;  %v5377_v63 = vpack.c.bf16 %v5361_v36, %v5361_v36  ;;  %v5379_v1 = vpack.c.bf16 %v5363_v56, %v5363_v56 }
0x1473   : > { %8054 = vmatpush3.bf16.msra.mxu1 %v8650_v24  ;;  %6644 = vmatprep.mubr.bf16.mxu1 %v5380_v10  ;;  %v8683_v24 = vld [vmem:[%s10810_s8 + $0x748] sm:$0xff]  }
0x1474   : > { %8033 = vmatprep.subr.bf16.mxu0 %v8651_v7  ;;  %8055 = vmatprep.subr.bf16.mxu1 %v8652_v9  ;;  %v8684_v7 = vld [vmem:[%s10810_s8 + $0x7c8] sm:$0xff]  }
0x1475   : > { %v8685_v10 = vld [vmem:[%s10810_s8 + $0x708] sm:$0xff]  }
0x1476   : > { %8034 = vmatpush3.bf16.msra.mxu0 %v8653_v38  ;;  %v8686_v38 = vld [vmem:[%s10810_s8 + $0x788] sm:$0xff]  }
0x1477   : > { %8056 = vmatpush3.bf16.msra.mxu1 %v8654_v11  ;;  %8035 = vmatprep.subr.bf16.mxu0 %v8655_v12  ;;  %v8687_v11 = vld [vmem:[%s10810_s8 + $0x750] sm:$0xff]  }
0x1478   : > { %v10539_v20 = vpop.f32.mrb[72].mxu0  ;;  %v5346_v60 = vpop.f32.mrb[64].mxu1  ;;  %8057 = vmatprep.subr.bf16.mxu1 %v8656_v14  ;;  %v8688_v12 = vld [vmem:[%s10810_s8 + $0x7d0] sm:$0xff]  }
0x1479   : > { %v10544_v21 = vadd.f32 %v5346_v60, %v5001_v15  ;;  %v5307_v22 = vpop.f32.mrb[73].mxu0  ;;  %v5348_v61 = vpop.f32.mrb[65].mxu1  ;;  %v8689_v14 = vld [vmem:[%s10810_s8 + $0x710] sm:$0xff]   ;;  %v8694_v60 = vld [vmem:[%s10810_s8 + $0x798] sm:$0xff]  }
0x147a   : > { %v5309_v16 = vpop.f32.mrb[74].mxu0  ;;  %v5350_v23 = vpop.f32.mrb[66].mxu1  ;;  %8036 = vmatpush3.bf16.msra.mxu0 %v8657_v5  ;;  %v5308_v53 = vadd.f32 %v5307_v22, %v4997_v43  ;;  %v5349_v54 = vadd.f32 %v5348_v61, %v5005_v49  ;;  %v8690_v15 = vld [vmem:[%s10810_s8 + $0x790] sm:$0xff]   ;;  %v8691_v5 = vld [vmem:[%s10810_s8 + $0x758] sm:$0xff]   ;;  %v8696_v22 = vld [vmem:[%s10810_s8 + $0x7e0] sm:$0xff]  }
0x147b   : > { %8058 = vmatpush3.bf16.msra.mxu1 %v8658_v18  ;;  %v5310_v26 = vpop.f32.mrb[75].mxu0  ;;  %v5351_v27 = vpop.f32.mrb[67].mxu1  ;;  %8037 = vmatprep.subr.bf16.mxu0 %v8659_v19  ;;  %v8692_v18 = vld [vmem:[%s10810_s8 + $0x7d8] sm:$0xff]   ;;  %v8697_v61 = vld [vmem:[%s10810_s8 + $0x720] sm:$0xff]   ;;  %v8699_v23 = vld [vmem:[%s10810_s8 + $0x768] sm:$0xff]   ;;  %v5367_v37 = vmax.f32 %v10544_v21, 0.0 }
0x147c   : > { %8059 = vmatprep.subr.bf16.mxu1 %v8660_v41  ;;  %v5366_v59 = vmax.f32 %v5308_v53, 0.0  ;;  %v5368_v62 = vmax.f32 %v5349_v54, 0.0  ;;  %v8693_v19 = vld [vmem:[%s10810_s8 + $0x718] sm:$0xff]   ;;  %v8695_v41 = vld [vmem:[%s10810_s8 + $0x760] sm:$0xff]   ;;  %v8701_v26 = vld [vmem:[%s10810_s8 + $0x728] sm:$0xff]   ;;  %v4993_v27 = vrot.slane %v10464_v28, %v9575_v40 }
0x147d   : > { %v8698_v16 = vld [vmem:[%s10810_s8 + $0x7a0] sm:$0xff]   ;;  %v8705_v40 = vld [vmem:[%s10810_s8 + $0x730] sm:$0xff]   ;;  %v10716_v43 = vld [vmem:[%s10811_s9 + $0x8] sm:$0x3f] }
0x147e   : > { %8038 = vmatpush3.bf16.msra.mxu0 %v8661_v25  ;;  %v5382_v50 = vpack.c.bf16 %v5366_v59, %v5366_v59  ;;  %v5384_v9 = vpack.c.bf16 %v5368_v62, %v5368_v62  ;;  %v8700_v25 = vld [vmem:[%s10810_s8 + $0x7e8] sm:$0xff]   ;;  %v5306_v28 = vadd.f32 %v10539_v20, %v4993_v27  ;;  %v8709_v20 = vld [vmem:[%s10810_s8 + $0x738] sm:$0xff]   ;;  %v6410_v21 = vrot.slane %v10716_v43, 3 }
0x147f   : > { %8060 = vmatpush3.bf16.msra.mxu1 %v8662_v39  ;;  %8039 = vmatprep.subr.bf16.mxu0 %v8663_v29  ;;  %v8702_v39 = vld [vmem:[%s10810_s8 + $0x7a8] sm:$0xff]   ;;  %v8703_v29 = vld [vmem:[%s10810_s8 + $0x770] sm:$0xff]  }
0x1480   : > { %8061 = vmatprep.subr.bf16.mxu1 %v8664_v17  ;;  %v8704_v17 = vld [vmem:[%s10810_s8 + $0x7f0] sm:$0xff]  }
0x1482   : > { %8040 = vmatpush3.bf16.msra.mxu0 %v8665_v30  ;;  %v8706_v30 = vld [vmem:[%s10810_s8 + $0x7b0] sm:$0xff]  }
0x1483   : > { %8062 = vmatpush3.bf16.msra.mxu1 %v8666_v33  ;;  %8041 = vmatprep.subr.bf16.mxu0 %v8667_v34  ;;  %v8707_v33 = vld [vmem:[%s10810_s8 + $0x778] sm:$0xff]  }
0x1484   : > { %8063 = vmatprep.subr.bf16.mxu1 %v8668_v35  ;;  %v8708_v34 = vld [vmem:[%s10810_s8 + $0x7f8] sm:$0xff]   ;;  %v5365_v35 = vmax.f32 %v5306_v28, 0.0 }
0x1486   : > { %8042 = vmatpush3.bf16.msra.mxu0 %v8669_v6  ;;  %v8710_v6 = vld [vmem:[%s10810_s8 + $0x7b8] sm:$0xff]  }
0x1487   : > { %8064 = vmatpush3.bf16.msra.mxu1 %v8670_v46  ;;  %8043 = vmatprep.subr.bf16.mxu0 %v8671_v45  ;;  %v5381_v46 = vpack.c.bf16 %v5365_v35, %v5365_v35  ;;  %v5383_v45 = vpack.c.bf16 %v5367_v37, %v5367_v37  ;;  %v6752_v35 = vld [vmem:[%s10812_s10] sm:$0xff] }
0x1488   : > { %8065 = vmatprep.subr.bf16.mxu1 %v8672_v48 }
0x148a   : > { %8044 = vmatpush3.bf16.msra.mxu0 %v8673_v51 }
0x148b   : > { %8066 = vmatpush3.bf16.msra.mxu1 %v8674_v13  ;;  %8045 = vmatprep.subr.bf16.mxu0 %v8675_v2 }
0x148c   : > { %8067 = vmatprep.subr.bf16.mxu1 %v8676_v4 }
0x148e   : > { %8046 = vmatpush3.bf16.msra.mxu0 %v8677_v32 }
0x148f   : > { %8068 = vmatpush3.bf16.msra.mxu1 %v8678_v55  ;;  %8075 = vmatprep.subr.bf16.mxu0 %v8679_v44 }
0x1490   : > { %8097 = vmatprep.subr.bf16.mxu1 %v8680_v57 }
0x1491   : > { %6605 = vmatmul.mubr.bf16.vlgmr.msra.gmra.mrb[84].mxu0 %v5377_v63 }
0x1492   : > { %6645 = vmatmul.mubr.bf16.vlgmr.msra.gmra.mrb[76].mxu1 %v5379_v1  ;;  %8076 = vmatpush3.bf16.msra.mxu0 %v8681_v0 }
0x1493   : > { %6684 = vmatprep.mubr.bf16.mxu0 %v5382_v50  ;;  %8098 = vmatpush3.bf16.msra.mxu1 %v8682_v47 }
0x1494   : > { %6724 = vmatprep.mubr.bf16.mxu1 %v5384_v9  ;;  %8077 = vmatprep.subr.bf16.mxu0 %v8683_v24 }
0x1495   : > { %8099 = vmatprep.subr.bf16.mxu1 %v8684_v7 }
0x1496   : > { %8078 = vmatpush3.bf16.msra.mxu0 %v8685_v10 }
0x1497   : > { %8100 = vmatpush3.bf16.msra.mxu1 %v8686_v38  ;;  %8079 = vmatprep.subr.bf16.mxu0 %v8687_v11 }
0x1498   : > { %8101 = vmatprep.subr.bf16.mxu1 %v8688_v12 }
0x149a   : > { %8080 = vmatpush3.bf16.msra.mxu0 %v8689_v14 }
0x149b   : > { %8102 = vmatpush3.bf16.msra.mxu1 %v8690_v15  ;;  %8081 = vmatprep.subr.bf16.mxu0 %v8691_v5 }
0x149c   : > { %8103 = vmatprep.subr.bf16.mxu1 %v8692_v18 }
0x149e   : > { %8082 = vmatpush3.bf16.msra.mxu0 %v8693_v19 }
0x149f   : > { %8104 = vmatpush3.bf16.msra.mxu1 %v8694_v60  ;;  %8083 = vmatprep.subr.bf16.mxu0 %v8695_v41 }
0x14a0   : > { %8105 = vmatprep.subr.bf16.mxu1 %v8696_v22 }
0x14a2   : > { %8084 = vmatpush3.bf16.msra.mxu0 %v8697_v61 }
0x14a3   : > { %8106 = vmatpush3.bf16.msra.mxu1 %v8698_v16  ;;  %8085 = vmatprep.subr.bf16.mxu0 %v8699_v23 }
0x14a4   : > { %8107 = vmatprep.subr.bf16.mxu1 %v8700_v25 }
0x14a6   : > { %8086 = vmatpush3.bf16.msra.mxu0 %v8701_v26 }
0x14a7   : > { %8108 = vmatpush3.bf16.msra.mxu1 %v8702_v39  ;;  %8087 = vmatprep.subr.bf16.mxu0 %v8703_v29 }
0x14a8   : > { %8109 = vmatprep.subr.bf16.mxu1 %v8704_v17 }
0x14aa   : > { %8088 = vmatpush3.bf16.msra.mxu0 %v8705_v40 }
0x14ab   : > { %8110 = vmatpush3.bf16.msra.mxu1 %v8706_v30  ;;  %8089 = vmatprep.subr.bf16.mxu0 %v8707_v33 }
0x14ac   : > { %8111 = vmatprep.subr.bf16.mxu1 %v8708_v34 }
0x14ae   : > { %8090 = vmatpush3.bf16.msra.mxu0 %v8709_v20 }
0x14af   : > { %8112 = vmatpush3.bf16.msra.mxu1 %v8710_v6  ;;  %8392 = vmatprep.subr.bf16.mxu0 %v8817_v3  ;;  %v6753_v6 = vld [vmem:[%s10812_s10 + $0x8] sm:$0xff] }
0x14b0   : > { %v8393_v37 = vpack.c.bf16 %v6753_v6, %v6752_v35 }
0x14b1   : > { %6685 = vmatmul.mubr.bf16.vlgmr.msra.gmra.mrb[88].mxu0 %v5381_v46  ;;  %v6755_v46 = vld [vmem:[%s10812_s10 + $0x18] sm:$0xff] }
0x14b2   : > { %6725 = vmatmul.mubr.bf16.vlgmr.msra.gmra.mrb[80].mxu1 %v5383_v45  ;;  %8315 = vmatprep.mubr.msk.f32.mxu0 %vm8818_vm0, %v8819_v8 }
0x14b3   : > { %8394 = vmatpush3.bf16.msra.mxu0 %v8393_v37 }
0x14b4   : > { %8395 = vmatprep.subr.bf16.mxu0 %v8817_v3 }
0x1524   : > { %v7959_v42 = vpop.f32.mrb[76].mxu0  ;;  %v7981_v48 = vpop.f32.mrb[68].mxu1 }
0x1525   : > { %v7960_v49 = vpop.f32.mrb[77].mxu0  ;;  %v7982_v51 = vpop.f32.mrb[69].mxu1 }
0x1526   : > { %v7961_v58 = vadd.f32 %v7960_v49, %v7959_v42  ;;  %v7983_v13 = vadd.f32 %v7982_v51, %v7981_v48  ;;  %v7962_v2 = vpop.f32.mrb[78].mxu0  ;;  %v7984_v31 = vpop.f32.mrb[70].mxu1  ;;  %v6756_v42 = vld [vmem:[%s10812_s10 + $0x20] sm:$0xff]  ;;  %v6757_v48 = vld [vmem:[%s10812_s10 + $0x28] sm:$0xff]  ;;  %v6758_v49 = vld [vmem:[%s10812_s10 + $0x30] sm:$0xff] }
0x1527   : > { %v7963_v4 = vpop.f32.mrb[79].mxu0  ;;  %v7985_v53 = vpop.f32.mrb[71].mxu1  ;;  %v6759_v51 = vld [vmem:[%s10812_s10 + $0x38] sm:$0xff] }
0x1528   : > { %v6447_v54 = vadd.f32 %v7961_v58, %v6410_v21  ;;  %v8399_v21 = vpack.c.bf16 %v6757_v48, %v6756_v42  ;;  %v8402_v58 = vpack.c.bf16 %v6759_v51, %v6758_v49  ;;  %v6746_v4 = vrot.slane %v10716_v43, 4 }
0x152a   : > { %v6487_v32 = vadd.f32 %v7983_v13, %v6447_v54  ;;  %v6749_v54 = vrot.slane %v10716_v43, 5 }
0x1544   : > { %v8003_v8 = vpop.f32.mrb[80].mxu0  ;;  %v8025_v36 = vpop.f32.mrb[72].mxu1 }
0x1545   : > { %v8004_v55 = vpop.f32.mrb[81].mxu0  ;;  %v8026_v44 = vpop.f32.mrb[73].mxu1 }
0x1546   : > { %v8005_v56 = vadd.f32 %v8004_v55, %v8003_v8  ;;  %v8027_v57 = vadd.f32 %v8026_v44, %v8025_v36  ;;  %v8006_v59 = vpop.f32.mrb[82].mxu0  ;;  %v8028_v62 = vpop.f32.mrb[74].mxu1  ;;  %v6760_v36 = vld [vmem:[%s10813_s11] sm:$0x1] }
0x1547   : > { %v8007_v0 = vpop.f32.mrb[83].mxu0  ;;  %v8029_v63 = vpop.f32.mrb[75].mxu1 }
0x1548   : > { %v6527_v47 = vadd.f32 %v8005_v56, %v6487_v32 }
0x154a   : > { %v6567_v1 = vadd.f32 %v8027_v57, %v6527_v47 }
0x1564   : > { %v8047_v24 = vpop.f32.mrb[84].mxu0 }
0x1565   : > { %v8069_v50 = vpop.f32.mrb[76].mxu1  ;;  %v8048_v7 = vpop.f32.mrb[85].mxu0 }
0x1566   : > { %v8049_v9 = vadd.f32 %v8048_v7, %v8047_v24  ;;  %v8070_v10 = vpop.f32.mrb[77].mxu1  ;;  %v8050_v38 = vpop.f32.mrb[86].mxu0 }
0x1567   : > { %v8071_v11 = vadd.f32 %v8070_v10, %v8069_v50  ;;  %v8072_v12 = vpop.f32.mrb[78].mxu1  ;;  %v8051_v14 = vpop.f32.mrb[87].mxu0 }
0x1568   : > { %v6607_v15 = vadd.f32 %v8049_v9, %v6567_v1  ;;  %v8073_v5 = vpop.f32.mrb[79].mxu1 }
0x156a   : > { %v6647_v18 = vadd.f32 %v8071_v11, %v6607_v15 }
0x1584   : > { %v8091_v19 = vpop.f32.mrb[88].mxu0 }
0x1585   : > { %v8113_v60 = vpop.f32.mrb[80].mxu1  ;;  %v8092_v41 = vpop.f32.mrb[89].mxu0 }
0x1586   : > { %v8093_v22 = vadd.f32 %v8092_v41, %v8091_v19  ;;  %v8114_v61 = vpop.f32.mrb[81].mxu1  ;;  %v8094_v16 = vpop.f32.mrb[90].mxu0 }
0x1587   : > { %v8115_v23 = vadd.f32 %v8114_v61, %v8113_v60  ;;  %v8116_v25 = vpop.f32.mrb[82].mxu1  ;;  %v8095_v26 = vpop.f32.mrb[91].mxu0 }
0x1588   : > { %v6687_v27 = vadd.f32 %v8093_v22, %v6647_v18  ;;  %v8117_v39 = vpop.f32.mrb[83].mxu1 }
0x158a   : > { %v6727_v29 = vadd.f32 %v8115_v23, %v6687_v27 }
0x158c   : > { %v6732_v17 = vadd.f32 %v6727_v29, %v10124_v52  ;;  %v6754_v52 = vld [vmem:[%s10812_s10 + $0x10] sm:$0xff] }
0x158d   : > { %v8396_v45 = vpack.c.bf16 %v6755_v46, %v6754_v52 }
0x158e   : > { %v6733_v40 = vsel %vm4530_vm11, %v6732_v17, 0.0 }
0x158f   : > { %6734 = vadd.xlane.f32.xlu0 %v6733_v40  ;;  %8397 = vmatpush3.bf16.msra.mxu0 %v8396_v45 }
0x1590   : > { %8398 = vmatprep.subr.bf16.mxu0 %v8817_v3 }
0x1593   : > { %8400 = vmatpush3.bf16.msra.mxu0 %v8399_v21 }
0x1594   : > { %8401 = vmatprep.subr.bf16.mxu0 %v8817_v3 }
0x1597   : > { %8403 = vmatpush3.bf16.msra.mxu0 %v8402_v58 }
0x161c   : > { %v6735_v28 = vpop.xlane.xlu0 %6734 }
0x161d   : > { %v6736_v30 = vmul.f32 0.015625, %v6735_v28 }
0x161f   : > { %v6737_v33 = vsub.f32 %v6732_v17, %v6736_v30 }
0x1621   : > { %v6738_v34 = vmul.f32 %v6737_v33, %v6737_v33 }
0x1623   : > { %v6739_v20 = vsel %vm4530_vm11, %v6738_v34, 0.0 }
0x1624   : > { %6740 = vadd.xlane.f32.xlu0 %v6739_v20 }
0x16b1   : > { %v6741_v13 = vpop.xlane.xlu0 %6740 }
0x16b2   : > { %v6742_v2 = vmul.f32 0.015625, %v6741_v13 }
0x16b4   : > { %v6743_v31 = vadd.f32 1e-05, %v6742_v2 }
0x16b6   : > { %8749 = vrsqrt.f32 %v6743_v31 }
0x16c0   : > { %v8750_v53 = vpop.eup %8749 }
0x16c1   : > { %v6745_v3 = vmul.f32 %v8750_v53, %v6737_v33 }
0x16c3   : > { %v6748_v32 = vmul.f32 %v6746_v4, %v6745_v3 }
0x16c5   : > { %v6751_v8 = vadd.f32 %v6749_v54, %v6748_v32 }
0x16c7   : > { %8316 = vmatmul.mubr.msk.f32.vlgmr.msra.gmra.mrb[58].mxu0 %vm524_vm5, %v6751_v8 }
0x179a   : > { %v6830_v55 = vpop.f32.mrb[58].mxu0 }
0x179b   : > { %v6831_v44 = vadd.f32 %v6830_v55, %v6760_v36  ;;  %v8317_v56 = vpop.f32.mrb[59].mxu0 }
0x179d   : > { %6835 = vst.msk [vmem:[%s403_s29] sm:$0x1] %vm6834_vm12, %v6831_v44 }
0x179e   : > { %8766 = shalt.err (!%p8763_p3)
}
0x179f   : > { %s8767_s18 = scalar_lea.hbm %s10760_s26, 16  ;;  %s8771_s19 = scalar_lea.hbm %s10814_s12, 32 }
0x17a0   : > { %p8768_p4 = scmp.ne.s32.totalorder %s10760_s26, %s8767_s18  ;;  %p8772_p9 = scmp.lt.u32.totalorder %s10760_s26, %s10814_s12 }
0x17a1   : > { %p8773_p10 = scmp.lt.u32.totalorder %s8771_s19, %s8767_s18  ;;  %p8775_p12 = scmp.lt.u32.totalorder %s8767_s18, %s10760_s26 }
0x17a2   : > { %p8769_p7 = pnand %p8768_p4, %p8933_p5 }
0x17a3   : > { %p8774_p11 = por %p8773_p10, %p8772_p9 }
0x17a4   : > { %p8770_p8 = pneg %p8769_p7 }
0x17a5   : > { %p8776_p13 = por %p8775_p12, %p8774_p11 }
0x17a7   : > { %p8777_p0 = pnand %p8776_p13, %p8770_p8 }
0x17a9   : > { %8780 = shalt.err (!%p8777_p0)
}
0x17aa   : > { %8404 = dma.vmem_to_hbm [thread:$0]  (%p8933_p5), %s10762_s15, 16, %s10760_s26, %s6837_s28  }
0x17ab PF: > { %p8410_p1 = scmp.ge.s32.totalorder %s8815_s24, 2  ;;  %s6861_s17 = sand.u32 1, %s8803_s21  }
0x17ac   : > { %s6862_s30 = scalar_lea.sflag [#allocation3], %s6861_s17 }
0x17ad   : > { %p8407_p2 = pnand %p8410_p1, %p8937_p6 }
0x17af   : > { %8798 = dma.done.wait (!%p8407_p2), %s6862_s30, 16  }
0x17b0   : > { %8800 = vsyncadd (!%p8407_p2), %s6862_s30, 4294967280  ;;  %s10839_s16 = sld [smem:[#allocation5_spill]]  ;;  %p22_p3 = scmp.ge.s32.totalorder %s8920_s27, 4  }
0x17b1   : > { %s10840_s21 = smov %s8807_s22  ;;  %s10841_s22 = smov %s8811_s23 }
0x17b2   : > { %s10843_s24 = smov %s8920_s27  ;;  %24 = sbr.rel (!%p22_p3) target bundleno = 5 (0x5), region = 110 }
0x17b6   : > { %s10842_s23 = smov %s10839_s16 }
0x17b9   :  { %6866 = vsyncpa [#allocation3], 1 }
0x17ba   :  { %6868 = vsyncpa [#allocation3 + $0x1], 1 }

</bundles_post_ra>
